<compile_context>
chip_gen: v5e
topology: v5e:2x2
jax: 0.10.0
libtpu: 0.0.40
codegen_flags: <defaults>
</compile_context>

<pallas_src>
import functools

import jax
import jax.numpy as jnp
from jax.experimental import pallas as pl
from jax.experimental.pallas import tpu as pltpu

# --- sizes (small, TPU-tile-friendly stand-ins for the module defaults) -----
STUDENT_HIDDEN = 128   # module default: 300
KC_EMB = 128           # module default: 768
HIDDEN = 128           # module default: 300
UP_PROJ = 256          # module default: 1200
NUM_QUESTIONS = 512    # module default: 7652 (padded to 7680 at defaults)

OBS_DIM = STUDENT_HIDDEN + KC_EMB

BATCH_TILE = 128       # fills MXU rows on all generations; v7x megacore gets
                       # one batch tile per TensorCore via the 'parallel' axis.
LANE = 128             # pad all feature dims to multiples of the lane width.


def _round_up(x, m):
    return ((x + m - 1) // m) * m


def _discrete_actor_kernel(
    obs_ref,
    w01_ref, b01_ref,          # fused (block-diagonal) hidden_state_fc + kc_emb_fc
    w1_ref, b1_ref,            # fc1
    w2_ref, b2_ref,            # fc2
    wo_ref, bo_ref,            # output projection (fully VMEM resident)
    out_ref,
):
    # relu(obs @ W01 + b01) == concat(relu(hidden_state_fc), relu(kc_emb_fc))
    x = obs_ref[...].astype(w01_ref.dtype)
    h = jnp.dot(x, w01_ref[...], preferred_element_type=jnp.float32) + b01_ref[...]
    h = jnp.maximum(h, 0.0)
    # relu(fc1)
    h = jnp.dot(h.astype(w1_ref.dtype), w1_ref[...],
                preferred_element_type=jnp.float32) + b1_ref[...]
    h = jnp.maximum(h, 0.0)
    # relu(fc2)
    h = jnp.dot(h.astype(w2_ref.dtype), w2_ref[...],
                preferred_element_type=jnp.float32) + b2_ref[...]
    h = jnp.maximum(h, 0.0)
    # relu(output): one lane-dense matmul + store over the whole question axis.
    o = jnp.dot(h.astype(wo_ref.dtype), wo_ref[...],
                preferred_element_type=jnp.float32) + bo_ref[...]
    out_ref[...] = jnp.maximum(o, 0.0).astype(out_ref.dtype)


def _const_spec(shape, single_buffer):
    """BlockSpec for a grid-invariant (fully VMEM-resident) operand."""
    ndim = len(shape)
    index_map = lambda i: (0,) * ndim
    if single_buffer:
        # Block index never changes -> one buffer is enough (halves weight VMEM).
        return pl.BlockSpec(shape, index_map, pipeline_mode=pl.Buffered(1))
    return pl.BlockSpec(shape, index_map)


def _vmem_limit_bytes(prep, batch_tile, single_buffer):
    """Footprint-derived, generation-aware scoped-VMEM limit."""
    w01, b01, w1, b1, w2, b2, wo, bo = prep
    wbuf = 1 if single_buffer else 2
    nbytes = lambda a: int(a.size) * a.dtype.itemsize
    weights = wbuf * sum(nbytes(a) for a in (w01, b01, w1, b1, w2, b2, wo, bo))
    obs_dim, fused = w01.shape
    up = w1.shape[1]
    hid = w2.shape[1]
    nq = wo.shape[1]
    io = 2 * batch_tile * obs_dim * 4 + 2 * batch_tile * nq * 4   # double-buffered obs/out
    acts = 2 * batch_tile * (fused + up + hid) * 4                # intermediates headroom
    need = weights + io + acts + (8 << 20)
    try:
        phys = int(pltpu.get_tpu_info().vmem_capacity_bytes)
    except Exception:
        phys = 64 << 20   # assume the tightest generation (v7x per-TC VMEM)
    cap = (phys * 3) // 4                                         # never request all of it
    return int(max(min(need, cap), 32 << 20))


@functools.partial(jax.jit, static_argnames=("num_questions", "single_buffer_weights"))
def discrete_actor_forward(obs, prep, *, num_questions, single_buffer_weights=True):
    """Pallas forward. obs: [B, obs_dim] f32 -> [B, num_questions] f32."""
    w01, b01, w1, b1, w2, b2, wo, bo = prep
    B, obs_dim = obs.shape
    obs_pad_dim = w01.shape[0]
    nq_pad = wo.shape[1]

    # Contraction-dim alignment padding (zero rows in W01 make it a no-op
    # semantically; at the stand-in sizes obs_dim is already aligned).
    if obs_dim < obs_pad_dim:
        obs = jnp.pad(obs, ((0, 0), (0, obs_pad_dim - obs_dim)))

    grid = (pl.cdiv(B, BATCH_TILE),)   # ragged last tile handled by masked blocks
    sb = single_buffer_weights

    in_specs = [
        # obs tile: double-buffered (default), prefetched across batch steps.
        pl.BlockSpec((BATCH_TILE, obs_pad_dim), lambda i: (i, 0)),
        _const_spec(w01.shape, sb), _const_spec(b01.shape, sb),
        _const_spec(w1.shape, sb), _const_spec(b1.shape, sb),
        _const_spec(w2.shape, sb), _const_spec(b2.shape, sb),
        _const_spec(wo.shape, sb), _const_spec(bo.shape, sb),
    ]
    out_spec = pl.BlockSpec((BATCH_TILE, nq_pad), lambda i: (i, 0))

    out = pl.pallas_call(
        _discrete_actor_kernel,
        out_shape=jax.ShapeDtypeStruct((B, nq_pad), jnp.float32),
        grid_spec=pltpu.PrefetchScalarGridSpec(
            num_scalar_prefetch=0,
            grid=grid,
            in_specs=in_specs,
            out_specs=out_spec,
        ),
        compiler_params=pltpu.CompilerParams(
            # Single batch axis, parallel -> megacore sharding on v7x.
            dimension_semantics=("parallel",),
            vmem_limit_bytes=_vmem_limit_bytes(prep, BATCH_TILE, sb),
        ),
    )(obs, w01, b01, w1, b1, w2, b2, wo, bo)

    return out[:, :num_questions]


def prepare_params(params, weight_dtype=jnp.float32):
    """One-time repack of the 5 Linear layers into the kernel layout.

    - Builds the block-diagonal fused first-layer weight W01 and stacked bias.
    - Zero-pads every feature dim (obs contraction, fused-first-layer out,
      up-projection, hidden, num_questions) up to multiples of 128; padded
      columns stay exactly zero through the bias/ReLU/matmul chain.
    - Optionally casts weight matrices to bf16 (biases stay f32).
    At real sizes this is done once at load time, not per call.
    """
    (w_hid, b_hid, w_kc, b_kc, w1, b1, w2, b2, wo, bo) = params
    sh, hid = w_hid.shape
    kc_in = w_kc.shape[0]
    up = w1.shape[1]
    nq = wo.shape[1]

    obs_dim = sh + kc_in
    obs_pad = _round_up(obs_dim, LANE)
    fused_pad = _round_up(2 * hid, LANE)
    up_pad = _round_up(up, LANE)
    hid_pad = _round_up(hid, LANE)
    nq_pad = _round_up(nq, LANE)

    f32 = jnp.float32

    # Fused block-diagonal first layer: hidden_state_fc (+) kc_emb_fc.
    w01 = jnp.zeros((obs_pad, fused_pad), f32)
    w01 = w01.at[:sh, :hid].set(w_hid)
    w01 = w01.at[sh:sh + kc_in, hid:2 * hid].set(w_kc)
    b01 = jnp.zeros((1, fused_pad), f32)
    b01 = b01.at[:, :hid].set(b_hid)
    b01 = b01.at[:, hid:2 * hid].set(b_kc)

    w1p = jnp.zeros((fused_pad, up_pad), f32).at[:2 * hid, :up].set(w1)
    b1p = jnp.zeros((1, up_pad), f32).at[:, :up].set(b1)
    w2p = jnp.zeros((up_pad, hid_pad), f32).at[:up, :hid].set(w2)
    b2p = jnp.zeros((1, hid_pad), f32).at[:, :hid].set(b2)
    wop = jnp.zeros((hid_pad, nq_pad), f32).at[:hid, :nq].set(wo)
    bop = jnp.zeros((1, nq_pad), f32).at[:, :nq].set(bo)

    wd = weight_dtype
    return (w01.astype(wd), b01.astype(f32),
            w1p.astype(wd), b1p.astype(f32),
            w2p.astype(wd), b2p.astype(f32),
            wop.astype(wd), bop.astype(f32))


def init_params(key):
    """Deterministic synthetic params (PyTorch-Linear-style uniform init).

    Weights stored as [in_features, out_features]; biases as [1, out]."""
    def linear(k, fan_in, fan_out):
        kw, kb = jax.random.split(k)
        bound = 1.0 / jnp.sqrt(jnp.float32(fan_in))
        w = jax.random.uniform(kw, (fan_in, fan_out), jnp.float32, -bound, bound)
        b = jax.random.uniform(kb, (1, fan_out), jnp.float32, -bound, bound)
        return w, b

    ks = jax.random.split(key, 5)
    w_hid, b_hid = linear(ks[0], STUDENT_HIDDEN, HIDDEN)   # hidden_state_fc
    w_kc, b_kc = linear(ks[1], KC_EMB, HIDDEN)             # kc_emb_fc
    w1, b1 = linear(ks[2], 2 * HIDDEN, UP_PROJ)            # fc1
    w2, b2 = linear(ks[3], UP_PROJ, HIDDEN)                # fc2
    wo, bo = linear(ks[4], HIDDEN, NUM_QUESTIONS)          # output
    return (w_hid, b_hid, w_kc, b_kc, w1, b1, w2, b2, wo, bo)


def reference_forward(obs, params, compute_dtype=jnp.float32):
    """Pure-JAX reference of the PyTorch forward (split/linears/concat/...).

    compute_dtype mirrors the kernel's matmul-input precision policy so the
    bf16-weight path can be verified tightly."""
    (w_hid, b_hid, w_kc, b_kc, w1, b1, w2, b2, wo, bo) = params

    def dense(x, w, b):
        y = jnp.dot(x.astype(compute_dtype), w.astype(compute_dtype),
                    preferred_element_type=jnp.float32) + b
        return jax.nn.relu(y)

    sh = obs[:, :STUDENT_HIDDEN]
    kc = obs[:, STUDENT_HIDDEN:]
    h = dense(sh, w_hid, b_hid)
    k = dense(kc, w_kc, b_kc)
    x = jnp.concatenate([h, k], axis=1)
    x = dense(x, w1, b1)
    x = dense(x, w2, b2)
    return dense(x, wo, bo)


if __name__ == "__main__":
    key = jax.random.PRNGKey(0)
    k_obs, k_params = jax.random.split(key)

    B = 200  # deliberately not a multiple of BATCH_TILE: exercises the masked last tile
    obs = jax.random.normal(k_obs, (B, OBS_DIM), jnp.float32)
    params = init_params(k_params)

    # --- float32 weights: strict check against the PyTorch-semantics reference.
    prep32 = prepare_params(params, weight_dtype=jnp.float32)
    try:
        out = discrete_actor_forward(obs, prep32, num_questions=NUM_QUESTIONS,
                                     single_buffer_weights=True)
        out = jax.block_until_ready(out)
        single_buf = True
    except Exception:
        # pl.Buffered(1) single-buffering not supported by this jax build;
        # fall back to default double-buffered weights (semantics unchanged).
        out = discrete_actor_forward(obs, prep32, num_questions=NUM_QUESTIONS,
                                     single_buffer_weights=False)
        out = jax.block_until_ready(out)
        single_buf = False

    ref = reference_forward(obs, params)
    assert out.shape == (B, NUM_QUESTIONS)
    assert jnp.allclose(out, ref, atol=2e-4, rtol=2e-4), "f32 mismatch vs reference"

    # --- bfloat16 weights (half the weight VMEM/HBM traffic), f32 accumulation;
    #     checked against a precision-matched reference.
    prep16 = prepare_params(params, weight_dtype=jnp.bfloat16)
    out16 = discrete_actor_forward(obs, prep16, num_questions=NUM_QUESTIONS,
                                   single_buffer_weights=single_buf)
    out16 = jax.block_until_ready(out16)
    ref16 = reference_forward(obs, params, compute_dtype=jnp.bfloat16)
    assert jnp.allclose(out16, ref16, atol=1e-2, rtol=1e-2), "bf16 mismatch vs reference"

    # The module's forward returns (output, state); state passes through unchanged.
    # TODO(synk): torch.tensor()/.to(device) input coercion and the info={} arg have
    # no kernel equivalent; handled (trivially) in the Python wrapper instead.
    state = None
    _ = (out, state)

    print("KERNEL_OK")
</pallas_src>

<mosaic_0001>
module attributes {stable_mosaic.version = 11 : i64} {
  func.func @_discrete_actor_kernel(%arg0: i32, %arg1: memref<128x256xf32, #tpu.memory_space<vmem>>, %arg2: memref<256x256xf32, #tpu.memory_space<vmem>>, %arg3: memref<1x256xf32, #tpu.memory_space<vmem>>, %arg4: memref<256x256xf32, #tpu.memory_space<vmem>>, %arg5: memref<1x256xf32, #tpu.memory_space<vmem>>, %arg6: memref<256x128xf32, #tpu.memory_space<vmem>>, %arg7: memref<1x128xf32, #tpu.memory_space<vmem>>, %arg8: memref<128x512xf32, #tpu.memory_space<vmem>>, %arg9: memref<1x512xf32, #tpu.memory_space<vmem>>, %arg10: memref<128x512xf32, #tpu.memory_space<vmem>>) attributes {dimension_semantics = [#tpu.dimension_semantics<parallel>], iteration_bounds = array<i64: 2>, scalar_prefetch = 0 : i64, scratch_operands = 0 : i64, tpu.core_type = #tpu.core_type<tc>, window_params = [{transform_indices = @transform_0, window_bounds = array<i64: 128, 256>}, {pipeline_mode = #tpu.pipeline_mode<synchronous>, transform_indices = @transform_1, window_bounds = array<i64: 256, 256>}, {pipeline_mode = #tpu.pipeline_mode<synchronous>, transform_indices = @transform_2, window_bounds = array<i64: 1, 256>}, {pipeline_mode = #tpu.pipeline_mode<synchronous>, transform_indices = @transform_3, window_bounds = array<i64: 256, 256>}, {pipeline_mode = #tpu.pipeline_mode<synchronous>, transform_indices = @transform_4, window_bounds = array<i64: 1, 256>}, {pipeline_mode = #tpu.pipeline_mode<synchronous>, transform_indices = @transform_5, window_bounds = array<i64: 256, 128>}, {pipeline_mode = #tpu.pipeline_mode<synchronous>, transform_indices = @transform_6, window_bounds = array<i64: 1, 128>}, {pipeline_mode = #tpu.pipeline_mode<synchronous>, transform_indices = @transform_7, window_bounds = array<i64: 128, 512>}, {pipeline_mode = #tpu.pipeline_mode<synchronous>, transform_indices = @transform_8, window_bounds = array<i64: 1, 512>}, {transform_indices = @transform_9, window_bounds = array<i64: 128, 512>}]} {
    %c0 = arith.constant 0 : index
    %c0_0 = arith.constant 0 : index
    %0 = vector.load %arg1[%c0, %c0_0] : memref<128x256xf32, #tpu.memory_space<vmem>>, vector<128x256xf32>
    %c0_1 = arith.constant 0 : index
    %c0_2 = arith.constant 0 : index
    %1 = vector.load %arg2[%c0_1, %c0_2] : memref<256x256xf32, #tpu.memory_space<vmem>>, vector<256x256xf32>
    %cst = arith.constant dense<0.000000e+00> : vector<128x256xf32>
    %2 = tpu.matmul %0, %1, %cst {dimension_numbers = #tpu.dot_dimension_numbers<[1], [0], [0], [1], [0, 0, 1, 1], [], []>} : vector<128x256xf32>, vector<256x256xf32>, vector<128x256xf32> -> vector<128x256xf32>
    %c0_3 = arith.constant 0 : index
    %c0_4 = arith.constant 0 : index
    %3 = vector.load %arg3[%c0_3, %c0_4] : memref<1x256xf32, #tpu.memory_space<vmem>>, vector<1x256xf32>
    %4 = vector.broadcast %3 : vector<1x256xf32> to vector<128x256xf32>
    %5 = arith.addf %2, %4 : vector<128x256xf32>
    %cst_5 = arith.constant 0.000000e+00 : f32
    %6 = vector.broadcast %cst_5 : f32 to vector<128x256xf32>
    %7 = arith.maximumf %5, %6 : vector<128x256xf32>
    %c0_6 = arith.constant 0 : index
    %c0_7 = arith.constant 0 : index
    %8 = vector.load %arg4[%c0_6, %c0_7] : memref<256x256xf32, #tpu.memory_space<vmem>>, vector<256x256xf32>
    %cst_8 = arith.constant dense<0.000000e+00> : vector<128x256xf32>
    %9 = tpu.matmul %7, %8, %cst_8 {dimension_numbers = #tpu.dot_dimension_numbers<[1], [0], [0], [1], [0, 0, 1, 1], [], []>} : vector<128x256xf32>, vector<256x256xf32>, vector<128x256xf32> -> vector<128x256xf32>
    %c0_9 = arith.constant 0 : index
    %c0_10 = arith.constant 0 : index
    %10 = vector.load %arg5[%c0_9, %c0_10] : memref<1x256xf32, #tpu.memory_space<vmem>>, vector<1x256xf32>
    %11 = vector.broadcast %10 : vector<1x256xf32> to vector<128x256xf32>
    %12 = arith.addf %9, %11 : vector<128x256xf32>
    %cst_11 = arith.constant 0.000000e+00 : f32
    %13 = vector.broadcast %cst_11 : f32 to vector<128x256xf32>
    %14 = arith.maximumf %12, %13 : vector<128x256xf32>
    %c0_12 = arith.constant 0 : index
    %c0_13 = arith.constant 0 : index
    %15 = vector.load %arg6[%c0_12, %c0_13] : memref<256x128xf32, #tpu.memory_space<vmem>>, vector<256x128xf32>
    %cst_14 = arith.constant dense<0.000000e+00> : vector<128x128xf32>
    %16 = tpu.matmul %14, %15, %cst_14 {dimension_numbers = #tpu.dot_dimension_numbers<[1], [0], [0], [1], [0, 0, 1, 1], [], []>} : vector<128x256xf32>, vector<256x128xf32>, vector<128x128xf32> -> vector<128x128xf32>
    %c0_15 = arith.constant 0 : index
    %c0_16 = arith.constant 0 : index
    %17 = vector.load %arg7[%c0_15, %c0_16] : memref<1x128xf32, #tpu.memory_space<vmem>>, vector<1x128xf32>
    %18 = vector.broadcast %17 : vector<1x128xf32> to vector<128x128xf32>
    %19 = arith.addf %16, %18 : vector<128x128xf32>
    %cst_17 = arith.constant 0.000000e+00 : f32
    %20 = vector.broadcast %cst_17 : f32 to vector<128x128xf32>
    %21 = arith.maximumf %19, %20 : vector<128x128xf32>
    %c0_18 = arith.constant 0 : index
    %c0_19 = arith.constant 0 : index
    %22 = vector.load %arg8[%c0_18, %c0_19] : memref<128x512xf32, #tpu.memory_space<vmem>>, vector<128x512xf32>
    %cst_20 = arith.constant dense<0.000000e+00> : vector<128x512xf32>
    %23 = tpu.matmul %21, %22, %cst_20 {dimension_numbers = #tpu.dot_dimension_numbers<[1], [0], [0], [1], [0, 0, 1, 1], [], []>} : vector<128x128xf32>, vector<128x512xf32>, vector<128x512xf32> -> vector<128x512xf32>
    %c0_21 = arith.constant 0 : index
    %c0_22 = arith.constant 0 : index
    %24 = vector.load %arg9[%c0_21, %c0_22] : memref<1x512xf32, #tpu.memory_space<vmem>>, vector<1x512xf32>
    %25 = vector.broadcast %24 : vector<1x512xf32> to vector<128x512xf32>
    %26 = arith.addf %23, %25 : vector<128x512xf32>
    %cst_23 = arith.constant 0.000000e+00 : f32
    %27 = vector.broadcast %cst_23 : f32 to vector<128x512xf32>
    %28 = arith.maximumf %26, %27 : vector<128x512xf32>
    %c0_24 = arith.constant 0 : index
    %c0_25 = arith.constant 0 : index
    %29 = vector.load %arg10[%c0_24, %c0_25] : memref<128x512xf32, #tpu.memory_space<vmem>>, vector<128x512xf32>
    tpu.vector_store %arg10[%c0_24, %c0_25], %28 {strides = array<i32>} : memref<128x512xf32, #tpu.memory_space<vmem>>, vector<128x512xf32>,
    return
  }
  func.func @transform_0(%arg0: i32) -> (i32, i32) {
    %c0_i32 = arith.constant 0 : i32
    %c0_i32_0 = arith.constant 0 : i32
    return %arg0, %c0_i32 : i32, i32
  }
  func.func @transform_1(%arg0: i32) -> (i32, i32) {
    %c0_i32 = arith.constant 0 : i32
    %c0_i32_0 = arith.constant 0 : i32
    %c0_i32_1 = arith.constant 0 : i32
    return %c0_i32, %c0_i32_0 : i32, i32
  }
  func.func @transform_2(%arg0: i32) -> (i32, i32) {
    %c0_i32 = arith.constant 0 : i32
    %c0_i32_0 = arith.constant 0 : i32
    %c0_i32_1 = arith.constant 0 : i32
    return %c0_i32, %c0_i32_0 : i32, i32
  }
  func.func @transform_3(%arg0: i32) -> (i32, i32) {
    %c0_i32 = arith.constant 0 : i32
    %c0_i32_0 = arith.constant 0 : i32
    %c0_i32_1 = arith.constant 0 : i32
    return %c0_i32, %c0_i32_0 : i32, i32
  }
  func.func @transform_4(%arg0: i32) -> (i32, i32) {
    %c0_i32 = arith.constant 0 : i32
    %c0_i32_0 = arith.constant 0 : i32
    %c0_i32_1 = arith.constant 0 : i32
    return %c0_i32, %c0_i32_0 : i32, i32
  }
  func.func @transform_5(%arg0: i32) -> (i32, i32) {
    %c0_i32 = arith.constant 0 : i32
    %c0_i32_0 = arith.constant 0 : i32
    %c0_i32_1 = arith.constant 0 : i32
    return %c0_i32, %c0_i32_0 : i32, i32
  }
  func.func @transform_6(%arg0: i32) -> (i32, i32) {
    %c0_i32 = arith.constant 0 : i32
    %c0_i32_0 = arith.constant 0 : i32
    %c0_i32_1 = arith.constant 0 : i32
    return %c0_i32, %c0_i32_0 : i32, i32
  }
  func.func @transform_7(%arg0: i32) -> (i32, i32) {
    %c0_i32 = arith.constant 0 : i32
    %c0_i32_0 = arith.constant 0 : i32
    %c0_i32_1 = arith.constant 0 : i32
    return %c0_i32, %c0_i32_0 : i32, i32
  }
  func.func @transform_8(%arg0: i32) -> (i32, i32) {
    %c0_i32 = arith.constant 0 : i32
    %c0_i32_0 = arith.constant 0 : i32
    %c0_i32_1 = arith.constant 0 : i32
    return %c0_i32, %c0_i32_0 : i32, i32
  }
  func.func @transform_9(%arg0: i32) -> (i32, i32) {
    %c0_i32 = arith.constant 0 : i32
    %c0_i32_0 = arith.constant 0 : i32
    return %arg0, %c0_i32 : i32, i32
  }
}

module attributes {stable_mosaic.version = 11 : i64} {
  func.func @_discrete_actor_kernel(%arg0: i32, %arg1: memref<128x256xf32, #tpu.memory_space<vmem>>, %arg2: memref<256x256xf32, #tpu.memory_space<vmem>>, %arg3: memref<1x256xf32, #tpu.memory_space<vmem>>, %arg4: memref<256x256xf32, #tpu.memory_space<vmem>>, %arg5: memref<1x256xf32, #tpu.memory_space<vmem>>, %arg6: memref<256x128xf32, #tpu.memory_space<vmem>>, %arg7: memref<1x128xf32, #tpu.memory_space<vmem>>, %arg8: memref<128x512xf32, #tpu.memory_space<vmem>>, %arg9: memref<1x512xf32, #tpu.memory_space<vmem>>, %arg10: memref<128x512xf32, #tpu.memory_space<vmem>>) attributes {dimension_semantics = [#tpu.dimension_semantics<parallel>], iteration_bounds = array<i64: 2>, scalar_prefetch = 0 : i64, scratch_operands = 0 : i64, tpu.core_type = #tpu.core_type<tc>, window_params = [{transform_indices = @transform_0, window_bounds = array<i64: 128, 256>}, {pipeline_mode = #tpu.pipeline_mode<synchronous>, transform_indices = @transform_1, window_bounds = array<i64: 256, 256>}, {pipeline_mode = #tpu.pipeline_mode<synchronous>, transform_indices = @transform_2, window_bounds = array<i64: 1, 256>}, {pipeline_mode = #tpu.pipeline_mode<synchronous>, transform_indices = @transform_3, window_bounds = array<i64: 256, 256>}, {pipeline_mode = #tpu.pipeline_mode<synchronous>, transform_indices = @transform_4, window_bounds = array<i64: 1, 256>}, {pipeline_mode = #tpu.pipeline_mode<synchronous>, transform_indices = @transform_5, window_bounds = array<i64: 256, 128>}, {pipeline_mode = #tpu.pipeline_mode<synchronous>, transform_indices = @transform_6, window_bounds = array<i64: 1, 128>}, {pipeline_mode = #tpu.pipeline_mode<synchronous>, transform_indices = @transform_7, window_bounds = array<i64: 128, 512>}, {pipeline_mode = #tpu.pipeline_mode<synchronous>, transform_indices = @transform_8, window_bounds = array<i64: 1, 512>}, {transform_indices = @transform_9, window_bounds = array<i64: 128, 512>}]} {
    %c0 = arith.constant 0 : index
    %c0_0 = arith.constant 0 : index
    %0 = vector.load %arg1[%c0, %c0_0] : memref<128x256xf32, #tpu.memory_space<vmem>>, vector<128x256xf32>
    %c0_1 = arith.constant 0 : index
    %c0_2 = arith.constant 0 : index
    %1 = vector.load %arg2[%c0_1, %c0_2] : memref<256x256xf32, #tpu.memory_space<vmem>>, vector<256x256xf32>
    %cst = arith.constant dense<0.000000e+00> : vector<128x256xf32>
    %2 = tpu.matmul %0, %1, %cst {dimension_numbers = #tpu.dot_dimension_numbers<[1], [0], [0], [1], [0, 0, 1, 1], [], []>} : vector<128x256xf32>, vector<256x256xf32>, vector<128x256xf32> -> vector<128x256xf32>
    %c0_3 = arith.constant 0 : index
    %c0_4 = arith.constant 0 : index
    %3 = vector.load %arg3[%c0_3, %c0_4] : memref<1x256xf32, #tpu.memory_space<vmem>>, vector<1x256xf32>
    %4 = vector.broadcast %3 : vector<1x256xf32> to vector<128x256xf32>
    %5 = arith.addf %2, %4 : vector<128x256xf32>
    %cst_5 = arith.constant 0.000000e+00 : f32
    %6 = vector.broadcast %cst_5 : f32 to vector<128x256xf32>
    %7 = arith.maximumf %5, %6 : vector<128x256xf32>
    %c0_6 = arith.constant 0 : index
    %c0_7 = arith.constant 0 : index
    %8 = vector.load %arg4[%c0_6, %c0_7] : memref<256x256xf32, #tpu.memory_space<vmem>>, vector<256x256xf32>
    %cst_8 = arith.constant dense<0.000000e+00> : vector<128x256xf32>
    %9 = tpu.matmul %7, %8, %cst_8 {dimension_numbers = #tpu.dot_dimension_numbers<[1], [0], [0], [1], [0, 0, 1, 1], [], []>} : vector<128x256xf32>, vector<256x256xf32>, vector<128x256xf32> -> vector<128x256xf32>
    %c0_9 = arith.constant 0 : index
    %c0_10 = arith.constant 0 : index
    %10 = vector.load %arg5[%c0_9, %c0_10] : memref<1x256xf32, #tpu.memory_space<vmem>>, vector<1x256xf32>
    %11 = vector.broadcast %10 : vector<1x256xf32> to vector<128x256xf32>
    %12 = arith.addf %9, %11 : vector<128x256xf32>
    %cst_11 = arith.constant 0.000000e+00 : f32
    %13 = vector.broadcast %cst_11 : f32 to vector<128x256xf32>
    %14 = arith.maximumf %12, %13 : vector<128x256xf32>
    %c0_12 = arith.constant 0 : index
    %c0_13 = arith.constant 0 : index
    %15 = vector.load %arg6[%c0_12, %c0_13] : memref<256x128xf32, #tpu.memory_space<vmem>>, vector<256x128xf32>
    %cst_14 = arith.constant dense<0.000000e+00> : vector<128x128xf32>
    %16 = tpu.matmul %14, %15, %cst_14 {dimension_numbers = #tpu.dot_dimension_numbers<[1], [0], [0], [1], [0, 0, 1, 1], [], []>} : vector<128x256xf32>, vector<256x128xf32>, vector<128x128xf32> -> vector<128x128xf32>
    %c0_15 = arith.constant 0 : index
    %c0_16 = arith.constant 0 : index
    %17 = vector.load %arg7[%c0_15, %c0_16] : memref<1x128xf32, #tpu.memory_space<vmem>>, vector<1x128xf32>
    %18 = vector.broadcast %17 : vector<1x128xf32> to vector<128x128xf32>
    %19 = arith.addf %16, %18 : vector<128x128xf32>
    %cst_17 = arith.constant 0.000000e+00 : f32
    %20 = vector.broadcast %cst_17 : f32 to vector<128x128xf32>
    %21 = arith.maximumf %19, %20 : vector<128x128xf32>
    %c0_18 = arith.constant 0 : index
    %c0_19 = arith.constant 0 : index
    %22 = vector.load %arg8[%c0_18, %c0_19] : memref<128x512xf32, #tpu.memory_space<vmem>>, vector<128x512xf32>
    %cst_20 = arith.constant dense<0.000000e+00> : vector<128x512xf32>
    %23 = tpu.matmul %21, %22, %cst_20 {dimension_numbers = #tpu.dot_dimension_numbers<[1], [0], [0], [1], [0, 0, 1, 1], [], []>} : vector<128x128xf32>, vector<128x512xf32>, vector<128x512xf32> -> vector<128x512xf32>
    %c0_21 = arith.constant 0 : index
    %c0_22 = arith.constant 0 : index
    %24 = vector.load %arg9[%c0_21, %c0_22] : memref<1x512xf32, #tpu.memory_space<vmem>>, vector<1x512xf32>
    %25 = vector.broadcast %24 : vector<1x512xf32> to vector<128x512xf32>
    %26 = arith.addf %23, %25 : vector<128x512xf32>
    %cst_23 = arith.constant 0.000000e+00 : f32
    %27 = vector.broadcast %cst_23 : f32 to vector<128x512xf32>
    %28 = arith.maximumf %26, %27 : vector<128x512xf32>
    %c0_24 = arith.constant 0 : index
    %c0_25 = arith.constant 0 : index
    %29 = vector.load %arg10[%c0_24, %c0_25] : memref<128x512xf32, #tpu.memory_space<vmem>>, vector<128x512xf32>
    tpu.vector_store %arg10[%c0_24, %c0_25], %28 {strides = array<i32>} : memref<128x512xf32, #tpu.memory_space<vmem>>, vector<128x512xf32>,
    return
  }
  func.func @transform_0(%arg0: i32) -> (i32, i32) {
    %c0_i32 = arith.constant 0 : i32
    %c0_i32_0 = arith.constant 0 : i32
    return %arg0, %c0_i32 : i32, i32
  }
  func.func @transform_1(%arg0: i32) -> (i32, i32) {
    %c0_i32 = arith.constant 0 : i32
    %c0_i32_0 = arith.constant 0 : i32
    %c0_i32_1 = arith.constant 0 : i32
    return %c0_i32, %c0_i32_0 : i32, i32
  }
  func.func @transform_2(%arg0: i32) -> (i32, i32) {
    %c0_i32 = arith.constant 0 : i32
    %c0_i32_0 = arith.constant 0 : i32
    %c0_i32_1 = arith.constant 0 : i32
    return %c0_i32, %c0_i32_0 : i32, i32
  }
  func.func @transform_3(%arg0: i32) -> (i32, i32) {
    %c0_i32 = arith.constant 0 : i32
    %c0_i32_0 = arith.constant 0 : i32
    %c0_i32_1 = arith.constant 0 : i32
    return %c0_i32, %c0_i32_0 : i32, i32
  }
  func.func @transform_4(%arg0: i32) -> (i32, i32) {
    %c0_i32 = arith.constant 0 : i32
    %c0_i32_0 = arith.constant 0 : i32
    %c0_i32_1 = arith.constant 0 : i32
    return %c0_i32, %c0_i32_0 : i32, i32
  }
  func.func @transform_5(%arg0: i32) -> (i32, i32) {
    %c0_i32 = arith.constant 0 : i32
    %c0_i32_0 = arith.constant 0 : i32
    %c0_i32_1 = arith.constant 0 : i32
    return %c0_i32, %c0_i32_0 : i32, i32
  }
  func.func @transform_6(%arg0: i32) -> (i32, i32) {
    %c0_i32 = arith.constant 0 : i32
    %c0_i32_0 = arith.constant 0 : i32
    %c0_i32_1 = arith.constant 0 : i32
    return %c0_i32, %c0_i32_0 : i32, i32
  }
  func.func @transform_7(%arg0: i32) -> (i32, i32) {
    %c0_i32 = arith.constant 0 : i32
    %c0_i32_0 = arith.constant 0 : i32
    %c0_i32_1 = arith.constant 0 : i32
    return %c0_i32, %c0_i32_0 : i32, i32
  }
  func.func @transform_8(%arg0: i32) -> (i32, i32) {
    %c0_i32 = arith.constant 0 : i32
    %c0_i32_0 = arith.constant 0 : i32
    %c0_i32_1 = arith.constant 0 : i32
    return %c0_i32, %c0_i32_0 : i32, i32
  }
  func.func @transform_9(%arg0: i32) -> (i32, i32) {
    %c0_i32 = arith.constant 0 : i32
    %c0_i32_0 = arith.constant 0 : i32
    return %arg0, %c0_i32 : i32, i32
  }
}

</mosaic_0001>

<bundles_post_ra>
// kernel: discrete_actor_forward.1
= control target key start
LH: loop header
LB: loop body
LE: loop exit
PB: predicated region body
PF: predicated region fallthrough
CT: control target
= control target key end

     0   :  { %s3320_s0 = inlined_call_operand.hbm [shape: f32[200,256], index: 0, kind: input, shape index: {}]   ;;  %s3321_s1 = inlined_call_operand.hbm [shape: f32[256,256], index: 1, kind: input, shape index: {}]   ;;  %s3322_s2 = inlined_call_operand.hbm [shape: f32[1,256], index: 2, kind: input, shape index: {}]   ;;  %s3323_s3 = inlined_call_operand.hbm [shape: f32[256,256], index: 3, kind: input, shape index: {}]   ;;  %s3324_s4 = inlined_call_operand.vmem [shape: f32[1,256], index: 4, kind: input, shape index: {}]   ;;  %s3325_s5 = inlined_call_operand.hbm [shape: f32[256,128], index: 5, kind: input, shape index: {}]   ;;  %s3326_s6 = inlined_call_operand.vmem [shape: f32[1,128], index: 6, kind: input, shape index: {}]   ;;  %s3327_s7 = inlined_call_operand.hbm [shape: f32[128,512], index: 7, kind: input, shape index: {}]   ;;  %s3328_s8 = inlined_call_operand.vmem [shape: f32[1,512], index: 8, kind: input, shape index: {}]   ;;  %s3329_s9 = inlined_call_operand.hbm [shape: f32[200,512], index: 9, kind: output, shape index: {}]  }
   0x1   :  { %3337 = sst [smem:[#allocation23_spill]] %s3321_s1 }
   0x2   :  { %3338 = sst [smem:[#allocation24_spill]] %s3322_s2 }
   0x3   :  { %3339 = sst [smem:[#allocation25_spill]] %s3323_s3 }
   0x4   :  { %3340 = sst [smem:[#allocation26_spill]] %s3329_s9 }
   0x5   :  { %14 = vsyncpa [#allocation3], 0 }
   0x6   :  { %16 = vsyncpa [#allocation3 + $0x1], 0 }
   0x7   :  { %17 = vsyncpa [#allocation6], 0 }
   0x8   :  { %18 = vsyncpa [#allocation9], 0 }
   0x9   :  { %19 = vsyncpa [#allocation12], 0 }
   0xa   :  { %20 = vsyncpa [#allocation4], 0 }
   0xb   :  { %22 = vsyncpa [#allocation4 + $0x1], 0  ;;  %s2523_s30 = smov 0   ;;  %s2525_s10 = smov 0  }
   0xc   :  { %s2527_s11 = smov 0   ;;  %s2529_s12 = smov 0  }
   0xd LB: > { %3341 = sst [smem:[#allocation19_spill]] %s2442_s30  ;;  %s2544_s13 = sadd.s32 4294967295, %s2454_s12   ;;  %s2454_s12 = sphi %s2529_s12, %s3367_s12   ;;  %s2450_s11 = sphi %s2527_s11, %s3371_s11   ;;  %s2446_s10 = sphi %s2525_s10, %s3370_s10   ;;  %s2442_s30 = sphi %s2523_s30, %s3369_s30  }
   0xe   : > { %s2001_s14 = sadd.s32 4294967294, %s2454_s12   ;;  %s2548_s15 = sadd.s32 1, %s2454_s12  }
   0xf   : > { %3342 = sst [smem:[#allocation20_spill]] %s2548_s15  ;;  %s35_s16 = sadd.s32 1, %s2450_s11 }
  0x10   : > { %s32_s17 = ssub.s32 %s2454_s12, %s2548_s15  ;;  %p42_p0 = scmp.ne.s32.totalorder %s2450_s11, %s2446_s10 }
  0x11   : > { %p33_p1 = scmp.eq.s32.totalorder %s32_s17, 0  ;;  %p43_p2 = scmp.eq.s32.totalorder %s2454_s12, 0 }
  0x12   : > { %p48_p3 = scmp.ne.s32.totalorder %s2446_s10, %s2442_s30  ;;  %p3336_p4 = scmp.eq.s32.totalorder %s2544_s13, 0 }
  0x13   : > { %s2560_s18 = scalar_select %p33_p1, %s2450_s11, %s35_s16  }
  0x14   : > { %p2562_p5 = por %p43_p2, %p42_p0  ;;  %p2568_p6 = por %p3336_p4, %p48_p3 }
  0x15   : > { %3343 = sst [smem:[#allocation21_spill]] %s2560_s18  ;;  %p240_p7 = scmp.eq.s32.totalorder %s2544_s13, 1 }
  0x16   : > { %p246_p8 = scmp.eq.s32.totalorder %s2001_s14, 1  ;;  %p2002_p9 = scmp.ge.s32.totalorder %s2454_s12, 1 }
  0x17   : > { %p253_p10 = scmp.lt.s32.totalorder %s2454_s12, 3  ;;  %p2575_p11 = por %p240_p7, %p42_p0 }
  0x18   : > { %p2579_p12 = por %p246_p8, %p48_p3  ;;  %s3350_s1 = sld [smem:[#allocation23_spill]] }
  0x19   : > { %p2583_p13 = pnand %p2002_p9, %p253_p10  ;;  %s2456_s27 = smov [#allocation5]  }
  0x1a   : > { %s3347_s22 = scalar_select %p2579_p12, 1, 0 }
  0x1b   : > { %p2097_p1 = pneg %p2583_p13  ;;  %s266_s28 = sshll.u32 %s2456_s27, 4  ;;  %s267_s28 = int_to_ptr.vmem [resolvable:$true] %s266_s28 }
  0x1c   : > { %3348 = sst [smem:[#allocation22_spill]] %s3347_s22  ;;  %s2457_s24 = smov 256  }
  0x1d   : > { %p2594_p0 = pnand %p2097_p1, %p3336_p4  ;;  %s3352_s3 = sld [smem:[#allocation25_spill]] }
  0x1e   : > { %s264_s26 = sshll.u32 %s3350_s1, 4  ;;  %s2458_s25 = smov 16   ;;  %s265_s26 = int_to_ptr.hbm [resolvable:$true] %s264_s26 }
  0x1f   : > { %2100 = dma.hbm_to_vmem [thread:$0]  (!%p2594_p0), %s265_s26, 8192, %s267_s28, [#allocation6], %s2457_s24, %s2457_s24, %s2458_s25  }
  0x20   : > { %s3353_s2 = sld [smem:[#allocation24_spill]]  ;;  %s2459_s15 = smov [#allocation8]  }
  0x21   : > { %s292_s22 = sshll.u32 %s2459_s15, 4  ;;  %s2460_s14 = smov [#allocation7]   ;;  %s293_s22 = int_to_ptr.vmem [resolvable:$true] %s292_s22 }
  0x22   : > { %s281_s16 = sshll.u32 %s2460_s14, 4  ;;  %s307_s9 = sshll.u32 %s3325_s5, 4  ;;  %s282_s16 = int_to_ptr.vmem [resolvable:$true] %s281_s16  ;;  %s308_s9 = int_to_ptr.hbm [resolvable:$true] %s307_s9 }
  0x23   : > { %s290_s17 = sshll.u32 %s3352_s3, 4  ;;  %s2461_s1 = smov [#allocation10]   ;;  %s291_s17 = int_to_ptr.hbm [resolvable:$true] %s290_s17 }
  0x24   : > { %2106 = dma.hbm_to_vmem [thread:$0]  (!%p2594_p0), %s291_s17, 8192, %s293_s22, [#allocation9], %s2457_s24, %s2457_s24, %s2458_s25  }
  0x25   : > { %s309_s26 = sshll.u32 %s2461_s1, 4  ;;  %s324_s27 = sshll.u32 %s3327_s7, 4  ;;  %s310_s26 = int_to_ptr.vmem [resolvable:$true] %s309_s26  ;;  %s325_s27 = int_to_ptr.hbm [resolvable:$true] %s324_s27 }
  0x26   : > { %s279_s18 = sshll.u32 %s3353_s2, 4  ;;  %s2462_s2 = smov 128   ;;  %s280_s18 = int_to_ptr.hbm [resolvable:$true] %s279_s18 }
  0x27   : > { %2103 = dma.hbm_to_vmem [thread:$0]  (!%p2594_p0), %s280_s18, 32, %s282_s16, [#allocation6]  }
  0x28   : > { %s2463_s22 = smov 8   ;;  %s2464_s17 = smov [#allocation11]  }
  0x29   : > { %2109 = dma.hbm_to_vmem [thread:$0]  (!%p2594_p0), %s308_s9, 4096, %s310_s26, [#allocation9], %s2462_s2, %s2462_s2, %s2463_s22  }
  0x2a   : > { %s326_s3 = sshll.u32 %s2464_s17, 4  ;;  %s2465_s30 = smov 512   ;;  %s327_s3 = int_to_ptr.vmem [resolvable:$true] %s326_s3 }
  0x2b   : > { %s2466_s24 = smov 32   ;;  %p3335_p2 = scmp.ge.s32.totalorder %s2454_s12, 2 }
  0x2c   : > { %2112 = dma.hbm_to_vmem [thread:$0]  (!%p2594_p0), %s325_s27, 8192, %s327_s3, [#allocation12], %s2465_s30, %s2465_s30, %s2466_s24  }
  0x2d   : > { %339 = sbr.rel (%p3335_p2) target bundleno = 86 (0x56), region = 48 }
  0x32   : > { %342 = sbr.rel (!%p2562_p5) target bundleno = 86 (0x56), region = 52  ;;  %s343_s18 = sand.u32 (%p2562_p5), 1, %s2450_s11  }
  0x33   : > { %s2010_s2 = sshll.u32 (%p2562_p5), %s2454_s12, 4  ;;  %s2009_s9 = sshll.u32 (%p2562_p5), %s343_s18, 8 }
  0x34   : > { %s349_s25 = ssub.s32 (%p2562_p5), 25, %s2010_s2  ;;  %s2630_s1 = scalar_lea.sflag (%p2562_p5), [#allocation3], %s343_s18 }
  0x35   : > { %p350_p3 = scmp.lt.s32.totalorder (%p2562_p5), %s349_s25, 16  ;;  %s347_s26 = scalar_lea.vmem (%p2562_p5), [#allocation2], %s2009_s9 }
  0x37   : > { %s3373_s25 = smov (!%p350_p3, %s349_s25), 16 }
  0x38   : > { %s2037_s29 = sshll.u32 %s3373_s25, 4 }
  0x39   : > { %s354_s14 = ssub.s32 256, %s2037_s29 }
  0x3a   : > { %s355_s16 = sshll.u32 %s354_s14, 4 }
  0x3b   : > { %356 = vsyncadd %s2630_s1, %s355_s16  ;;  %p2633_p5 = scmp.ne.s32.totalorder %s2037_s29, 0  ;;  %s2039_s15 = sshll.u32 %s2454_s12, 8 }
  0x3c   : > { %s360_s22 = scalar_lea.hbm %s3320_s0, %s2039_s15  ;;  %s2641_s17 = sshll.u32 %s347_s26, 4  ;;  %s365_s17 = int_to_ptr.vmem [resolvable:$true] %s2641_s17 }
  0x3d   : > { %s362_s3 = sshll.u32 %s360_s22, 4  ;;  %s2017_s30 = sshll.u32 %s3373_s25, 8  ;;  %s2644_s3 = int_to_ptr.hbm [resolvable:$true] %s362_s3 }
  0x3e   : > { %s2326_s24 = sshra.s32 %s2644_s3, 4  ;;  %s2328_s18 = sshrl.u32 %s2017_s30, 4  ;;  %s2327_s24 = int_to_ptr.hbm [resolvable:$true] %s2326_s24 }
  0x3f   : > { %s2333_s2 = scalar_lea.hbm %s2327_s24, %s2328_s18  ;;  %s2337_s14 = scalar_lea.hbm %s3320_s0, 400 }
  0x40   : > { %p2334_p7 = scmp.ne.s32.totalorder %s2327_s24, %s2333_s2  ;;  %p2338_p10 = scmp.lt.s32.totalorder %s2327_s24, %s3320_s0 }
  0x41   : > { %p2339_p1 = scmp.lt.s32.totalorder %s2337_s14, %s2333_s2 }
  0x42   : > { %p2335_p8 = pnand %p2334_p7, %p2633_p5 }
  0x43   : > { %p2340_p0 = por %p2339_p1, %p2338_p10 }
  0x44   : > { %p2336_p9 = pneg %p2335_p8 }
  0x46   : > { %p2341_p3 = pnand %p2340_p0, %p2336_p9 }
  0x48   : > { %2344 = shalt.err (!%p2341_p3)
}
  0x49   : > { %s2345_s15 = sshra.s32 %s365_s17, 4  ;;  %s2467_s27 = smov [#allocation2]   ;;  %s2346_s15 = int_to_ptr.vmem [resolvable:$true] %s2345_s15 }
  0x4a   : > { %s2352_s28 = scalar_lea.vmem %s2346_s15, %s2328_s18  ;;  %s2356_s22 = scalar_lea.vmem %s2467_s27, 512 }
  0x4b   : > { %p2353_p7 = scmp.ne.s32.totalorder %s2346_s15, %s2352_s28  ;;  %p2358_p4 = scmp.lt.s32.totalorder %s2356_s22, %s2352_s28 }
  0x4d   : > { %p2354_p8 = pnand %p2353_p7, %p2633_p5 }
  0x4f   : > { %p2355_p2 = pneg %p2354_p8 }
  0x51   : > { %p2360_p12 = pnand %p2358_p4, %p2355_p2 }
  0x53   : > { %2363 = shalt.err (!%p2360_p12)
}
  0x54   : > { %s2468_s24 = smov 256   ;;  %s2469_s2 = smov 16  }
  0x55   : > { %370 = dma.hbm_to_vmem [thread:$0]  (%p2633_p5), %s2644_s3, %s2017_s30, %s365_s17, %s2630_s1, %s2468_s24, %s2468_s24, %s2469_s2  }
  0x56 PF: > { %376 = sbr.rel (%p2583_p13) target bundleno = 892 (0x37c), region = 56  ;;  %s2673_s18 = sand.u32 (!%p2583_p13), 1, %s2446_s10  }
  0x57   : > { %s2019_s9 = sshll.u32 (!%p2583_p13), %s2673_s18, 8  ;;  %s379_s29 = scalar_lea.sflag (!%p2583_p13), [#allocation3], %s2673_s18 }
  0x58   : > { %s2677_s14 = scalar_lea.vmem (!%p2583_p13), [#allocation2], %s2019_s9 }
  0x5b   : > { %2421 = dma.done.wait (%p2568_p6), %s379_s29, 4096  }
  0x5c   : > { %2423 = vsyncadd (%p2568_p6), %s379_s29, 4294963200  ;;  %p3355_p4 = scmp.eq.s32.totalorder %s2544_s13, 0 }
  0x5e   : > { %2425 = dma.done.wait (%p3355_p4), [#allocation6], 8224   ;;  %p3356_p12 = pmov %p3355_p4 }
  0x5f   : > { %p3357_p13 = pmov %p3355_p4 }
  0x60   : > { %2427 = vsyncadd (%p3356_p12), [#allocation6], 4294959072 }
  0x61   : > { %2429 = dma.done.wait (%p3357_p13), [#allocation9], 12288   ;;  %p3358_p2 = pmov %p3355_p4 }
  0x63   : > { %2431 = vsyncadd (%p3358_p2), [#allocation9], 4294955008  ;;  %p3359_p5 = pmov %p3358_p2 }
  0x64   : > { %p3360_p9 = pmov %p3358_p2 }
  0x65   : > { %2433 = dma.done.wait (%p3359_p5), [#allocation12], 8192  }
  0x66   : > { %2435 = vsyncadd (%p3360_p9), [#allocation12], 4294959104  ;;  %v517_v0 = vld [vmem:[#allocation5 + $0xf0] sm:$0xff]  ;;  %v515_v1 = vld [vmem:[#allocation5 + $0xe0] sm:$0xff]  ;;  %s2025_s3 = sshll.u32 %s2673_s18, 9  ;;  %s1856_s16 = scalar_lea.sflag [#allocation4], %s2673_s18 }
  0x67   : > { %v549_v2 = vld [vmem:[#allocation5 + $0x1f0] sm:$0xff]  ;;  %557 = vmatpush.msra.mxu0 %v517_v0  ;;  %2043 = vmatpush.msra.mxu2 %v517_v0  ;;  %v547_v3 = vld [vmem:[#allocation5 + $0x1e0] sm:$0xff]  ;;  %v518_v33 = vld [vmem:[#allocation5 + $0xf8] sm:$0xff]  ;;  %s3129_s30 = scalar_lea.vmem [#allocation13], %s2025_s3  ;;  %s2027_s26 = sshll.u32 (%p2575_p11), %s2544_s13, 4 }
  0x68   : > { %622 = vmatpush.msra.mxu1 %v549_v2  ;;  %2059 = vmatpush.msra.mxu3 %v549_v2  ;;  %v513_v4 = vld [vmem:[#allocation5 + $0xd0] sm:$0xff]  ;;  %v511_v6 = vld [vmem:[#allocation5 + $0xc0] sm:$0xff]  ;;  %v2702_v35 = vld [vmem:[%s2677_s14 + $0x8] sm:$0xff]  ;;  %s1864_s15 = ssub.s32 (%p2575_p11), 25, %s2027_s26 }
  0x69   : > { %558 = vmatpush.msra.mxu0 %v515_v1  ;;  %2044 = vmatpush.msra.mxu2 %v515_v1  ;;  %v545_v5 = vld [vmem:[#allocation5 + $0x1d0] sm:$0xff]  ;;  %v543_v7 = vld [vmem:[#allocation5 + $0x1c0] sm:$0xff]  ;;  %v2707_v36 = vld [vmem:[%s2677_s14 + $0x88] sm:$0xff]  ;;  %p1865_p6 = scmp.lt.s32.totalorder (%p2575_p11), %s1864_s15, 16 }
  0x6a   : > { %623 = vmatpush.msra.mxu1 %v547_v3  ;;  %2060 = vmatpush.msra.mxu3 %v547_v3  ;;  %v509_v8 = vld [vmem:[#allocation5 + $0xb0] sm:$0xff]  ;;  %v507_v10 = vld [vmem:[#allocation5 + $0xa0] sm:$0xff]  ;;  %v516_v37 = vld [vmem:[#allocation5 + $0xe8] sm:$0xff] }
  0x6b   : > { %559 = vmatpush.msra.mxu0 %v513_v4  ;;  %2045 = vmatpush.msra.mxu2 %v513_v4  ;;  %v541_v9 = vld [vmem:[#allocation5 + $0x1b0] sm:$0xff]  ;;  %v539_v11 = vld [vmem:[#allocation5 + $0x1a0] sm:$0xff]  ;;  %v550_v38 = vld [vmem:[#allocation5 + $0x1f8] sm:$0xff] }
  0x6c   : > { %624 = vmatpush.msra.mxu1 %v545_v5  ;;  %2061 = vmatpush.msra.mxu3 %v545_v5  ;;  %v505_v12 = vld [vmem:[#allocation5 + $0x90] sm:$0xff]  ;;  %v503_v14 = vld [vmem:[#allocation5 + $0x80] sm:$0xff]  ;;  %v514_v39 = vld [vmem:[#allocation5 + $0xd8] sm:$0xff] }
  0x6d   : > { %560 = vmatpush.msra.mxu0 %v511_v6  ;;  %2046 = vmatpush.msra.mxu2 %v511_v6  ;;  %v537_v13 = vld [vmem:[#allocation5 + $0x190] sm:$0xff]  ;;  %v535_v15 = vld [vmem:[#allocation5 + $0x180] sm:$0xff]  ;;  %v548_v40 = vld [vmem:[#allocation5 + $0x1e8] sm:$0xff] }
  0x6e   : > { %625 = vmatpush.msra.mxu1 %v543_v7  ;;  %2062 = vmatpush.msra.mxu3 %v543_v7  ;;  %v501_v16 = vld [vmem:[#allocation5 + $0x70] sm:$0xff]  ;;  %v499_v18 = vld [vmem:[#allocation5 + $0x60] sm:$0xff]  ;;  %v512_v41 = vld [vmem:[#allocation5 + $0xc8] sm:$0xff] }
  0x6f   : > { %561 = vmatpush.msra.mxu0 %v509_v8  ;;  %2047 = vmatpush.msra.mxu2 %v509_v8  ;;  %v533_v17 = vld [vmem:[#allocation5 + $0x170] sm:$0xff]  ;;  %v531_v19 = vld [vmem:[#allocation5 + $0x160] sm:$0xff]  ;;  %v546_v44 = vld [vmem:[#allocation5 + $0x1d8] sm:$0xff] }
  0x70   : > { %626 = vmatpush.msra.mxu1 %v541_v9  ;;  %2063 = vmatpush.msra.mxu3 %v541_v9  ;;  %v497_v20 = vld [vmem:[#allocation5 + $0x50] sm:$0xff]  ;;  %v495_v22 = vld [vmem:[#allocation5 + $0x40] sm:$0xff]  ;;  %v510_v45 = vld [vmem:[#allocation5 + $0xb8] sm:$0xff] }
  0x71   : > { %562 = vmatpush.msra.mxu0 %v507_v10  ;;  %2048 = vmatpush.msra.mxu2 %v507_v10  ;;  %v529_v21 = vld [vmem:[#allocation5 + $0x150] sm:$0xff]  ;;  %v527_v23 = vld [vmem:[#allocation5 + $0x140] sm:$0xff]  ;;  %v2718_v46 = vld [vmem:[%s2677_s14 + $0x18] sm:$0xff] }
  0x72   : > { %627 = vmatpush.msra.mxu1 %v539_v11  ;;  %2064 = vmatpush.msra.mxu3 %v539_v11  ;;  %v493_v24 = vld [vmem:[#allocation5 + $0x30] sm:$0xff]  ;;  %v491_v26 = vld [vmem:[#allocation5 + $0x20] sm:$0xff]  ;;  %v2723_v47 = vld [vmem:[%s2677_s14 + $0x98] sm:$0xff] }
  0x73   : > { %563 = vmatpush.msra.mxu0 %v505_v12  ;;  %2049 = vmatpush.msra.mxu2 %v505_v12  ;;  %v525_v25 = vld [vmem:[#allocation5 + $0x130] sm:$0xff]  ;;  %v523_v27 = vld [vmem:[#allocation5 + $0x120] sm:$0xff]  ;;  %v508_v48 = vld [vmem:[#allocation5 + $0xa8] sm:$0xff] }
  0x74   : > { %628 = vmatpush.msra.mxu1 %v537_v13  ;;  %2065 = vmatpush.msra.mxu3 %v537_v13  ;;  %v489_v28 = vld [vmem:[#allocation5 + $0x10] sm:$0xff]  ;;  %v487_v30 = vld [vmem:[#allocation5] sm:$0xff]  ;;  %v544_v49 = vld [vmem:[#allocation5 + $0x1c8] sm:$0xff] }
  0x75   : > { %564 = vmatpush.msra.mxu0 %v503_v14  ;;  %2050 = vmatpush.msra.mxu2 %v503_v14  ;;  %v521_v29 = vld [vmem:[#allocation5 + $0x110] sm:$0xff]  ;;  %v2696_v31 = vld [vmem:[%s2677_s14] sm:$0xff]  ;;  %v506_v50 = vld [vmem:[#allocation5 + $0x98] sm:$0xff] }
  0x76   : > { %629 = vmatpush.msra.mxu1 %v535_v15  ;;  %2066 = vmatpush.msra.mxu3 %v535_v15  ;;  %v2699_v32 = vld [vmem:[%s2677_s14 + $0x80] sm:$0xff]  ;;  %v2712_v42 = vld [vmem:[%s2677_s14 + $0x10] sm:$0xff]  ;;  %v542_v51 = vld [vmem:[#allocation5 + $0x1b8] sm:$0xff] }
  0x77   : > { %565 = vmatpush.msra.mxu0 %v501_v16  ;;  %2051 = vmatpush.msra.mxu2 %v501_v16  ;;  %v519_v34 = vld [vmem:[#allocation5 + $0x100] sm:$0xff]  ;;  %v2715_v43 = vld [vmem:[%s2677_s14 + $0x90] sm:$0xff]  ;;  %v504_v52 = vld [vmem:[#allocation5 + $0x88] sm:$0xff] }
  0x78   : > { %630 = vmatpush.msra.mxu1 %v533_v17  ;;  %2067 = vmatpush.msra.mxu3 %v533_v17  ;;  %v2728_v53 = vld [vmem:[%s2677_s14 + $0x20] sm:$0xff]  ;;  %v540_v55 = vld [vmem:[#allocation5 + $0x1a8] sm:$0xff]  ;;  %v502_v56 = vld [vmem:[#allocation5 + $0x78] sm:$0xff] }
  0x79   : > { %566 = vmatpush.msra.mxu0 %v499_v18  ;;  %2052 = vmatpush.msra.mxu2 %v499_v18  ;;  %v2731_v54 = vld [vmem:[%s2677_s14 + $0xa0] sm:$0xff]  ;;  %v2734_v57 = vld [vmem:[%s2677_s14 + $0x28] sm:$0xff]  ;;  %v538_v60 = vld [vmem:[#allocation5 + $0x198] sm:$0xff] }
  0x7a   : > { %631 = vmatpush.msra.mxu1 %v531_v19  ;;  %2068 = vmatpush.msra.mxu3 %v531_v19  ;;  %v2739_v58 = vld [vmem:[%s2677_s14 + $0xa8] sm:$0xff]  ;;  %v498_v61 = vld [vmem:[#allocation5 + $0x58] sm:$0xff]  ;;  %v2744_v0 = vld [vmem:[%s2677_s14 + $0x30] sm:$0xff] }
  0x7b   : > { %567 = vmatpush.msra.mxu0 %v497_v20  ;;  %2053 = vmatpush.msra.mxu2 %v497_v20  ;;  %v500_v59 = vld [vmem:[#allocation5 + $0x68] sm:$0xff]  ;;  %v2747_v1 = vld [vmem:[%s2677_s14 + $0xb0] sm:$0xff]  ;;  %v534_v2 = vld [vmem:[#allocation5 + $0x178] sm:$0xff] }
  0x7c   : > { %632 = vmatpush.msra.mxu1 %v529_v21  ;;  %2069 = vmatpush.msra.mxu3 %v529_v21  ;;  %v536_v62 = vld [vmem:[#allocation5 + $0x188] sm:$0xff]  ;;  %v494_v3 = vld [vmem:[#allocation5 + $0x38] sm:$0xff]  ;;  %v2760_v11 = vld [vmem:[%s2677_s14 + $0x40] sm:$0xff] }
  0x7d   : > { %568 = vmatpush.msra.mxu0 %v495_v22  ;;  %2054 = vmatpush.msra.mxu2 %v495_v22  ;;  %v496_v63 = vld [vmem:[#allocation5 + $0x48] sm:$0xff]  ;;  %v2750_v4 = vld [vmem:[%s2677_s14 + $0x38] sm:$0xff]  ;;  %v2763_v12 = vld [vmem:[%s2677_s14 + $0xc0] sm:$0xff] }
  0x7e   : > { %633 = vmatpush.msra.mxu1 %v527_v23  ;;  %2070 = vmatpush.msra.mxu3 %v527_v23  ;;  %v2755_v5 = vld [vmem:[%s2677_s14 + $0xb8] sm:$0xff]  ;;  %v492_v6 = vld [vmem:[#allocation5 + $0x28] sm:$0xff]  ;;  %v2776_v18 = vld [vmem:[%s2677_s14 + $0x50] sm:$0xff] }
  0x7f   : > { %569 = vmatpush.msra.mxu0 %v493_v24  ;;  %2055 = vmatpush.msra.mxu2 %v493_v24  ;;  %v532_v7 = vld [vmem:[#allocation5 + $0x168] sm:$0xff]  ;;  %v490_v8 = vld [vmem:[#allocation5 + $0x18] sm:$0xff]  ;;  %v2779_v19 = vld [vmem:[%s2677_s14 + $0xd0] sm:$0xff] }
  0x80   : > { %634 = vmatpush.msra.mxu1 %v525_v25  ;;  %2071 = vmatpush.msra.mxu3 %v525_v25  ;;  %v530_v9 = vld [vmem:[#allocation5 + $0x158] sm:$0xff]  ;;  %v488_v10 = vld [vmem:[#allocation5 + $0x8] sm:$0xff] }
  0x81   : > { %570 = vmatpush.msra.mxu0 %v491_v26  ;;  %2056 = vmatpush.msra.mxu2 %v491_v26  ;;  %v528_v13 = vld [vmem:[#allocation5 + $0x148] sm:$0xff]  ;;  %v526_v16 = vld [vmem:[#allocation5 + $0x138] sm:$0xff]  ;;  %v2792_v26 = vld [vmem:[%s2677_s14 + $0x60] sm:$0xff] }
  0x82   : > { %635 = vmatpush.msra.mxu1 %v523_v27  ;;  %2072 = vmatpush.msra.mxu3 %v523_v27  ;;  %v2766_v14 = vld [vmem:[%s2677_s14 + $0x48] sm:$0xff]  ;;  %v522_v20 = vld [vmem:[#allocation5 + $0x118] sm:$0xff]  ;;  %v2795_v27 = vld [vmem:[%s2677_s14 + $0xe0] sm:$0xff] }
  0x83   : > { %571 = vmatpush.msra.mxu0 %v489_v28  ;;  %2057 = vmatpush.msra.mxu2 %v489_v28  ;;  %v2771_v15 = vld [vmem:[%s2677_s14 + $0xc8] sm:$0xff]  ;;  %v2782_v21 = vld [vmem:[%s2677_s14 + $0x58] sm:$0xff] }
  0x84   : > { %636 = vmatpush.msra.mxu1 %v521_v29  ;;  %2073 = vmatpush.msra.mxu3 %v521_v29  ;;  %v524_v17 = vld [vmem:[#allocation5 + $0x128] sm:$0xff]  ;;  %v2787_v22 = vld [vmem:[%s2677_s14 + $0xd8] sm:$0xff] }
  0x85   : > { %572 = vmatpush.msra.mxu0 %v487_v30  ;;  %2058 = vmatpush.msra.mxu2 %v487_v30  ;;  %v880_v23 = vld [vmem:[#allocation8 + $0xf8] sm:$0xff]  ;;  %v520_v24 = vld [vmem:[#allocation5 + $0x108] sm:$0xff] }
  0x86   : > { %573 = vmatmul.f32.vlgmr.msra.gmra.mxu0 %v2696_v31  ;;  %597 = vmatmul.f32.vlgmr.msra.gmra.mxu2 %v2699_v32  ;;  %v912_v25 = vld [vmem:[#allocation8 + $0x1f8] sm:$0xff]  ;;  %v2798_v28 = vld [vmem:[%s2677_s14 + $0x68] sm:$0xff] }
  0x87   : > { %687 = vmatpush.msrb.mxu2 %v518_v33  ;;  %637 = vmatpush.msra.mxu1 %v519_v34  ;;  %v2803_v29 = vld [vmem:[%s2677_s14 + $0xe8] sm:$0xff] }
  0x88   : > { %2074 = vmatpush.msra.mxu3 %v519_v34  ;;  %638 = vmatmul.f32.vlgmr.msra.gmra.mxu1 %v2702_v35  ;;  %v878_v30 = vld [vmem:[#allocation8 + $0xe8] sm:$0xff] }
  0x89   : > { %662 = vmatmul.f32.vlgmr.msra.gmra.mxu3 %v2707_v36  ;;  %688 = vmatpush.msrb.mxu2 %v516_v37  ;;  %v910_v33 = vld [vmem:[#allocation8 + $0x1e8] sm:$0xff] }
  0x8a   : > { %752 = vmatpush.msrb.mxu3 %v550_v38  ;;  %v2808_v34 = vld [vmem:[%s2677_s14 + $0x70] sm:$0xff]  ;;  %v2814_v38 = vld [vmem:[%s2677_s14 + $0x78] sm:$0xff] }
  0x8b   : > { %689 = vmatpush.msrb.mxu2 %v514_v39  ;;  %v2811_v37 = vld [vmem:[%s2677_s14 + $0xf0] sm:$0xff]  ;;  %v2819_v39 = vld [vmem:[%s2677_s14 + $0xf8] sm:$0xff] }
  0x8c   : > { %753 = vmatpush.msrb.mxu3 %v548_v40  ;;  %v876_v40 = vld [vmem:[#allocation8 + $0xd8] sm:$0xff] }
  0x8d   : > { %690 = vmatpush.msrb.mxu2 %v512_v41  ;;  %v908_v41 = vld [vmem:[#allocation8 + $0x1d8] sm:$0xff] }
  0x8e   : > { %576 = vmatmul.f32.gmra.mxu0 %v2712_v42  ;;  %600 = vmatmul.f32.gmra.mxu2 %v2715_v43 }
  0x8f   : > { %754 = vmatpush.msrb.mxu3 %v546_v44  ;;  %691 = vmatpush.msrb.mxu2 %v510_v45  ;;  %v874_v44 = vld [vmem:[#allocation8 + $0xc8] sm:$0xff] }
  0x90   : > { %641 = vmatmul.f32.gmra.mxu1 %v2718_v46  ;;  %v906_v45 = vld [vmem:[#allocation8 + $0x1c8] sm:$0xff] }
  0x91   : > { %665 = vmatmul.f32.gmra.mxu3 %v2723_v47  ;;  %692 = vmatpush.msrb.mxu2 %v508_v48  ;;  %v879_v48 = vld [vmem:[#allocation8 + $0xf0] sm:$0xff] }
  0x92   : > { %755 = vmatpush.msrb.mxu3 %v544_v49  ;;  %v877_v49 = vld [vmem:[#allocation8 + $0xe0] sm:$0xff]  ;;  %919 = vmatpush.msrb.mxu0 %v879_v48 }
  0x93   : > { %693 = vmatpush.msrb.mxu2 %v506_v50  ;;  %v872_v50 = vld [vmem:[#allocation8 + $0xb8] sm:$0xff] }
  0x94   : > { %756 = vmatpush.msrb.mxu3 %v542_v51  ;;  %920 = vmatpush.msrb.mxu0 %v877_v49  ;;  %v875_v51 = vld [vmem:[#allocation8 + $0xd0] sm:$0xff] }
  0x95   : > { %694 = vmatpush.msrb.mxu2 %v504_v52  ;;  %v904_v52 = vld [vmem:[#allocation8 + $0x1b8] sm:$0xff]  ;;  %v899_v49 = vld [vmem:[#allocation8 + $0x190] sm:$0xff] }
  0x96   : > { %579 = vmatmul.f32.gmra.mxu0 %v2728_v53  ;;  %603 = vmatmul.f32.gmra.mxu2 %v2731_v54 }
  0x97   : > { %757 = vmatpush.msrb.mxu3 %v540_v55  ;;  %695 = vmatpush.msrb.mxu2 %v502_v56  ;;  %v871_v55 = vld [vmem:[#allocation8 + $0xb0] sm:$0xff]  ;;  %v870_v56 = vld [vmem:[#allocation8 + $0xa8] sm:$0xff] }
  0x98   : > { %644 = vmatmul.f32.gmra.mxu1 %v2734_v57  ;;  %921 = vmatpush.msrb.mxu0 %v875_v51 }
  0x99   : > { %668 = vmatmul.f32.gmra.mxu3 %v2739_v58  ;;  %696 = vmatpush.msrb.mxu2 %v500_v59  ;;  %v867_v59 = vld [vmem:[#allocation8 + $0x90] sm:$0xff] }
  0x9a   : > { %758 = vmatpush.msrb.mxu3 %v538_v60  ;;  %v865_v60 = vld [vmem:[#allocation8 + $0x80] sm:$0xff] }
  0x9b   : > { %697 = vmatpush.msrb.mxu2 %v498_v61  ;;  %v863_v61 = vld [vmem:[#allocation8 + $0x70] sm:$0xff] }
  0x9c   : > { %759 = vmatpush.msrb.mxu3 %v536_v62  ;;  %v868_v62 = vld [vmem:[#allocation8 + $0x98] sm:$0xff] }
  0x9d   : > { %698 = vmatpush.msrb.mxu2 %v496_v63  ;;  %v859_v63 = vld [vmem:[#allocation8 + $0x50] sm:$0xff] }
  0x9e   : > { %582 = vmatmul.f32.gmra.mxu0 %v2744_v0  ;;  %606 = vmatmul.f32.gmra.mxu2 %v2747_v1 }
  0x9f   : > { %760 = vmatpush.msrb.mxu3 %v534_v2  ;;  %699 = vmatpush.msrb.mxu2 %v494_v3  ;;  %v857_v2 = vld [vmem:[#allocation8 + $0x40] sm:$0xff] }
  0xa0   : > { %647 = vmatmul.f32.gmra.mxu1 %v2750_v4  ;;  %v853_v3 = vld [vmem:[#allocation8 + $0x20] sm:$0xff] }
  0xa1   : > { %671 = vmatmul.f32.gmra.mxu3 %v2755_v5  ;;  %700 = vmatpush.msrb.mxu2 %v492_v6  ;;  %v851_v6 = vld [vmem:[#allocation8 + $0x10] sm:$0xff] }
  0xa2   : > { %761 = vmatpush.msrb.mxu3 %v532_v7  ;;  %v866_v7 = vld [vmem:[#allocation8 + $0x88] sm:$0xff] }
  0xa3   : > { %701 = vmatpush.msrb.mxu2 %v490_v8  ;;  %v849_v8 = vld [vmem:[#allocation8] sm:$0xff] }
  0xa4   : > { %762 = vmatpush.msrb.mxu3 %v530_v9  ;;  %v896_v9 = vld [vmem:[#allocation8 + $0x178] sm:$0xff] }
  0xa5   : > { %702 = vmatpush.msrb.mxu2 %v488_v10  ;;  %v911_v10 = vld [vmem:[#allocation8 + $0x1f0] sm:$0xff] }
  0xa6   : > { %585 = vmatmul.f32.gmra.mxu0 %v2760_v11  ;;  %609 = vmatmul.f32.gmra.mxu2 %v2763_v12 }
  0xa7   : > { %763 = vmatpush.msrb.mxu3 %v528_v13  ;;  %1049 = vmatpush.msra.mxu2 %v880_v23  ;;  %v909_v13 = vld [vmem:[#allocation8 + $0x1e0] sm:$0xff]  ;;  %v892_v23 = vld [vmem:[#allocation8 + $0x158] sm:$0xff] }
  0xa8   : > { %650 = vmatmul.f32.gmra.mxu1 %v2766_v14 }
  0xa9   : > { %674 = vmatmul.f32.gmra.mxu3 %v2771_v15  ;;  %1050 = vmatpush.msra.mxu2 %v878_v30 }
  0xaa   : > { %764 = vmatpush.msrb.mxu3 %v526_v16  ;;  %984 = vmatpush.msrb.mxu1 %v911_v10  ;;  %v2837_v16 = vld [vmem:[#allocation7] sm:$0x3] }
  0xab   : > { %1051 = vmatpush.msra.mxu2 %v876_v40  ;;  %v901_v40 = vld [vmem:[#allocation8 + $0x1a0] sm:$0xff] }
  0xac   : > { %765 = vmatpush.msrb.mxu3 %v524_v17  ;;  %985 = vmatpush.msrb.mxu1 %v909_v13  ;;  %v907_v17 = vld [vmem:[#allocation8 + $0x1d0] sm:$0xff] }
  0xad   : > { %1052 = vmatpush.msra.mxu2 %v874_v44  ;;  %v887_v13 = vld [vmem:[#allocation8 + $0x130] sm:$0xff] }
  0xae   : > { %588 = vmatmul.f32.gmra.mxu0 %v2776_v18  ;;  %612 = vmatmul.f32.gmra.mxu2 %v2779_v19 }
  0xaf   : > { %766 = vmatpush.msrb.mxu3 %v522_v20  ;;  %1053 = vmatpush.msra.mxu2 %v872_v50  ;;  %v2841_v20 = vperm.slane %v2837_v16, 0 }
  0xb0   : > { %653 = vmatmul.f32.gmra.mxu1 %v2782_v21 }
  0xb1   : > { %677 = vmatmul.f32.gmra.mxu3 %v2787_v22  ;;  %1054 = vmatpush.msra.mxu2 %v870_v56 }
  0xb2   : > { %767 = vmatpush.msrb.mxu3 %v520_v24  ;;  %986 = vmatpush.msrb.mxu1 %v907_v17 }
  0xb3   : > { %1055 = vmatpush.msra.mxu2 %v868_v62  ;;  %v893_v62 = vld [vmem:[#allocation8 + $0x160] sm:$0xff] }
  0xb4   : > { %1114 = vmatpush.msra.mxu3 %v912_v25 }
  0xb5   : > { %1056 = vmatpush.msra.mxu2 %v866_v7 }
  0xb6   : > { %591 = vmatmul.f32.gmra.mxu0 %v2792_v26  ;;  %615 = vmatmul.f32.gmra.mxu2 %v2795_v27 }
  0xb7   : > { %1115 = vmatpush.msra.mxu3 %v910_v33  ;;  %v858_v33 = vld [vmem:[#allocation8 + $0x48] sm:$0xff] }
  0xb8   : > { %656 = vmatmul.f32.gmra.mxu1 %v2798_v28 }
  0xb9   : > { %680 = vmatmul.f32.gmra.mxu3 %v2803_v29 }
  0xba   : > { %1116 = vmatpush.msra.mxu3 %v908_v41  ;;  %v890_v41 = vld [vmem:[#allocation8 + $0x148] sm:$0xff] }
  0xbc   : > { %1117 = vmatpush.msra.mxu3 %v906_v45 }
  0xbe   : > { %594 = vmatmul.f32.gmra.mxu0 %v2808_v34  ;;  %618 = vmatmul.f32.gmra.mxu2 %v2811_v37 }
  0xbf   : > { %1118 = vmatpush.msra.mxu3 %v904_v52 }
  0xc0   : > { %659 = vmatmul.f32.gmra.mxu1 %v2814_v38 }
  0xc1   : > { %683 = vmatmul.f32.gmra.mxu3 %v2819_v39 }
  0xc6   : > { %703 = vmatmul.f32.vlgmr.msrb.gmra.mxu2 %v2696_v31  ;;  %v873_v31 = vld [vmem:[#allocation8 + $0xc0] sm:$0xff] }
  0xc7   : > { %922 = vmatpush.msrb.mxu0 %v873_v31  ;;  %v897_v31 = vld [vmem:[#allocation8 + $0x180] sm:$0xff] }
  0xc9   : > { %768 = vmatmul.f32.vlgmr.msrb.gmra.mxu3 %v2702_v35  ;;  %v869_v35 = vld [vmem:[#allocation8 + $0xa0] sm:$0xff]  ;;  %923 = vmatpush.msrb.mxu0 %v871_v55  ;;  %v888_v55 = vld [vmem:[#allocation8 + $0x138] sm:$0xff] }
  0xcb   : > { %924 = vmatpush.msrb.mxu0 %v869_v35 }
  0xcd   : > { %925 = vmatpush.msrb.mxu0 %v867_v59 }
  0xce   : > { %706 = vmatmul.f32.gmra.mxu2 %v2712_v42  ;;  %v902_v42 = vld [vmem:[#allocation8 + $0x1a8] sm:$0xff] }
  0xcf   : > { %1119 = vmatpush.msra.mxu3 %v902_v42  ;;  %926 = vmatpush.msrb.mxu0 %v865_v60  ;;  %v895_v42 = vld [vmem:[#allocation8 + $0x170] sm:$0xff] }
  0xd1   : > { %771 = vmatmul.f32.gmra.mxu3 %v2718_v46  ;;  %v861_v46 = vld [vmem:[#allocation8 + $0x60] sm:$0xff]  ;;  %927 = vmatpush.msrb.mxu0 %v863_v61 }
  0xd3   : > { %928 = vmatpush.msrb.mxu0 %v861_v46 }
  0xd5   : > { %929 = vmatpush.msrb.mxu0 %v859_v63  ;;  %v886_v63 = vld [vmem:[#allocation8 + $0x128] sm:$0xff] }
  0xd6   : > { %709 = vmatmul.f32.gmra.mxu2 %v2728_v53  ;;  %v900_v53 = vld [vmem:[#allocation8 + $0x198] sm:$0xff] }
  0xd7   : > { %1120 = vmatpush.msra.mxu3 %v900_v53  ;;  %930 = vmatpush.msrb.mxu0 %v857_v2 }
  0xd9   : > { %774 = vmatmul.f32.gmra.mxu3 %v2734_v57  ;;  %v855_v57 = vld [vmem:[#allocation8 + $0x30] sm:$0xff] }
  0xda   : > { %931 = vmatpush.msrb.mxu0 %v855_v57 }
  0xdc   : > { %932 = vmatpush.msrb.mxu0 %v853_v3  ;;  %v891_v3 = vld [vmem:[#allocation8 + $0x150] sm:$0xff] }
  0xde   : > { %712 = vmatmul.f32.gmra.mxu2 %v2744_v0  ;;  %933 = vmatpush.msrb.mxu0 %v851_v6  ;;  %v898_v0 = vld [vmem:[#allocation8 + $0x188] sm:$0xff] }
  0xdf   : > { %1121 = vmatpush.msra.mxu3 %v898_v0 }
  0xe0   : > { %934 = vmatpush.msrb.mxu0 %v849_v8  ;;  %v889_v8 = vld [vmem:[#allocation8 + $0x140] sm:$0xff] }
  0xe1   : > { %777 = vmatmul.f32.gmra.mxu3 %v2750_v4  ;;  %v864_v4 = vld [vmem:[#allocation8 + $0x78] sm:$0xff] }
  0xe2   : > { %1057 = vmatpush.msra.mxu2 %v864_v4  ;;  %1122 = vmatpush.msra.mxu3 %v896_v9  ;;  %v884_v4 = vld [vmem:[#allocation8 + $0x118] sm:$0xff] }
  0xe6   : > { %715 = vmatmul.f32.gmra.mxu2 %v2760_v11  ;;  %v862_v11 = vld [vmem:[#allocation8 + $0x68] sm:$0xff] }
  0xe7   : > { %1058 = vmatpush.msra.mxu2 %v862_v11 }
  0xe9   : > { %780 = vmatmul.f32.gmra.mxu3 %v2766_v14  ;;  %v894_v14 = vld [vmem:[#allocation8 + $0x168] sm:$0xff] }
  0xea   : > { %1123 = vmatpush.msra.mxu3 %v894_v14  ;;  %v850_v14 = vld [vmem:[#allocation8 + $0x8] sm:$0xff] }
  0xec   : > { %1124 = vmatpush.msra.mxu3 %v892_v23 }
  0xee   : > { %718 = vmatmul.f32.gmra.mxu2 %v2776_v18  ;;  %v860_v18 = vld [vmem:[#allocation8 + $0x58] sm:$0xff]  ;;  %1125 = vmatpush.msra.mxu3 %v890_v41 }
  0xef   : > { %1059 = vmatpush.msra.mxu2 %v860_v18  ;;  %v882_v18 = vld [vmem:[#allocation8 + $0x108] sm:$0xff] }
  0xf0   : > { %1126 = vmatpush.msra.mxu3 %v888_v55  ;;  %v1242_v55 = vld [vmem:[#allocation10 + $0xf8] sm:$0xff] }
  0xf1   : > { %783 = vmatmul.f32.gmra.mxu3 %v2782_v21  ;;  %v905_v21 = vld [vmem:[#allocation8 + $0x1c0] sm:$0xff]  ;;  %1060 = vmatpush.msra.mxu2 %v858_v33 }
  0xf2   : > { %987 = vmatpush.msrb.mxu1 %v905_v21  ;;  %1127 = vmatpush.msra.mxu3 %v886_v63 }
  0xf4   : > { %1128 = vmatpush.msra.mxu3 %v884_v4  ;;  %v1223_v4 = vld [vmem:[#allocation10 + $0x60] sm:$0xff] }
  0xf6   : > { %721 = vmatmul.f32.gmra.mxu2 %v2792_v26  ;;  %1129 = vmatpush.msra.mxu3 %v882_v18 }
  0xf9   : > { %786 = vmatmul.f32.gmra.mxu3 %v2798_v28  ;;  %v903_v28 = vld [vmem:[#allocation8 + $0x1b0] sm:$0xff] }
  0xfa   : > { %988 = vmatpush.msrb.mxu1 %v903_v28  ;;  %v883_v28 = vld [vmem:[#allocation8 + $0x110] sm:$0xff] }
  0xfc   : > { %989 = vmatpush.msrb.mxu1 %v901_v40  ;;  %v881_v40 = vld [vmem:[#allocation8 + $0x100] sm:$0xff] }
  0xfe   : > { %724 = vmatmul.f32.gmra.mxu2 %v2808_v34  ;;  %990 = vmatpush.msrb.mxu1 %v899_v49 }
 0x100   : > { %991 = vmatpush.msrb.mxu1 %v897_v31 }
 0x101   : > { %789 = vmatmul.f32.gmra.mxu3 %v2814_v38 }
 0x102   : > { %992 = vmatpush.msrb.mxu1 %v895_v42 }
 0x103   : > { %v574_v24 = vpop.f32.mrf.mxu0 }
 0x104   : > { %v575_v25 = vadd.f32 %v574_v24, %v2841_v20  ;;  %993 = vmatpush.msrb.mxu1 %v893_v62 }
 0x105   : > { %v639_v26 = vpop.f32.mrf.mxu1 }
 0x106   : > { %v2845_v30 = vadd.f32 %v639_v26, %v575_v25  ;;  %727 = vmatmul.f32.gmra.mxu2 %v2699_v32  ;;  %994 = vmatpush.msrb.mxu1 %v891_v3 }
 0x108   : > { %v817_v34 = vmax.f32 %v2845_v30, 0.0  ;;  %995 = vmatpush.msrb.mxu1 %v889_v8  ;;  %v1240_v8 = vld [vmem:[#allocation10 + $0xe8] sm:$0xff] }
 0x109   : > { %792 = vmatmul.f32.gmra.mxu3 %v2707_v36  ;;  %v2850_v38 = vpop.f32.mrf.mxu2  ;;  %v856_v36 = vld [vmem:[#allocation8 + $0x38] sm:$0xff] }
 0x10a   : > { %935 = vmatmul.f32.vlgmr.msrb.gmra.mxu0 %v817_v34  ;;  %1061 = vmatpush.msra.mxu2 %v856_v36 }
 0x10b   : > { %v577_v44 = vpop.f32.mrf.mxu0  ;;  %996 = vmatpush.msrb.mxu1 %v887_v13  ;;  %v1239_v13 = vld [vmem:[#allocation10 + $0xe0] sm:$0xff] }
 0x10c   : > { %v578_v45 = vadd.f32 %v577_v44, %v2841_v20  ;;  %v2855_v32 = vpop.f32.mrf.mxu3 }
 0x10d   : > { %v642_v48 = vpop.f32.mrf.mxu1 }
 0x10e   : > { %v2857_v50 = vadd.f32 %v642_v48, %v578_v45  ;;  %730 = vmatmul.f32.gmra.mxu2 %v2715_v43 }
 0x110   : > { %v819_v51 = vmax.f32 %v2857_v50, 0.0 }
 0x111   : > { %795 = vmatmul.f32.gmra.mxu3 %v2723_v47  ;;  %v2862_v52 = vpop.f32.mrf.mxu2  ;;  %v854_v47 = vld [vmem:[#allocation8 + $0x28] sm:$0xff] }
 0x112   : > { %938 = vmatmul.f32.gmra.mxu0 %v819_v51  ;;  %1062 = vmatpush.msra.mxu2 %v854_v47  ;;  %v1225_v47 = vld [vmem:[#allocation10 + $0x70] sm:$0xff] }
 0x113   : > { %v580_v35 = vpop.f32.mrf.mxu0 }
 0x114   : > { %v581_v56 = vadd.f32 %v580_v35, %v2841_v20  ;;  %v2867_v43 = vpop.f32.mrf.mxu3 }
 0x115   : > { %v645_v59 = vpop.f32.mrf.mxu1 }
 0x116   : > { %v2869_v60 = vadd.f32 %v645_v59, %v581_v56  ;;  %733 = vmatmul.f32.gmra.mxu2 %v2731_v54 }
 0x118   : > { %v821_v61 = vmax.f32 %v2869_v60, 0.0 }
 0x119   : > { %798 = vmatmul.f32.gmra.mxu3 %v2739_v58  ;;  %v2874_v46 = vpop.f32.mrf.mxu2  ;;  %v852_v58 = vld [vmem:[#allocation8 + $0x18] sm:$0xff] }
 0x11a   : > { %941 = vmatmul.f32.gmra.mxu0 %v821_v61  ;;  %1063 = vmatpush.msra.mxu2 %v852_v58 }
 0x11b   : > { %v583_v53 = vpop.f32.mrf.mxu0 }
 0x11c   : > { %v584_v2 = vadd.f32 %v583_v53, %v2841_v20  ;;  %v2879_v54 = vpop.f32.mrf.mxu3  ;;  %1064 = vmatpush.msra.mxu2 %v850_v14  ;;  %v1241_v53 = vld [vmem:[#allocation10 + $0xf0] sm:$0xff] }
 0x11d   : > { %v648_v57 = vpop.f32.mrf.mxu1 }
 0x11e   : > { %v2881_v6 = vadd.f32 %v648_v57, %v584_v2  ;;  %736 = vmatmul.f32.gmra.mxu2 %v2747_v1  ;;  %v1224_v57 = vld [vmem:[#allocation10 + $0x68] sm:$0xff] }
 0x120   : > { %v823_v7 = vmax.f32 %v2881_v6, 0.0 }
 0x121   : > { %801 = vmatmul.f32.gmra.mxu3 %v2755_v5  ;;  %v2886_v0 = vpop.f32.mrf.mxu2  ;;  %v885_v5 = vld [vmem:[#allocation8 + $0x120] sm:$0xff] }
 0x122   : > { %944 = vmatmul.f32.gmra.mxu0 %v823_v7  ;;  %997 = vmatpush.msrb.mxu1 %v885_v5  ;;  %v608_v18 = vadd.f32 %v2886_v0, %v2841_v20  ;;  %v1221_v0 = vld [vmem:[#allocation10 + $0x50] sm:$0xff] }
 0x123   : > { %v586_v9 = vpop.f32.mrf.mxu0 }
 0x124   : > { %v587_v10 = vadd.f32 %v586_v9, %v2841_v20  ;;  %v2891_v1 = vpop.f32.mrf.mxu3  ;;  %998 = vmatpush.msrb.mxu1 %v883_v28  ;;  %v605_v9 = vadd.f32 %v2874_v46, %v2841_v20  ;;  %v1222_v46 = vld [vmem:[#allocation10 + $0x58] sm:$0xff] }
 0x125   : > { %v651_v11 = vpop.f32.mrf.mxu1  ;;  %v2979_v60 = vadd.f32 %v2891_v1, %v608_v18 }
 0x126   : > { %v2893_v17 = vadd.f32 %v651_v11, %v587_v10  ;;  %739 = vmatmul.f32.gmra.mxu2 %v2763_v12  ;;  %999 = vmatpush.msrb.mxu1 %v881_v40  ;;  %v2968_v50 = vadd.f32 %v2879_v54, %v605_v9 }
 0x128   : > { %v825_v21 = vmax.f32 %v2893_v17, 0.0  ;;  %1312 = vmatpush.msra.mxu1 %v1242_v55 }
 0x129   : > { %804 = vmatmul.f32.gmra.mxu3 %v2771_v15  ;;  %v2898_v23 = vpop.f32.mrf.mxu2 }
 0x12a   : > { %947 = vmatmul.f32.gmra.mxu0 %v825_v21  ;;  %1313 = vmatpush.msra.mxu1 %v1241_v53 }
 0x12b   : > { %v589_v24 = vpop.f32.mrf.mxu0 }
 0x12c   : > { %v590_v25 = vadd.f32 %v589_v24, %v2841_v20  ;;  %v2903_v26 = vpop.f32.mrf.mxu3  ;;  %1314 = vmatpush.msra.mxu1 %v1240_v8  ;;  %v837_v24 = vmax.f32 %v2968_v50, 0.0 }
 0x12d   : > { %v654_v12 = vpop.f32.mrf.mxu1 }
 0x12e   : > { %v2905_v33 = vadd.f32 %v654_v12, %v590_v25  ;;  %742 = vmatmul.f32.gmra.mxu2 %v2779_v19  ;;  %v1226_v19 = vld [vmem:[#allocation10 + $0x78] sm:$0xff]  ;;  %1315 = vmatpush.msra.mxu1 %v1239_v13 }
 0x12f   : > { %1247 = vmatpush.msra.mxu0 %v1226_v19  ;;  %v1238_v12 = vld [vmem:[#allocation10 + $0xd8] sm:$0xff]  ;;  %v1237_v19 = vld [vmem:[#allocation10 + $0xd0] sm:$0xff] }
 0x130   : > { %v827_v15 = vmax.f32 %v2905_v33, 0.0  ;;  %1316 = vmatpush.msra.mxu1 %v1238_v12 }
 0x131   : > { %807 = vmatmul.f32.gmra.mxu3 %v2787_v22  ;;  %v2910_v41 = vpop.f32.mrf.mxu2  ;;  %1248 = vmatpush.msra.mxu0 %v1225_v47 }
 0x132   : > { %950 = vmatmul.f32.gmra.mxu0 %v827_v15  ;;  %1317 = vmatpush.msra.mxu1 %v1237_v19  ;;  %v1214_v19 = vld [vmem:[#allocation10 + $0x18] sm:$0xff] }
 0x133   : > { %v592_v44 = vpop.f32.mrf.mxu0  ;;  %1249 = vmatpush.msra.mxu0 %v1224_v57 }
 0x134   : > { %v593_v45 = vadd.f32 %v592_v44, %v2841_v20  ;;  %v2915_v48 = vpop.f32.mrf.mxu3  ;;  %v611_v44 = vadd.f32 %v2898_v23, %v2841_v20  ;;  %v1220_v23 = vld [vmem:[#allocation10 + $0x48] sm:$0xff] }
 0x135   : > { %v657_v49 = vpop.f32.mrf.mxu1  ;;  %1250 = vmatpush.msra.mxu0 %v1223_v4 }
 0x136   : > { %v2917_v36 = vadd.f32 %v657_v49, %v593_v45  ;;  %745 = vmatmul.f32.gmra.mxu2 %v2795_v27  ;;  %v839_v45 = vmax.f32 %v2979_v60, 0.0  ;;  %v2990_v6 = vadd.f32 %v2903_v26, %v611_v44 }
 0x137   : > { %1251 = vmatpush.msra.mxu0 %v1222_v46 }
 0x138   : > { %v829_v31 = vmax.f32 %v2917_v36, 0.0 }
 0x139   : > { %810 = vmatmul.f32.gmra.mxu3 %v2803_v29  ;;  %v2922_v22 = vpop.f32.mrf.mxu2  ;;  %v599_v29 = vadd.f32 %v2850_v38, %v2841_v20  ;;  %v2948_v38 = vperm.slane %v2837_v16, 1  ;;  %1252 = vmatpush.msra.mxu0 %v1221_v0 }
 0x13a   : > { %953 = vmatmul.f32.gmra.mxu0 %v829_v31 }
 0x13b   : > { %v595_v35 = vpop.f32.mrf.mxu0  ;;  %v2941_v2 = vadd.f32 %v2855_v32, %v599_v29  ;;  %1253 = vmatpush.msra.mxu0 %v1220_v23  ;;  %v1236_v29 = vld [vmem:[#allocation10 + $0xc8] sm:$0xff] }
 0x13c   : > { %v596_v56 = vadd.f32 %v595_v35, %v2841_v20  ;;  %v2927_v59 = vpop.f32.mrf.mxu3  ;;  %1318 = vmatpush.msra.mxu1 %v1236_v29 }
 0x13d   : > { %v660_v42 = vpop.f32.mrf.mxu1  ;;  %v833_v3 = vmax.f32 %v2941_v2, 0.0 }
 0x13e   : > { %v2929_v27 = vadd.f32 %v660_v42, %v596_v56  ;;  %748 = vmatmul.f32.gmra.mxu2 %v2811_v37  ;;  %v614_v56 = vadd.f32 %v2910_v41, %v2841_v20  ;;  %v841_v42 = vmax.f32 %v2990_v6, 0.0  ;;  %v1219_v41 = vld [vmem:[#allocation10 + $0x40] sm:$0xff] }
 0x13f   : > { %1254 = vmatpush.msra.mxu0 %v1219_v41 }
 0x140   : > { %v831_v62 = vmax.f32 %v2929_v27, 0.0  ;;  %v3001_v17 = vadd.f32 %v2915_v48, %v614_v56  ;;  %v1216_v27 = vld [vmem:[#allocation10 + $0x28] sm:$0xff] }
 0x141   : > { %813 = vmatmul.f32.gmra.mxu3 %v2819_v39  ;;  %v2936_v63 = vpop.f32.mrf.mxu2  ;;  %v602_v39 = vadd.f32 %v2862_v52, %v2841_v20 }
 0x142   : > { %956 = vmatmul.f32.gmra.mxu0 %v831_v62  ;;  %v620_v4 = vadd.f32 %v2936_v63, %v2841_v20 }
 0x143   : > { %v2957_v30 = vadd.f32 %v2867_v43, %v602_v39  ;;  %v617_v39 = vadd.f32 %v2922_v22, %v2841_v20  ;;  %v1218_v22 = vld [vmem:[#allocation10 + $0x38] sm:$0xff]  ;;  %v1217_v20 = vld [vmem:[#allocation10 + $0x30] sm:$0xff] }
 0x144   : > { %v2943_v37 = vpop.f32.mrf.mxu3  ;;  %1255 = vmatpush.msra.mxu0 %v1218_v22 }
 0x145   : > { %v835_v10 = vmax.f32 %v2957_v30, 0.0  ;;  %v3012_v33 = vadd.f32 %v2927_v59, %v617_v39  ;;  %v3023_v36 = vadd.f32 %v2943_v37, %v620_v4 }
 0x146   : > { %1065 = vmatmul.f32.vlgmr.msra.gmra.mxu2 %v817_v34  ;;  %1256 = vmatpush.msra.mxu0 %v1217_v20 }
 0x148   : > { %1257 = vmatpush.msra.mxu0 %v1216_v27 }
 0x149   : > { %v704_v58 = vpop.f32.mrf.mxu2 }
 0x14a   : > { %v705_v32 = vadd.f32 %v704_v58, %v2948_v38  ;;  %959 = vmatmul.f32.gmra.mxu0 %v833_v3  ;;  %v843_v58 = vmax.f32 %v3001_v17, 0.0 }
 0x14c   : > { %v769_v16 = vpop.f32.mrf.mxu3 }
 0x14d   : > { %v770_v34 = vadd.f32 %v769_v16, %v705_v32  ;;  %v1235_v32 = vld [vmem:[#allocation10 + $0xc0] sm:$0xff] }
 0x14e   : > { %1068 = vmatmul.f32.gmra.mxu2 %v819_v51  ;;  %1319 = vmatpush.msra.mxu1 %v1235_v32 }
 0x14f   : > { %v818_v52 = vmax.f32 %v770_v34, 0.0 }
 0x151   : > { %1000 = vmatmul.f32.vlgmr.msrb.gmra.mxu1 %v818_v52  ;;  %1130 = vmatmul.f32.vlgmr.msra.gmra.mxu3 %v818_v52  ;;  %v707_v11 = vpop.f32.mrf.mxu2  ;;  %v845_v52 = vmax.f32 %v3012_v33, 0.0 }
 0x152   : > { %v708_v43 = vadd.f32 %v707_v11, %v2948_v38  ;;  %962 = vmatmul.f32.gmra.mxu0 %v835_v10  ;;  %v1234_v11 = vld [vmem:[#allocation10 + $0xb8] sm:$0xff] }
 0x153   : > { %1320 = vmatpush.msra.mxu1 %v1234_v11  ;;  %v1454_v11 = vld [vmem:[#allocation11 + $0x1e8] sm:$0xff] }
 0x154   : > { %v772_v51 = vpop.f32.mrf.mxu3  ;;  %1532 = vmatpush.msrb.mxu3 %v1454_v11 }
 0x155   : > { %v773_v14 = vadd.f32 %v772_v51, %v708_v43  ;;  %v847_v43 = vmax.f32 %v3023_v36, 0.0  ;;  %v913_v36 = vld [vmem:[%s3324_s4] sm:$0x3] }
 0x156   : > { %1071 = vmatmul.f32.gmra.mxu2 %v821_v61  ;;  %v3058_v27 = vperm.slane %v913_v36, 0 }
 0x157   : > { %v820_v5 = vmax.f32 %v773_v14, 0.0  ;;  %v1233_v14 = vld [vmem:[#allocation10 + $0xb0] sm:$0xff] }
 0x158   : > { %1321 = vmatpush.msra.mxu1 %v1233_v14  ;;  %v1449_v14 = vld [vmem:[#allocation11 + $0x1c0] sm:$0xff] }
 0x159   : > { %1003 = vmatmul.f32.gmra.mxu1 %v820_v5  ;;  %1133 = vmatmul.f32.gmra.mxu3 %v820_v5  ;;  %v710_v25 = vpop.f32.mrf.mxu2 }
 0x15a   : > { %v711_v54 = vadd.f32 %v710_v25, %v2948_v38  ;;  %965 = vmatmul.f32.gmra.mxu0 %v837_v24  ;;  %v1232_v25 = vld [vmem:[#allocation10 + $0xa8] sm:$0xff] }
 0x15b   : > { %1322 = vmatpush.msra.mxu1 %v1232_v25 }
 0x15c   : > { %v775_v61 = vpop.f32.mrf.mxu3 }
 0x15d   : > { %v776_v28 = vadd.f32 %v775_v61, %v711_v54 }
 0x15e   : > { %1074 = vmatmul.f32.gmra.mxu2 %v823_v7 }
 0x15f   : > { %v822_v40 = vmax.f32 %v776_v28, 0.0  ;;  %v1215_v28 = vld [vmem:[#allocation10 + $0x20] sm:$0xff] }
 0x160   : > { %1258 = vmatpush.msra.mxu0 %v1215_v28  ;;  %v3061_v28 = vperm.slane %v913_v36, 1 }
 0x161   : > { %1006 = vmatmul.f32.gmra.mxu1 %v822_v40  ;;  %1136 = vmatmul.f32.gmra.mxu3 %v822_v40  ;;  %v713_v49 = vpop.f32.mrf.mxu2 }
 0x162   : > { %v714_v1 = vadd.f32 %v713_v49, %v2948_v38  ;;  %968 = vmatmul.f32.gmra.mxu0 %v839_v45 }
 0x163   : > { %1259 = vmatpush.msra.mxu0 %v1214_v19  ;;  %v1448_v19 = vld [vmem:[#allocation11 + $0x1b8] sm:$0xff] }
 0x164   : > { %v778_v7 = vpop.f32.mrf.mxu3 }
 0x165   : > { %v779_v55 = vadd.f32 %v778_v7, %v714_v1 }
 0x166   : > { %1077 = vmatmul.f32.gmra.mxu2 %v825_v21 }
 0x167   : > { %v824_v35 = vmax.f32 %v779_v55, 0.0 }
 0x169   : > { %1009 = vmatmul.f32.gmra.mxu1 %v824_v35  ;;  %1139 = vmatmul.f32.gmra.mxu3 %v824_v35  ;;  %v716_v47 = vpop.f32.mrf.mxu2  ;;  %v1213_v35 = vld [vmem:[#allocation10 + $0x10] sm:$0xff] }
 0x16a   : > { %v717_v26 = vadd.f32 %v716_v47, %v2948_v38  ;;  %971 = vmatmul.f32.gmra.mxu0 %v841_v42 }
 0x16b   : > { %1260 = vmatpush.msra.mxu0 %v1213_v35 }
 0x16c   : > { %v781_v21 = vpop.f32.mrf.mxu3 }
 0x16d   : > { %v782_v53 = vadd.f32 %v781_v21, %v717_v26  ;;  %v1212_v21 = vld [vmem:[#allocation10 + $0x8] sm:$0xff] }
 0x16e   : > { %1080 = vmatmul.f32.gmra.mxu2 %v827_v15  ;;  %1261 = vmatpush.msra.mxu0 %v1212_v21  ;;  %v1444_v21 = vld [vmem:[#allocation11 + $0x198] sm:$0xff] }
 0x16f   : > { %v826_v57 = vmax.f32 %v782_v53, 0.0 }
 0x171   : > { %1012 = vmatmul.f32.gmra.mxu1 %v826_v57  ;;  %1142 = vmatmul.f32.gmra.mxu3 %v826_v57  ;;  %v719_v8 = vpop.f32.mrf.mxu2 }
 0x172   : > { %v720_v48 = vadd.f32 %v719_v8, %v2948_v38  ;;  %974 = vmatmul.f32.gmra.mxu0 %v843_v58 }
 0x174   : > { %v784_v15 = vpop.f32.mrf.mxu3 }
 0x175   : > { %v785_v16 = vadd.f32 %v784_v15, %v720_v48  ;;  %v1227_v48 = vld [vmem:[#allocation10 + $0x80] sm:$0xff] }
 0x176   : > { %1083 = vmatmul.f32.gmra.mxu2 %v829_v31 }
 0x177   : > { %v828_v34 = vmax.f32 %v785_v16, 0.0 }
 0x179   : > { %1015 = vmatmul.f32.gmra.mxu1 %v828_v34  ;;  %1145 = vmatmul.f32.gmra.mxu3 %v828_v34  ;;  %v722_v9 = vpop.f32.mrf.mxu2 }
 0x17a   : > { %v723_v59 = vadd.f32 %v722_v9, %v2948_v38  ;;  %977 = vmatmul.f32.gmra.mxu0 %v845_v52  ;;  %v1453_v9 = vld [vmem:[#allocation11 + $0x1e0] sm:$0xff] }
 0x17b   : > { %1467 = vmatpush.msrb.mxu2 %v1453_v9 }
 0x17c   : > { %v787_v31 = vpop.f32.mrf.mxu3 }
 0x17d   : > { %v788_v13 = vadd.f32 %v787_v31, %v723_v59  ;;  %1468 = vmatpush.msrb.mxu2 %v1449_v14 }
 0x17e   : > { %1086 = vmatmul.f32.gmra.mxu2 %v831_v62 }
 0x17f   : > { %v830_v63 = vmax.f32 %v788_v13, 0.0 }
 0x181   : > { %1018 = vmatmul.f32.gmra.mxu1 %v830_v63  ;;  %1148 = vmatmul.f32.gmra.mxu3 %v830_v63  ;;  %v725_v51 = vpop.f32.mrf.mxu2  ;;  %v1456_v63 = vld [vmem:[#allocation11 + $0x1f8] sm:$0xff] }
 0x182   : > { %v726_v46 = vadd.f32 %v725_v51, %v2948_v38  ;;  %980 = vmatmul.f32.gmra.mxu0 %v847_v43 }
 0x184   : > { %v790_v37 = vpop.f32.mrf.mxu3 }
 0x185   : > { %v791_v5 = vadd.f32 %v790_v37, %v726_v46  ;;  %v1450_v46 = vld [vmem:[#allocation11 + $0x1c8] sm:$0xff] }
 0x186   : > { %1089 = vmatmul.f32.gmra.mxu2 %v833_v3  ;;  %v1231_v3 = vld [vmem:[#allocation10 + $0xa0] sm:$0xff]  ;;  %1533 = vmatpush.msrb.mxu3 %v1450_v46 }
 0x187   : > { %v832_v62 = vmax.f32 %v791_v5, 0.0  ;;  %1323 = vmatpush.msra.mxu1 %v1231_v3  ;;  %v936_v57 = vpop.f32.mrf.mxu0  ;;  %v1429_v46 = vld [vmem:[#allocation11 + $0x120] sm:$0xff] }
 0x189   : > { %1021 = vmatmul.f32.gmra.mxu1 %v832_v62  ;;  %1151 = vmatmul.f32.gmra.mxu3 %v832_v62  ;;  %v728_v18 = vpop.f32.mrf.mxu2 }
 0x18a   : > { %v729_v12 = vadd.f32 %v728_v18, %v2948_v38  ;;  %v1451_v18 = vld [vmem:[#allocation11 + $0x1d0] sm:$0xff] }
 0x18c   : > { %v793_v54 = vpop.f32.mrf.mxu3 }
 0x18d   : > { %v794_v61 = vadd.f32 %v793_v54, %v729_v12  ;;  %v937_v12 = vadd.f32 %v936_v57, %v3058_v27  ;;  %v1445_v54 = vld [vmem:[#allocation11 + $0x1a0] sm:$0xff] }
 0x18e   : > { %1092 = vmatmul.f32.gmra.mxu2 %v835_v10  ;;  %v1230_v10 = vld [vmem:[#allocation10 + $0x98] sm:$0xff] }
 0x18f   : > { %v834_v0 = vmax.f32 %v794_v61, 0.0  ;;  %1324 = vmatpush.msra.mxu1 %v1230_v10  ;;  %v939_v34 = vpop.f32.mrf.mxu0  ;;  %v1446_v61 = vld [vmem:[#allocation11 + $0x1a8] sm:$0xff]  ;;  %1469 = vmatpush.msrb.mxu2 %v1445_v54  ;;  %v1431_v54 = vld [vmem:[#allocation11 + $0x130] sm:$0xff] }
 0x190   : > { %1534 = vmatpush.msrb.mxu3 %v1446_v61  ;;  %v1442_v10 = vld [vmem:[#allocation11 + $0x188] sm:$0xff]  ;;  %v1432_v61 = vld [vmem:[#allocation11 + $0x138] sm:$0xff] }
 0x191   : > { %1024 = vmatmul.f32.gmra.mxu1 %v834_v0  ;;  %1154 = vmatmul.f32.gmra.mxu3 %v834_v0  ;;  %v731_v2 = vpop.f32.mrf.mxu2 }
 0x192   : > { %v732_v40 = vadd.f32 %v731_v2, %v2948_v38  ;;  %1535 = vmatpush.msrb.mxu3 %v1442_v10 }
 0x194   : > { %v796_v44 = vpop.f32.mrf.mxu3 }
 0x195   : > { %v797_v49 = vadd.f32 %v796_v44, %v732_v40 }
 0x196   : > { %1095 = vmatmul.f32.gmra.mxu2 %v837_v24  ;;  %v1229_v24 = vld [vmem:[#allocation10 + $0x90] sm:$0xff] }
 0x197   : > { %v836_v1 = vmax.f32 %v797_v49, 0.0  ;;  %1325 = vmatpush.msra.mxu1 %v1229_v24  ;;  %v942_v20 = vpop.f32.mrf.mxu0  ;;  %v1447_v49 = vld [vmem:[#allocation11 + $0x1b0] sm:$0xff] }
 0x199   : > { %1027 = vmatmul.f32.gmra.mxu1 %v836_v1  ;;  %1157 = vmatmul.f32.gmra.mxu3 %v836_v1  ;;  %v734_v30 = vpop.f32.mrf.mxu2  ;;  %v940_v1 = vadd.f32 %v939_v34, %v3058_v27 }
 0x19a   : > { %v735_v7 = vadd.f32 %v734_v30, %v2948_v38  ;;  %v1441_v30 = vld [vmem:[#allocation11 + $0x180] sm:$0xff] }
 0x19b   : > { %1470 = vmatpush.msrb.mxu2 %v1441_v30 }
 0x19c   : > { %v799_v55 = vpop.f32.mrf.mxu3 }
 0x19d   : > { %v800_v23 = vadd.f32 %v799_v55, %v735_v7 }
 0x19e   : > { %1098 = vmatmul.f32.gmra.mxu2 %v839_v45  ;;  %v1228_v45 = vld [vmem:[#allocation10 + $0x88] sm:$0xff] }
 0x19f   : > { %v838_v56 = vmax.f32 %v800_v23, 0.0  ;;  %1326 = vmatpush.msra.mxu1 %v1228_v45  ;;  %v945_v25 = vpop.f32.mrf.mxu0  ;;  %v1438_v45 = vld [vmem:[#allocation11 + $0x168] sm:$0xff] }
 0x1a0   : > { %1536 = vmatpush.msrb.mxu3 %v1438_v45  ;;  %v946_v34 = vadd.f32 %v945_v25, %v3058_v27 }
 0x1a1   : > { %1030 = vmatmul.f32.gmra.mxu1 %v838_v56  ;;  %1160 = vmatmul.f32.gmra.mxu3 %v838_v56  ;;  %v737_v50 = vpop.f32.mrf.mxu2 }
 0x1a2   : > { %v738_v47 = vadd.f32 %v737_v50, %v2948_v38  ;;  %1327 = vmatpush.msra.mxu1 %v1227_v48 }
 0x1a4   : > { %v802_v29 = vpop.f32.mrf.mxu3  ;;  %1662 = vmatpush.msrb.mxu1 %v1456_v63  ;;  %v1435_v63 = vld [vmem:[#allocation11 + $0x150] sm:$0xff] }
 0x1a5   : > { %v803_v26 = vadd.f32 %v802_v29, %v738_v47 }
 0x1a6   : > { %1101 = vmatmul.f32.gmra.mxu2 %v841_v42  ;;  %v1211_v42 = vld [vmem:[#allocation10] sm:$0xff] }
 0x1a7   : > { %v840_v53 = vmax.f32 %v803_v26, 0.0  ;;  %1262 = vmatpush.msra.mxu0 %v1211_v42  ;;  %v948_v7 = vpop.f32.mrf.mxu0  ;;  %v1443_v26 = vld [vmem:[#allocation11 + $0x190] sm:$0xff] }
 0x1a8   : > { %v949_v14 = vadd.f32 %v948_v7, %v3058_v27 }
 0x1a9   : > { %1033 = vmatmul.f32.gmra.mxu1 %v840_v53  ;;  %1163 = vmatmul.f32.gmra.mxu3 %v840_v53  ;;  %v740_v60 = vpop.f32.mrf.mxu2  ;;  %v943_v53 = vadd.f32 %v942_v20, %v3058_v27 }
 0x1aa   : > { %v741_v41 = vadd.f32 %v740_v60, %v2948_v38  ;;  %v1437_v60 = vld [vmem:[#allocation11 + $0x160] sm:$0xff] }
 0x1ab   : > { %1471 = vmatpush.msrb.mxu2 %v1437_v60 }
 0x1ac   : > { %v805_v39 = vpop.f32.mrf.mxu3 }
 0x1ad   : > { %v806_v8 = vadd.f32 %v805_v39, %v741_v41 }
 0x1ae   : > { %1104 = vmatmul.f32.gmra.mxu2 %v843_v58 }
 0x1af   : > { %v842_v32 = vmax.f32 %v806_v8, 0.0  ;;  %v951_v39 = vpop.f32.mrf.mxu0 }
 0x1b1   : > { %1036 = vmatmul.f32.gmra.mxu1 %v842_v32  ;;  %1166 = vmatmul.f32.gmra.mxu3 %v842_v32  ;;  %v743_v6 = vpop.f32.mrf.mxu2 }
 0x1b2   : > { %v744_v15 = vadd.f32 %v743_v6, %v2948_v38 }
 0x1b4   : > { %v808_v16 = vpop.f32.mrf.mxu3 }
 0x1b5   : > { %v809_v22 = vadd.f32 %v808_v16, %v744_v15  ;;  %v1439_v16 = vld [vmem:[#allocation11 + $0x170] sm:$0xff] }
 0x1b6   : > { %1107 = vmatmul.f32.gmra.mxu2 %v845_v52  ;;  %v1455_v52 = vld [vmem:[#allocation11 + $0x1f0] sm:$0xff] }
 0x1b7   : > { %v844_v4 = vmax.f32 %v809_v22, 0.0  ;;  %1597 = vmatpush.msrb.mxu0 %v1455_v52  ;;  %v1440_v22 = vld [vmem:[#allocation11 + $0x178] sm:$0xff] }
 0x1b9   : > { %1039 = vmatmul.f32.gmra.mxu1 %v844_v4  ;;  %1169 = vmatmul.f32.gmra.mxu3 %v844_v4  ;;  %v746_v17 = vpop.f32.mrf.mxu2  ;;  %v1433_v4 = vld [vmem:[#allocation11 + $0x140] sm:$0xff] }
 0x1ba   : > { %v747_v58 = vadd.f32 %v746_v17, %v2948_v38  ;;  %1598 = vmatpush.msrb.mxu0 %v1451_v18  ;;  %v1434_v17 = vld [vmem:[#allocation11 + $0x148] sm:$0xff]  ;;  %1472 = vmatpush.msrb.mxu2 %v1433_v4 }
 0x1bb   : > { %1537 = vmatpush.msrb.mxu3 %v1434_v17 }
 0x1bc   : > { %v811_v59 = vpop.f32.mrf.mxu3  ;;  %1599 = vmatpush.msrb.mxu0 %v1447_v49  ;;  %1473 = vmatpush.msrb.mxu2 %v1429_v46 }
 0x1bd   : > { %v812_v31 = vadd.f32 %v811_v59, %v747_v58 }
 0x1be   : > { %1110 = vmatmul.f32.gmra.mxu2 %v847_v43  ;;  %1600 = vmatpush.msrb.mxu0 %v1443_v26 }
 0x1bf   : > { %v846_v13 = vmax.f32 %v812_v31, 0.0 }
 0x1c0   : > { %1601 = vmatpush.msrb.mxu0 %v1439_v16 }
 0x1c1   : > { %1042 = vmatmul.f32.gmra.mxu1 %v846_v13  ;;  %1172 = vmatmul.f32.gmra.mxu3 %v846_v13  ;;  %v749_v33 = vpop.f32.mrf.mxu2  ;;  %v954_v13 = vpop.f32.mrf.mxu0 }
 0x1c2   : > { %v750_v51 = vadd.f32 %v749_v33, %v2948_v38  ;;  %v1452_v38 = vld [vmem:[#allocation11 + $0x1d8] sm:$0xff]  ;;  %1602 = vmatpush.msrb.mxu0 %v1435_v63 }
 0x1c3   : > { %1663 = vmatpush.msrb.mxu1 %v1452_v38 }
 0x1c4   : > { %v814_v37 = vpop.f32.mrf.mxu3  ;;  %1603 = vmatpush.msrb.mxu0 %v1431_v54 }
 0x1c5   : > { %v815_v5 = vadd.f32 %v814_v37, %v750_v51  ;;  %1664 = vmatpush.msrb.mxu1 %v1448_v19  ;;  %v1436_v51 = vld [vmem:[#allocation11 + $0x158] sm:$0xff]  ;;  %v1430_v37 = vld [vmem:[#allocation11 + $0x128] sm:$0xff] }
 0x1c6   : > { %1538 = vmatpush.msrb.mxu3 %v1430_v37 }
 0x1c7   : > { %v848_v43 = vmax.f32 %v815_v5, 0.0  ;;  %1665 = vmatpush.msrb.mxu1 %v1444_v21 }
 0x1c9   : > { %1045 = vmatmul.f32.gmra.mxu1 %v848_v43  ;;  %1175 = vmatmul.f32.gmra.mxu3 %v848_v43  ;;  %v1066_v62 = vpop.f32.mrf.mxu2 }
 0x1ca   : > { %v1067_v3 = vadd.f32 %v1066_v62, %v3061_v28  ;;  %1666 = vmatpush.msrb.mxu1 %v1440_v22 }
 0x1cc   : > { %1667 = vmatpush.msrb.mxu1 %v1436_v51 }
 0x1ce   : > { %v1001_v0 = vpop.f32.mrf.mxu1  ;;  %1668 = vmatpush.msrb.mxu1 %v1432_v61 }
 0x1cf   : > { %v1002_v2 = vadd.f32 %v1001_v0, %v937_v12  ;;  %v957_v0 = vpop.f32.mrf.mxu0 }
 0x1d1   : > { %v1179_v40 = vmax.f32 %v1002_v2, 0.0  ;;  %v1069_v44 = vpop.f32.mrf.mxu2  ;;  %v952_v2 = vadd.f32 %v951_v39, %v3058_v27  ;;  %v1423_v39 = vld [vmem:[#allocation11 + $0xf0] sm:$0xff] }
 0x1d2   : > { %v1070_v24 = vadd.f32 %v1069_v44, %v3061_v28 }
 0x1d3   : > { %1263 = vmatmul.f32.vlgmr.msra.gmra.mxu0 %v1179_v40  ;;  %v1426_v40 = vld [vmem:[#allocation11 + $0x108] sm:$0xff] }
 0x1d4   : > { %v1131_v55 = vpop.f32.mrf.mxu3  ;;  %1539 = vmatpush.msrb.mxu3 %v1426_v40 }
 0x1d5   : > { %v1132_v23 = vadd.f32 %v1131_v55, %v1067_v3  ;;  %v1425_v3 = vld [vmem:[#allocation11 + $0x100] sm:$0xff] }
 0x1d6   : > { %v1004_v35 = vpop.f32.mrf.mxu1  ;;  %1474 = vmatpush.msrb.mxu2 %v1425_v3 }
 0x1d7   : > { %v1180_v56 = vmax.f32 %v1132_v23, 0.0  ;;  %v1005_v50 = vadd.f32 %v1004_v35, %v940_v1  ;;  %v1427_v23 = vld [vmem:[#allocation11 + $0x110] sm:$0xff]  ;;  %v1428_v35 = vld [vmem:[#allocation11 + $0x118] sm:$0xff] }
 0x1d8   : > { %1604 = vmatpush.msrb.mxu0 %v1427_v23  ;;  %1669 = vmatpush.msrb.mxu1 %v1428_v35 }
 0x1d9   : > { %v1181_v47 = vmax.f32 %v1005_v50, 0.0  ;;  %1328 = vmatmul.f32.vlgmr.msra.gmra.mxu1 %v1180_v56  ;;  %v1072_v29 = vpop.f32.mrf.mxu2  ;;  %v955_v56 = vadd.f32 %v954_v13, %v3058_v27  ;;  %v1421_v50 = vld [vmem:[#allocation11 + $0xe0] sm:$0xff]  ;;  %v1414_v13 = vld [vmem:[#allocation11 + $0xa8] sm:$0xff] }
 0x1da   : > { %v1073_v42 = vadd.f32 %v1072_v29, %v3061_v28  ;;  %1475 = vmatpush.msrb.mxu2 %v1421_v50  ;;  %1605 = vmatpush.msrb.mxu0 %v1423_v39 }
 0x1db   : > { %1266 = vmatmul.f32.gmra.mxu0 %v1181_v47  ;;  %v960_v47 = vpop.f32.mrf.mxu0 }
 0x1dc   : > { %v1134_v41 = vpop.f32.mrf.mxu3 }
 0x1dd   : > { %v1135_v57 = vadd.f32 %v1134_v41, %v1070_v24  ;;  %v1422_v24 = vld [vmem:[#allocation11 + $0xe8] sm:$0xff] }
 0x1de   : > { %v1007_v8 = vpop.f32.mrf.mxu1  ;;  %1540 = vmatpush.msrb.mxu3 %v1422_v24 }
 0x1df   : > { %v1182_v32 = vmax.f32 %v1135_v57, 0.0  ;;  %v1008_v6 = vadd.f32 %v1007_v8, %v943_v53  ;;  %v1424_v8 = vld [vmem:[#allocation11 + $0xf8] sm:$0xff] }
 0x1e0   : > { %1670 = vmatpush.msrb.mxu1 %v1424_v8 }
 0x1e1   : > { %v1183_v48 = vmax.f32 %v1008_v6, 0.0  ;;  %1331 = vmatmul.f32.gmra.mxu1 %v1182_v32  ;;  %v1075_v15 = vpop.f32.mrf.mxu2  ;;  %v958_v32 = vadd.f32 %v957_v0, %v3058_v27  ;;  %v1417_v6 = vld [vmem:[#allocation11 + $0xc0] sm:$0xff] }
 0x1e2   : > { %v1076_v20 = vadd.f32 %v1075_v15, %v3061_v28  ;;  %1476 = vmatpush.msrb.mxu2 %v1417_v6 }
 0x1e3   : > { %1269 = vmatmul.f32.gmra.mxu0 %v1183_v48  ;;  %v963_v16 = vpop.f32.mrf.mxu0 }
 0x1e4   : > { %v1137_v58 = vpop.f32.mrf.mxu3 }
 0x1e5   : > { %v1138_v9 = vadd.f32 %v1137_v58, %v1073_v42  ;;  %v1418_v42 = vld [vmem:[#allocation11 + $0xc8] sm:$0xff] }
 0x1e6   : > { %v1010_v11 = vpop.f32.mrf.mxu1  ;;  %1541 = vmatpush.msrb.mxu3 %v1418_v42 }
 0x1e7   : > { %v1184_v59 = vmax.f32 %v1138_v9, 0.0  ;;  %v1011_v31 = vadd.f32 %v1010_v11, %v946_v34  ;;  %v1419_v11 = vld [vmem:[#allocation11 + $0xd0] sm:$0xff] }
 0x1e8   : > { %1606 = vmatpush.msrb.mxu0 %v1419_v11  ;;  %1542 = vmatpush.msrb.mxu3 %v1414_v13 }
 0x1e9   : > { %v1185_v33 = vmax.f32 %v1011_v31, 0.0  ;;  %1334 = vmatmul.f32.gmra.mxu1 %v1184_v59  ;;  %v1078_v52 = vpop.f32.mrf.mxu2  ;;  %v1420_v59 = vld [vmem:[#allocation11 + $0xd8] sm:$0xff]  ;;  %v1413_v31 = vld [vmem:[#allocation11 + $0xa0] sm:$0xff] }
 0x1ea   : > { %v1079_v38 = vadd.f32 %v1078_v52, %v3061_v28  ;;  %1671 = vmatpush.msrb.mxu1 %v1420_v59  ;;  %1477 = vmatpush.msrb.mxu2 %v1413_v31 }
 0x1eb   : > { %1272 = vmatmul.f32.gmra.mxu0 %v1185_v33  ;;  %v961_v33 = vadd.f32 %v960_v47, %v3058_v27  ;;  %v966_v46 = vpop.f32.mrf.mxu0 }
 0x1ec   : > { %v1140_v5 = vpop.f32.mrf.mxu3 }
 0x1ed   : > { %v1141_v36 = vadd.f32 %v1140_v5, %v1076_v20 }
 0x1ee   : > { %v1013_v43 = vpop.f32.mrf.mxu1 }
 0x1ef   : > { %v1186_v62 = vmax.f32 %v1141_v36, 0.0  ;;  %v1014_v18 = vadd.f32 %v1013_v43, %v949_v14  ;;  %v1415_v36 = vld [vmem:[#allocation11 + $0xb0] sm:$0xff]  ;;  %v1416_v43 = vld [vmem:[#allocation11 + $0xb8] sm:$0xff] }
 0x1f0   : > { %1607 = vmatpush.msrb.mxu0 %v1415_v36  ;;  %1672 = vmatpush.msrb.mxu1 %v1416_v43 }
 0x1f1   : > { %v1187_v25 = vmax.f32 %v1014_v18, 0.0  ;;  %1337 = vmatmul.f32.gmra.mxu1 %v1186_v62  ;;  %v1081_v12 = vpop.f32.mrf.mxu2  ;;  %v1409_v18 = vld [vmem:[#allocation11 + $0x80] sm:$0xff] }
 0x1f2   : > { %v1082_v10 = vadd.f32 %v1081_v12, %v3061_v28  ;;  %1478 = vmatpush.msrb.mxu2 %v1409_v18  ;;  %v964_v12 = vadd.f32 %v963_v16, %v3058_v27 }
 0x1f3   : > { %1275 = vmatmul.f32.gmra.mxu0 %v1187_v25 }
 0x1f4   : > { %v1143_v44 = vpop.f32.mrf.mxu3 }
 0x1f5   : > { %v1144_v49 = vadd.f32 %v1143_v44, %v1079_v38  ;;  %v1410_v38 = vld [vmem:[#allocation11 + $0x88] sm:$0xff]  ;;  %v1411_v44 = vld [vmem:[#allocation11 + $0x90] sm:$0xff] }
 0x1f6   : > { %v1016_v19 = vpop.f32.mrf.mxu1  ;;  %1543 = vmatpush.msrb.mxu3 %v1410_v38  ;;  %1608 = vmatpush.msrb.mxu0 %v1411_v44 }
 0x1f7   : > { %v1188_v1 = vmax.f32 %v1144_v49, 0.0  ;;  %v1017_v30 = vadd.f32 %v1016_v19, %v952_v2  ;;  %v1412_v49 = vld [vmem:[#allocation11 + $0x98] sm:$0xff]  ;;  %v969_v19 = vpop.f32.mrf.mxu0 }
 0x1f8   : > { %1673 = vmatpush.msrb.mxu1 %v1412_v49 }
 0x1f9   : > { %v1189_v7 = vmax.f32 %v1017_v30, 0.0  ;;  %1340 = vmatmul.f32.gmra.mxu1 %v1188_v1  ;;  %v1084_v55 = vpop.f32.mrf.mxu2  ;;  %v1405_v30 = vld [vmem:[#allocation11 + $0x60] sm:$0xff] }
 0x1fa   : > { %v1085_v45 = vadd.f32 %v1084_v55, %v3061_v28  ;;  %1479 = vmatpush.msrb.mxu2 %v1405_v30  ;;  %v967_v55 = vadd.f32 %v966_v46, %v3058_v27 }
 0x1fb   : > { %1278 = vmatmul.f32.gmra.mxu0 %v1189_v7 }
 0x1fc   : > { %v1146_v29 = vpop.f32.mrf.mxu3 }
 0x1fd   : > { %v1147_v26 = vadd.f32 %v1146_v29, %v1082_v10  ;;  %v1406_v10 = vld [vmem:[#allocation11 + $0x68] sm:$0xff]  ;;  %v1407_v29 = vld [vmem:[#allocation11 + $0x70] sm:$0xff] }
 0x1fe   : > { %v1019_v21 = vpop.f32.mrf.mxu1  ;;  %1544 = vmatpush.msrb.mxu3 %v1406_v10  ;;  %1609 = vmatpush.msrb.mxu0 %v1407_v29 }
 0x1ff   : > { %v1190_v53 = vmax.f32 %v1147_v26, 0.0  ;;  %v1020_v60 = vadd.f32 %v1019_v21, %v955_v56  ;;  %v1408_v26 = vld [vmem:[#allocation11 + $0x78] sm:$0xff] }
 0x200   : > { %1674 = vmatpush.msrb.mxu1 %v1408_v26 }
 0x201   : > { %v1191_v41 = vmax.f32 %v1020_v60, 0.0  ;;  %1343 = vmatmul.f32.gmra.mxu1 %v1190_v53  ;;  %v1087_v57 = vpop.f32.mrf.mxu2  ;;  %v1401_v53 = vld [vmem:[#allocation11 + $0x40] sm:$0xff]  ;;  %v1402_v60 = vld [vmem:[#allocation11 + $0x48] sm:$0xff] }
 0x202   : > { %v1088_v17 = vadd.f32 %v1087_v57, %v3061_v28  ;;  %1480 = vmatpush.msrb.mxu2 %v1401_v53  ;;  %1545 = vmatpush.msrb.mxu3 %v1402_v60  ;;  %v970_v57 = vadd.f32 %v969_v19, %v3058_v27 }
 0x203   : > { %1281 = vmatmul.f32.gmra.mxu0 %v1191_v41 }
 0x204   : > { %v1149_v48 = vpop.f32.mrf.mxu3 }
 0x205   : > { %v1150_v15 = vadd.f32 %v1149_v48, %v1085_v45  ;;  %v972_v45 = vpop.f32.mrf.mxu0  ;;  %v1403_v48 = vld [vmem:[#allocation11 + $0x50] sm:$0xff] }
 0x206   : > { %v1022_v22 = vpop.f32.mrf.mxu1  ;;  %1610 = vmatpush.msrb.mxu0 %v1403_v48 }
 0x207   : > { %v1192_v34 = vmax.f32 %v1150_v15, 0.0  ;;  %v1023_v4 = vadd.f32 %v1022_v22, %v958_v32  ;;  %v1404_v15 = vld [vmem:[#allocation11 + $0x58] sm:$0xff] }
 0x208   : > { %1675 = vmatpush.msrb.mxu1 %v1404_v15 }
 0x209   : > { %v1193_v58 = vmax.f32 %v1023_v4, 0.0  ;;  %1346 = vmatmul.f32.gmra.mxu1 %v1192_v34  ;;  %v1090_v9 = vpop.f32.mrf.mxu2  ;;  %v1397_v34 = vld [vmem:[#allocation11 + $0x20] sm:$0xff]  ;;  %v1398_v4 = vld [vmem:[#allocation11 + $0x28] sm:$0xff] }
 0x20a   : > { %v1091_v62 = vadd.f32 %v1090_v9, %v3061_v28  ;;  %1481 = vmatpush.msrb.mxu2 %v1397_v34  ;;  %1546 = vmatpush.msrb.mxu3 %v1398_v4 }
 0x20b   : > { %1284 = vmatmul.f32.gmra.mxu0 %v1193_v58  ;;  %v973_v58 = vadd.f32 %v972_v45, %v3058_v27  ;;  %v3097_v45 = vld [vmem:[%s3326_s6] ss:$0 sm:$0xff] }
 0x20c   : > { %v1152_v20 = vpop.f32.mrf.mxu3 }
 0x20d   : > { %v1153_v52 = vadd.f32 %v1152_v20, %v1088_v17  ;;  %v975_v11 = vpop.f32.mrf.mxu0 }
 0x20e   : > { %v1025_v63 = vpop.f32.mrf.mxu1 }
 0x20f   : > { %v1194_v51 = vmax.f32 %v1153_v52, 0.0  ;;  %v1026_v14 = vadd.f32 %v1025_v63, %v961_v33  ;;  %v1399_v33 = vld [vmem:[#allocation11 + $0x30] sm:$0xff]  ;;  %v1400_v52 = vld [vmem:[#allocation11 + $0x38] sm:$0xff]  ;;  %v1393_v63 = vld [vmem:[#allocation11] sm:$0xff] }
 0x210   : > { %1611 = vmatpush.msrb.mxu0 %v1399_v33  ;;  %1676 = vmatpush.msrb.mxu1 %v1400_v52 }
 0x211   : > { %v1195_v37 = vmax.f32 %v1026_v14, 0.0  ;;  %1349 = vmatmul.f32.gmra.mxu1 %v1194_v51  ;;  %v1093_v5 = vpop.f32.mrf.mxu2  ;;  %v1394_v51 = vld [vmem:[#allocation11 + $0x8] sm:$0xff]  ;;  %1482 = vmatpush.msrb.mxu2 %v1393_v63 }
 0x212   : > { %v1094_v1 = vadd.f32 %v1093_v5, %v3061_v28  ;;  %1547 = vmatpush.msrb.mxu3 %v1394_v51  ;;  %v976_v5 = vadd.f32 %v975_v11, %v3058_v27 }
 0x213   : > { %1287 = vmatmul.f32.gmra.mxu0 %v1195_v37 }
 0x214   : > { %v1155_v25 = vpop.f32.mrf.mxu3 }
 0x215   : > { %v1156_v54 = vadd.f32 %v1155_v25, %v1091_v62  ;;  %v978_v38 = vpop.f32.mrf.mxu0 }
 0x216   : > { %v1028_v61 = vpop.f32.mrf.mxu1 }
 0x217   : > { %v1196_v0 = vmax.f32 %v1156_v54, 0.0  ;;  %v1029_v2 = vadd.f32 %v1028_v61, %v964_v12  ;;  %v1395_v12 = vld [vmem:[#allocation11 + $0x10] sm:$0xff]  ;;  %v1396_v54 = vld [vmem:[#allocation11 + $0x18] sm:$0xff] }
 0x218   : > { %1612 = vmatpush.msrb.mxu0 %v1395_v12  ;;  %1677 = vmatpush.msrb.mxu1 %v1396_v54 }
 0x219   : > { %v1197_v3 = vmax.f32 %v1029_v2, 0.0  ;;  %1352 = vmatmul.f32.gmra.mxu1 %v1196_v0  ;;  %v1096_v40 = vpop.f32.mrf.mxu2  ;;  %v979_v2 = vadd.f32 %v978_v38, %v3058_v27 }
 0x21a   : > { %v1097_v21 = vadd.f32 %v1096_v40, %v3061_v28 }
 0x21b   : > { %1290 = vmatmul.f32.gmra.mxu0 %v1197_v3 }
 0x21c   : > { %v1158_v7 = vpop.f32.mrf.mxu3 }
 0x21d   : > { %v1159_v23 = vadd.f32 %v1158_v7, %v1094_v1  ;;  %v981_v30 = vpop.f32.mrf.mxu0 }
 0x21e   : > { %v1031_v35 = vpop.f32.mrf.mxu1 }
 0x21f   : > { %v1198_v56 = vmax.f32 %v1159_v23, 0.0  ;;  %v1032_v50 = vadd.f32 %v1031_v35, %v967_v55  ;;  %v982_v55 = vadd.f32 %v981_v30, %v3058_v27 }
 0x221   : > { %v1199_v24 = vmax.f32 %v1032_v50, 0.0  ;;  %1355 = vmatmul.f32.gmra.mxu1 %v1198_v56  ;;  %v1099_v47 = vpop.f32.mrf.mxu2 }
 0x222   : > { %v1100_v22 = vadd.f32 %v1099_v47, %v3061_v28 }
 0x223   : > { %1293 = vmatmul.f32.gmra.mxu0 %v1199_v24 }
 0x224   : > { %v1161_v41 = vpop.f32.mrf.mxu3 }
 0x225   : > { %v1162_v39 = vadd.f32 %v1161_v41, %v1097_v21 }
 0x226   : > { %v1034_v8 = vpop.f32.mrf.mxu1 }
 0x227   : > { %v1200_v32 = vmax.f32 %v1162_v39, 0.0  ;;  %v1035_v6 = vadd.f32 %v1034_v8, %v970_v57 }
 0x229   : > { %v1201_v42 = vmax.f32 %v1035_v6, 0.0  ;;  %1358 = vmatmul.f32.gmra.mxu1 %v1200_v32  ;;  %v1102_v16 = vpop.f32.mrf.mxu2 }
 0x22a   : > { %v1103_v14 = vadd.f32 %v1102_v16, %v3061_v28 }
 0x22b   : > { %1296 = vmatmul.f32.gmra.mxu0 %v1201_v42 }
 0x22c   : > { %v1164_v17 = vpop.f32.mrf.mxu3 }
 0x22d   : > { %v1165_v9 = vadd.f32 %v1164_v17, %v1100_v22 }
 0x22e   : > { %v1037_v59 = vpop.f32.mrf.mxu1 }
 0x22f   : > { %v1202_v31 = vmax.f32 %v1165_v9, 0.0  ;;  %v1038_v13 = vadd.f32 %v1037_v59, %v973_v58 }
 0x231   : > { %v1203_v20 = vmax.f32 %v1038_v13, 0.0  ;;  %1361 = vmatmul.f32.gmra.mxu1 %v1202_v31  ;;  %v1105_v46 = vpop.f32.mrf.mxu2 }
 0x232   : > { %v1106_v61 = vadd.f32 %v1105_v46, %v3061_v28 }
 0x233   : > { %1299 = vmatmul.f32.gmra.mxu0 %v1203_v20 }
 0x234   : > { %v1167_v37 = vpop.f32.mrf.mxu3 }
 0x235   : > { %v1168_v36 = vadd.f32 %v1167_v37, %v1103_v14 }
 0x236   : > { %v1040_v43 = vpop.f32.mrf.mxu1 }
 0x237   : > { %v1204_v62 = vmax.f32 %v1168_v36, 0.0  ;;  %v1041_v18 = vadd.f32 %v1040_v43, %v976_v5 }
 0x239   : > { %v1205_v25 = vmax.f32 %v1041_v18, 0.0  ;;  %1364 = vmatmul.f32.gmra.mxu1 %v1204_v62  ;;  %v1108_v40 = vpop.f32.mrf.mxu2 }
 0x23a   : > { %v1109_v10 = vadd.f32 %v1108_v40, %v3061_v28 }
 0x23b   : > { %1302 = vmatmul.f32.gmra.mxu0 %v1205_v25 }
 0x23c   : > { %v1170_v0 = vpop.f32.mrf.mxu3 }
 0x23d   : > { %v1171_v3 = vadd.f32 %v1170_v0, %v1106_v61 }
 0x23e   : > { %v1043_v44 = vpop.f32.mrf.mxu1 }
 0x23f   : > { %v1206_v49 = vmax.f32 %v1171_v3, 0.0  ;;  %v1044_v19 = vadd.f32 %v1043_v44, %v979_v2 }
 0x241   : > { %v1207_v1 = vmax.f32 %v1044_v19, 0.0  ;;  %1367 = vmatmul.f32.gmra.mxu1 %v1206_v49  ;;  %v1111_v24 = vpop.f32.mrf.mxu2 }
 0x242   : > { %v1112_v29 = vadd.f32 %v1111_v24, %v3061_v28 }
 0x243   : > { %1305 = vmatmul.f32.gmra.mxu0 %v1207_v1 }
 0x244   : > { %v1173_v7 = vpop.f32.mrf.mxu3 }
 0x245   : > { %v1174_v23 = vadd.f32 %v1173_v7, %v1109_v10 }
 0x246   : > { %v1046_v35 = vpop.f32.mrf.mxu1 }
 0x247   : > { %v1208_v56 = vmax.f32 %v1174_v23, 0.0  ;;  %v1047_v50 = vadd.f32 %v1046_v35, %v982_v55 }
 0x249   : > { %v1209_v47 = vmax.f32 %v1047_v50, 0.0  ;;  %1370 = vmatmul.f32.gmra.mxu1 %v1208_v56 }
 0x24b   : > { %1308 = vmatmul.f32.gmra.mxu0 %v1209_v47 }
 0x24c   : > { %v1176_v26 = vpop.f32.mrf.mxu3 }
 0x24d   : > { %v1177_v21 = vadd.f32 %v1176_v26, %v1112_v29 }
 0x24f   : > { %v1210_v53 = vmax.f32 %v1177_v21, 0.0 }
 0x250   : > { %v1264_v60 = vpop.f32.mrf.mxu0 }
 0x251   : > { %1373 = vmatmul.f32.gmra.mxu1 %v1210_v53  ;;  %v1265_v27 = vadd.f32 %v3097_v45, %v1264_v60 }
 0x256   : > { %v1329_v41 = vpop.f32.mrf.mxu1 }
 0x257   : > { %v1330_v57 = vadd.f32 %v1329_v41, %v1265_v27 }
 0x258   : > { %v1267_v39 = vpop.f32.mrf.mxu0 }
 0x259   : > { %v1377_v8 = vmax.f32 %v1330_v57, 0.0  ;;  %v1268_v28 = vadd.f32 %v3097_v45, %v1267_v39 }
 0x25b   : > { %1483 = vmatmul.f32.vlgmr.msrb.gmra.mxu2 %v1377_v8  ;;  %1548 = vmatmul.f32.vlgmr.msrb.gmra.mxu3 %v1377_v8 }
 0x25c   : > { %1613 = vmatmul.f32.vlgmr.msrb.gmra.mxu0 %v1377_v8  ;;  %1678 = vmatmul.f32.vlgmr.msrb.gmra.mxu1 %v1377_v8 }
 0x25e   : > { %v1332_v32 = vpop.f32.mrf.mxu1 }
 0x25f   : > { %v1333_v6 = vadd.f32 %v1332_v32, %v1268_v28 }
 0x260   : > { %v1270_v42 = vpop.f32.mrf.mxu0 }
 0x261   : > { %v1378_v48 = vmax.f32 %v1333_v6, 0.0  ;;  %v1271_v15 = vadd.f32 %v3097_v45, %v1270_v42 }
 0x263   : > { %1486 = vmatmul.f32.gmra.mxu2 %v1378_v48  ;;  %1551 = vmatmul.f32.gmra.mxu3 %v1378_v48 }
 0x264   : > { %1616 = vmatmul.f32.gmra.mxu0 %v1378_v48  ;;  %1681 = vmatmul.f32.gmra.mxu1 %v1378_v48 }
 0x266   : > { %v1335_v16 = vpop.f32.mrf.mxu1 }
 0x267   : > { %v1336_v22 = vadd.f32 %v1335_v16, %v1271_v15 }
 0x268   : > { %v1273_v34 = vpop.f32.mrf.mxu0 }
 0x269   : > { %v1379_v4 = vmax.f32 %v1336_v22, 0.0  ;;  %v1274_v17 = vadd.f32 %v3097_v45, %v1273_v34 }
 0x26b   : > { %1489 = vmatmul.f32.gmra.mxu2 %v1379_v4  ;;  %1554 = vmatmul.f32.gmra.mxu3 %v1379_v4 }
 0x26c   : > { %1619 = vmatmul.f32.gmra.mxu0 %v1379_v4  ;;  %1684 = vmatmul.f32.gmra.mxu1 %v1379_v4 }
 0x26e   : > { %v1338_v58 = vpop.f32.mrf.mxu1 }
 0x26f   : > { %v1339_v9 = vadd.f32 %v1338_v58, %v1274_v17  ;;  %v1457_v58 = vld [vmem:[%s3328_s8] sm:$0xf] }
 0x270   : > { %v1276_v11 = vpop.f32.mrf.mxu0 }
 0x271   : > { %v1380_v59 = vmax.f32 %v1339_v9, 0.0  ;;  %v1277_v31 = vadd.f32 %v3097_v45, %v1276_v11  ;;  %v3118_v9 = vperm.slane %v1457_v58, 2  ;;  %v3120_v11 = vperm.slane %v1457_v58, 3 }
 0x273   : > { %1492 = vmatmul.f32.gmra.mxu2 %v1380_v59  ;;  %1557 = vmatmul.f32.gmra.mxu3 %v1380_v59 }
 0x274   : > { %1622 = vmatmul.f32.gmra.mxu0 %v1380_v59  ;;  %1687 = vmatmul.f32.gmra.mxu1 %v1380_v59 }
 0x276   : > { %v1341_v13 = vpop.f32.mrf.mxu1 }
 0x277   : > { %v1342_v20 = vadd.f32 %v1341_v13, %v1277_v31 }
 0x278   : > { %v1279_v33 = vpop.f32.mrf.mxu0 }
 0x279   : > { %v1381_v52 = vmax.f32 %v1342_v20, 0.0  ;;  %v1280_v63 = vadd.f32 %v3097_v45, %v1279_v33  ;;  %v3125_v20 = vperm.slane %v1457_v58, 0  ;;  %v3127_v33 = vperm.slane %v1457_v58, 1 }
 0x27b   : > { %1495 = vmatmul.f32.gmra.mxu2 %v1381_v52  ;;  %1560 = vmatmul.f32.gmra.mxu3 %v1381_v52 }
 0x27c   : > { %1625 = vmatmul.f32.gmra.mxu0 %v1381_v52  ;;  %1690 = vmatmul.f32.gmra.mxu1 %v1381_v52 }
 0x27e   : > { %v1344_v51 = vpop.f32.mrf.mxu1 }
 0x27f   : > { %v1345_v14 = vadd.f32 %v1344_v51, %v1280_v63 }
 0x280   : > { %v1282_v46 = vpop.f32.mrf.mxu0 }
 0x281   : > { %v1382_v37 = vmax.f32 %v1345_v14, 0.0  ;;  %v1283_v5 = vadd.f32 %v3097_v45, %v1282_v46 }
 0x283   : > { %1498 = vmatmul.f32.gmra.mxu2 %v1382_v37  ;;  %1563 = vmatmul.f32.gmra.mxu3 %v1382_v37 }
 0x284   : > { %1628 = vmatmul.f32.gmra.mxu0 %v1382_v37  ;;  %1693 = vmatmul.f32.gmra.mxu1 %v1382_v37 }
 0x286   : > { %v1347_v36 = vpop.f32.mrf.mxu1 }
 0x287   : > { %v1348_v43 = vadd.f32 %v1347_v36, %v1283_v5 }
 0x288   : > { %v1285_v62 = vpop.f32.mrf.mxu0 }
 0x289   : > { %v1383_v18 = vmax.f32 %v1348_v43, 0.0  ;;  %v1286_v38 = vadd.f32 %v3097_v45, %v1285_v62 }
 0x28b   : > { %1501 = vmatmul.f32.gmra.mxu2 %v1383_v18  ;;  %1566 = vmatmul.f32.gmra.mxu3 %v1383_v18 }
 0x28c   : > { %1631 = vmatmul.f32.gmra.mxu0 %v1383_v18  ;;  %1696 = vmatmul.f32.gmra.mxu1 %v1383_v18 }
 0x28e   : > { %v1350_v25 = vpop.f32.mrf.mxu1 }
 0x28f   : > { %v1351_v12 = vadd.f32 %v1350_v25, %v1286_v38 }
 0x290   : > { %v1288_v54 = vpop.f32.mrf.mxu0 }
 0x291   : > { %v1384_v61 = vmax.f32 %v1351_v12, 0.0  ;;  %v1289_v0 = vadd.f32 %v3097_v45, %v1288_v54 }
 0x293   : > { %1504 = vmatmul.f32.gmra.mxu2 %v1384_v61  ;;  %1569 = vmatmul.f32.gmra.mxu3 %v1384_v61 }
 0x294   : > { %1634 = vmatmul.f32.gmra.mxu0 %v1384_v61  ;;  %1699 = vmatmul.f32.gmra.mxu1 %v1384_v61 }
 0x296   : > { %v1353_v2 = vpop.f32.mrf.mxu1 }
 0x297   : > { %v1354_v3 = vadd.f32 %v1353_v2, %v1289_v0 }
 0x298   : > { %v1291_v40 = vpop.f32.mrf.mxu0 }
 0x299   : > { %v1385_v44 = vmax.f32 %v1354_v3, 0.0  ;;  %v1292_v49 = vadd.f32 %v3097_v45, %v1291_v40 }
 0x29b   : > { %1507 = vmatmul.f32.gmra.mxu2 %v1385_v44  ;;  %1572 = vmatmul.f32.gmra.mxu3 %v1385_v44 }
 0x29c   : > { %1637 = vmatmul.f32.gmra.mxu0 %v1385_v44  ;;  %1702 = vmatmul.f32.gmra.mxu1 %v1385_v44 }
 0x29e   : > { %v1356_v19 = vpop.f32.mrf.mxu1 }
 0x29f   : > { %v1357_v1 = vadd.f32 %v1356_v19, %v1292_v49 }
 0x2a0   : > { %v1294_v30 = vpop.f32.mrf.mxu0 }
 0x2a1   : > { %v1386_v10 = vmax.f32 %v1357_v1, 0.0  ;;  %v1295_v7 = vadd.f32 %v3097_v45, %v1294_v30 }
 0x2a3   : > { %1510 = vmatmul.f32.gmra.mxu2 %v1386_v10  ;;  %1575 = vmatmul.f32.gmra.mxu3 %v1386_v10 }
 0x2a4   : > { %1640 = vmatmul.f32.gmra.mxu0 %v1386_v10  ;;  %1705 = vmatmul.f32.gmra.mxu1 %v1386_v10 }
 0x2a6   : > { %v1359_v55 = vpop.f32.mrf.mxu1 }
 0x2a7   : > { %v1360_v23 = vadd.f32 %v1359_v55, %v1295_v7 }
 0x2a8   : > { %v1297_v35 = vpop.f32.mrf.mxu0 }
 0x2a9   : > { %v1387_v56 = vmax.f32 %v1360_v23, 0.0  ;;  %v1298_v50 = vadd.f32 %v3097_v45, %v1297_v35 }
 0x2ab   : > { %1513 = vmatmul.f32.gmra.mxu2 %v1387_v56  ;;  %1578 = vmatmul.f32.gmra.mxu3 %v1387_v56 }
 0x2ac   : > { %1643 = vmatmul.f32.gmra.mxu0 %v1387_v56  ;;  %1708 = vmatmul.f32.gmra.mxu1 %v1387_v56 }
 0x2ae   : > { %v1362_v24 = vpop.f32.mrf.mxu1 }
 0x2af   : > { %v1363_v47 = vadd.f32 %v1362_v24, %v1298_v50 }
 0x2b0   : > { %v1300_v29 = vpop.f32.mrf.mxu0 }
 0x2b1   : > { %v1388_v26 = vmax.f32 %v1363_v47, 0.0  ;;  %v1301_v21 = vadd.f32 %v3097_v45, %v1300_v29 }
 0x2b3   : > { %1516 = vmatmul.f32.gmra.mxu2 %v1388_v26  ;;  %1581 = vmatmul.f32.gmra.mxu3 %v1388_v26 }
 0x2b4   : > { %1646 = vmatmul.f32.gmra.mxu0 %v1388_v26  ;;  %1711 = vmatmul.f32.gmra.mxu1 %v1388_v26 }
 0x2b6   : > { %v1365_v53 = vpop.f32.mrf.mxu1 }
 0x2b7   : > { %v1366_v60 = vadd.f32 %v1365_v53, %v1301_v21 }
 0x2b8   : > { %v1303_v27 = vpop.f32.mrf.mxu0 }
 0x2b9   : > { %v1389_v41 = vmax.f32 %v1366_v60, 0.0  ;;  %v1304_v57 = vadd.f32 %v3097_v45, %v1303_v27 }
 0x2bb   : > { %1519 = vmatmul.f32.gmra.mxu2 %v1389_v41  ;;  %1584 = vmatmul.f32.gmra.mxu3 %v1389_v41 }
 0x2bc   : > { %1649 = vmatmul.f32.gmra.mxu0 %v1389_v41  ;;  %1714 = vmatmul.f32.gmra.mxu1 %v1389_v41 }
 0x2be   : > { %v1368_v39 = vpop.f32.mrf.mxu1 }
 0x2bf   : > { %v1369_v8 = vadd.f32 %v1368_v39, %v1304_v57 }
 0x2c0   : > { %v1306_v28 = vpop.f32.mrf.mxu0 }
 0x2c1   : > { %v1390_v32 = vmax.f32 %v1369_v8, 0.0  ;;  %v1307_v6 = vadd.f32 %v3097_v45, %v1306_v28 }
 0x2c3   : > { %1522 = vmatmul.f32.gmra.mxu2 %v1390_v32  ;;  %1587 = vmatmul.f32.gmra.mxu3 %v1390_v32 }
 0x2c4   : > { %1652 = vmatmul.f32.gmra.mxu0 %v1390_v32  ;;  %1717 = vmatmul.f32.gmra.mxu1 %v1390_v32 }
 0x2c6   : > { %v1371_v42 = vpop.f32.mrf.mxu1 }
 0x2c7   : > { %v1372_v48 = vadd.f32 %v1371_v42, %v1307_v6 }
 0x2c8   : > { %v1309_v16 = vpop.f32.mrf.mxu0 }
 0x2c9   : > { %v1391_v15 = vmax.f32 %v1372_v48, 0.0  ;;  %v1310_v22 = vadd.f32 %v3097_v45, %v1309_v16 }
 0x2cb   : > { %1525 = vmatmul.f32.gmra.mxu2 %v1391_v15  ;;  %1590 = vmatmul.f32.gmra.mxu3 %v1391_v15 }
 0x2cc   : > { %1655 = vmatmul.f32.gmra.mxu0 %v1391_v15  ;;  %1720 = vmatmul.f32.gmra.mxu1 %v1391_v15 }
 0x2ce   : > { %v1374_v34 = vpop.f32.mrf.mxu1 }
 0x2cf   : > { %v1375_v4 = vadd.f32 %v1374_v34, %v1310_v22 }
 0x2d1   : > { %v1392_v17 = vmax.f32 %v1375_v4, 0.0 }
 0x2d3   : > { %1528 = vmatmul.f32.gmra.mxu2 %v1392_v17  ;;  %1593 = vmatmul.f32.gmra.mxu3 %v1392_v17 }
 0x2d4   : > { %1658 = vmatmul.f32.gmra.mxu0 %v1392_v17  ;;  %1723 = vmatmul.f32.gmra.mxu1 %v1392_v17 }
 0x2d9   : > { %v1614_v59 = vpop.f32.mrf.mxu0  ;;  %v1679_v31 = vpop.f32.mrf.mxu1 }
 0x2da   : > { %v1615_v45 = vadd.f32 %v1614_v59, %v3118_v9  ;;  %v1680_v13 = vadd.f32 %v1679_v31, %v3120_v11 }
 0x2dc   : > { %v1729_v52 = vmax.f32 %v1615_v45, 0.0  ;;  %v1730_v63 = vmax.f32 %v1680_v13, 0.0 }
 0x2de   : > { %1793 = vst [vmem:[%s3129_s30 + $0x10] sm:$0xff] %v1729_v52  ;;  %v1484_v51 = vpop.f32.mrf.mxu2  ;;  %v1549_v14 = vpop.f32.mrf.mxu3 }
 0x2df   : > { %1794 = vst [vmem:[%s3129_s30 + $0x18] sm:$0xff] %v1730_v63  ;;  %v1485_v46 = vadd.f32 %v1484_v51, %v3125_v20  ;;  %v1550_v37 = vadd.f32 %v1549_v14, %v3127_v33 }
 0x2e1   : > { %v1727_v5 = vmax.f32 %v1485_v46, 0.0  ;;  %v1728_v36 = vmax.f32 %v1550_v37, 0.0  ;;  %v1617_v43 = vpop.f32.mrf.mxu0  ;;  %v1682_v62 = vpop.f32.mrf.mxu1 }
 0x2e2   : > { %v1618_v18 = vadd.f32 %v1617_v43, %v3118_v9  ;;  %v1683_v38 = vadd.f32 %v1682_v62, %v3120_v11 }
 0x2e3   : > { %1791 = vst [vmem:[%s3129_s30] sm:$0xff] %v1727_v5 }
 0x2e4   : > { %1792 = vst [vmem:[%s3129_s30 + $0x8] sm:$0xff] %v1728_v36  ;;  %v1733_v25 = vmax.f32 %v1618_v18, 0.0  ;;  %v1734_v12 = vmax.f32 %v1683_v38, 0.0 }
 0x2e6   : > { %1797 = vst [vmem:[%s3129_s30 + $0x30] sm:$0xff] %v1733_v25  ;;  %v1487_v54 = vpop.f32.mrf.mxu2  ;;  %v1552_v61 = vpop.f32.mrf.mxu3 }
 0x2e7   : > { %1798 = vst [vmem:[%s3129_s30 + $0x38] sm:$0xff] %v1734_v12  ;;  %v1488_v0 = vadd.f32 %v1487_v54, %v3125_v20  ;;  %v1553_v2 = vadd.f32 %v1552_v61, %v3127_v33 }
 0x2e9   : > { %v1731_v3 = vmax.f32 %v1488_v0, 0.0  ;;  %v1732_v40 = vmax.f32 %v1553_v2, 0.0  ;;  %v1620_v44 = vpop.f32.mrf.mxu0  ;;  %v1685_v49 = vpop.f32.mrf.mxu1 }
 0x2ea   : > { %v1621_v19 = vadd.f32 %v1620_v44, %v3118_v9  ;;  %v1686_v1 = vadd.f32 %v1685_v49, %v3120_v11 }
 0x2eb   : > { %1795 = vst [vmem:[%s3129_s30 + $0x20] sm:$0xff] %v1731_v3 }
 0x2ec   : > { %1796 = vst [vmem:[%s3129_s30 + $0x28] sm:$0xff] %v1732_v40  ;;  %v1737_v30 = vmax.f32 %v1621_v19, 0.0  ;;  %v1738_v10 = vmax.f32 %v1686_v1, 0.0 }
 0x2ee   : > { %1801 = vst [vmem:[%s3129_s30 + $0x50] sm:$0xff] %v1737_v30  ;;  %v1490_v7 = vpop.f32.mrf.mxu2  ;;  %v1555_v55 = vpop.f32.mrf.mxu3 }
 0x2ef   : > { %1802 = vst [vmem:[%s3129_s30 + $0x58] sm:$0xff] %v1738_v10  ;;  %v1491_v23 = vadd.f32 %v1490_v7, %v3125_v20  ;;  %v1556_v35 = vadd.f32 %v1555_v55, %v3127_v33 }
 0x2f1   : > { %v1735_v56 = vmax.f32 %v1491_v23, 0.0  ;;  %v1736_v50 = vmax.f32 %v1556_v35, 0.0  ;;  %v1623_v24 = vpop.f32.mrf.mxu0  ;;  %v1688_v47 = vpop.f32.mrf.mxu1 }
 0x2f2   : > { %v1624_v29 = vadd.f32 %v1623_v24, %v3118_v9  ;;  %v1689_v26 = vadd.f32 %v1688_v47, %v3120_v11 }
 0x2f3   : > { %1799 = vst [vmem:[%s3129_s30 + $0x40] sm:$0xff] %v1735_v56 }
 0x2f4   : > { %1800 = vst [vmem:[%s3129_s30 + $0x48] sm:$0xff] %v1736_v50  ;;  %v1741_v21 = vmax.f32 %v1624_v29, 0.0  ;;  %v1742_v53 = vmax.f32 %v1689_v26, 0.0 }
 0x2f6   : > { %1805 = vst [vmem:[%s3129_s30 + $0x70] sm:$0xff] %v1741_v21  ;;  %v1493_v60 = vpop.f32.mrf.mxu2  ;;  %v1558_v27 = vpop.f32.mrf.mxu3 }
 0x2f7   : > { %1806 = vst [vmem:[%s3129_s30 + $0x78] sm:$0xff] %v1742_v53  ;;  %v1494_v41 = vadd.f32 %v1493_v60, %v3125_v20  ;;  %v1559_v57 = vadd.f32 %v1558_v27, %v3127_v33 }
 0x2f9   : > { %v1739_v39 = vmax.f32 %v1494_v41, 0.0  ;;  %v1740_v8 = vmax.f32 %v1559_v57, 0.0  ;;  %v1626_v28 = vpop.f32.mrf.mxu0  ;;  %v1691_v32 = vpop.f32.mrf.mxu1 }
 0x2fa   : > { %v1627_v6 = vadd.f32 %v1626_v28, %v3118_v9  ;;  %v1692_v42 = vadd.f32 %v1691_v32, %v3120_v11 }
 0x2fb   : > { %1803 = vst [vmem:[%s3129_s30 + $0x60] sm:$0xff] %v1739_v39 }
 0x2fc   : > { %1804 = vst [vmem:[%s3129_s30 + $0x68] sm:$0xff] %v1740_v8  ;;  %v1745_v48 = vmax.f32 %v1627_v6, 0.0  ;;  %v1746_v15 = vmax.f32 %v1692_v42, 0.0 }
 0x2fe   : > { %1809 = vst [vmem:[%s3129_s30 + $0x90] sm:$0xff] %v1745_v48  ;;  %v1496_v16 = vpop.f32.mrf.mxu2  ;;  %v1561_v22 = vpop.f32.mrf.mxu3 }
 0x2ff   : > { %1810 = vst [vmem:[%s3129_s30 + $0x98] sm:$0xff] %v1746_v15  ;;  %v1497_v34 = vadd.f32 %v1496_v16, %v3125_v20  ;;  %v1562_v4 = vadd.f32 %v1561_v22, %v3127_v33 }
 0x301   : > { %v1743_v17 = vmax.f32 %v1497_v34, 0.0  ;;  %v1744_v58 = vmax.f32 %v1562_v4, 0.0  ;;  %v1629_v59 = vpop.f32.mrf.mxu0  ;;  %v1694_v31 = vpop.f32.mrf.mxu1 }
 0x302   : > { %v1630_v45 = vadd.f32 %v1629_v59, %v3118_v9  ;;  %v1695_v13 = vadd.f32 %v1694_v31, %v3120_v11 }
 0x303   : > { %1807 = vst [vmem:[%s3129_s30 + $0x80] sm:$0xff] %v1743_v17 }
 0x304   : > { %1808 = vst [vmem:[%s3129_s30 + $0x88] sm:$0xff] %v1744_v58  ;;  %v1749_v52 = vmax.f32 %v1630_v45, 0.0  ;;  %v1750_v63 = vmax.f32 %v1695_v13, 0.0 }
 0x306   : > { %1813 = vst [vmem:[%s3129_s30 + $0xb0] sm:$0xff] %v1749_v52  ;;  %v1499_v51 = vpop.f32.mrf.mxu2  ;;  %v1564_v14 = vpop.f32.mrf.mxu3 }
 0x307   : > { %1814 = vst [vmem:[%s3129_s30 + $0xb8] sm:$0xff] %v1750_v63  ;;  %v1500_v46 = vadd.f32 %v1499_v51, %v3125_v20  ;;  %v1565_v37 = vadd.f32 %v1564_v14, %v3127_v33 }
 0x309   : > { %v1747_v5 = vmax.f32 %v1500_v46, 0.0  ;;  %v1748_v36 = vmax.f32 %v1565_v37, 0.0  ;;  %v1632_v43 = vpop.f32.mrf.mxu0  ;;  %v1697_v62 = vpop.f32.mrf.mxu1 }
 0x30a   : > { %v1633_v18 = vadd.f32 %v1632_v43, %v3118_v9  ;;  %v1698_v38 = vadd.f32 %v1697_v62, %v3120_v11 }
 0x30b   : > { %1811 = vst [vmem:[%s3129_s30 + $0xa0] sm:$0xff] %v1747_v5 }
 0x30c   : > { %1812 = vst [vmem:[%s3129_s30 + $0xa8] sm:$0xff] %v1748_v36  ;;  %v1753_v25 = vmax.f32 %v1633_v18, 0.0  ;;  %v1754_v12 = vmax.f32 %v1698_v38, 0.0 }
 0x30e   : > { %1817 = vst [vmem:[%s3129_s30 + $0xd0] sm:$0xff] %v1753_v25  ;;  %v1502_v54 = vpop.f32.mrf.mxu2  ;;  %v1567_v61 = vpop.f32.mrf.mxu3 }
 0x30f   : > { %1818 = vst [vmem:[%s3129_s30 + $0xd8] sm:$0xff] %v1754_v12  ;;  %v1503_v0 = vadd.f32 %v1502_v54, %v3125_v20  ;;  %v1568_v2 = vadd.f32 %v1567_v61, %v3127_v33 }
 0x311   : > { %v1751_v3 = vmax.f32 %v1503_v0, 0.0  ;;  %v1752_v40 = vmax.f32 %v1568_v2, 0.0  ;;  %v1635_v44 = vpop.f32.mrf.mxu0  ;;  %v1700_v49 = vpop.f32.mrf.mxu1 }
 0x312   : > { %v1636_v19 = vadd.f32 %v1635_v44, %v3118_v9  ;;  %v1701_v1 = vadd.f32 %v1700_v49, %v3120_v11 }
 0x313   : > { %1815 = vst [vmem:[%s3129_s30 + $0xc0] sm:$0xff] %v1751_v3 }
 0x314   : > { %1816 = vst [vmem:[%s3129_s30 + $0xc8] sm:$0xff] %v1752_v40  ;;  %v1757_v30 = vmax.f32 %v1636_v19, 0.0  ;;  %v1758_v10 = vmax.f32 %v1701_v1, 0.0 }
 0x316   : > { %1821 = vst [vmem:[%s3129_s30 + $0xf0] sm:$0xff] %v1757_v30  ;;  %v1505_v7 = vpop.f32.mrf.mxu2  ;;  %v1570_v55 = vpop.f32.mrf.mxu3 }
 0x317   : > { %1822 = vst [vmem:[%s3129_s30 + $0xf8] sm:$0xff] %v1758_v10  ;;  %v1506_v23 = vadd.f32 %v1505_v7, %v3125_v20  ;;  %v1571_v35 = vadd.f32 %v1570_v55, %v3127_v33 }
 0x319   : > { %v1755_v56 = vmax.f32 %v1506_v23, 0.0  ;;  %v1756_v50 = vmax.f32 %v1571_v35, 0.0  ;;  %v1638_v24 = vpop.f32.mrf.mxu0  ;;  %v1703_v47 = vpop.f32.mrf.mxu1 }
 0x31a   : > { %v1639_v29 = vadd.f32 %v1638_v24, %v3118_v9  ;;  %v1704_v26 = vadd.f32 %v1703_v47, %v3120_v11 }
 0x31b   : > { %1819 = vst [vmem:[%s3129_s30 + $0xe0] sm:$0xff] %v1755_v56 }
 0x31c   : > { %1820 = vst [vmem:[%s3129_s30 + $0xe8] sm:$0xff] %v1756_v50  ;;  %v1761_v21 = vmax.f32 %v1639_v29, 0.0  ;;  %v1762_v53 = vmax.f32 %v1704_v26, 0.0 }
 0x31e   : > { %1825 = vst [vmem:[%s3129_s30 + $0x110] sm:$0xff] %v1761_v21  ;;  %v1508_v60 = vpop.f32.mrf.mxu2  ;;  %v1573_v27 = vpop.f32.mrf.mxu3 }
 0x31f   : > { %1826 = vst [vmem:[%s3129_s30 + $0x118] sm:$0xff] %v1762_v53  ;;  %v1509_v41 = vadd.f32 %v1508_v60, %v3125_v20  ;;  %v1574_v57 = vadd.f32 %v1573_v27, %v3127_v33 }
 0x321   : > { %v1759_v39 = vmax.f32 %v1509_v41, 0.0  ;;  %v1760_v8 = vmax.f32 %v1574_v57, 0.0  ;;  %v1641_v28 = vpop.f32.mrf.mxu0  ;;  %v1706_v32 = vpop.f32.mrf.mxu1 }
 0x322   : > { %v1642_v6 = vadd.f32 %v1641_v28, %v3118_v9  ;;  %v1707_v42 = vadd.f32 %v1706_v32, %v3120_v11 }
 0x323   : > { %1823 = vst [vmem:[%s3129_s30 + $0x100] sm:$0xff] %v1759_v39 }
 0x324   : > { %1824 = vst [vmem:[%s3129_s30 + $0x108] sm:$0xff] %v1760_v8  ;;  %v1765_v48 = vmax.f32 %v1642_v6, 0.0  ;;  %v1766_v15 = vmax.f32 %v1707_v42, 0.0 }
 0x326   : > { %1829 = vst [vmem:[%s3129_s30 + $0x130] sm:$0xff] %v1765_v48  ;;  %v1511_v16 = vpop.f32.mrf.mxu2  ;;  %v1576_v22 = vpop.f32.mrf.mxu3 }
 0x327   : > { %1830 = vst [vmem:[%s3129_s30 + $0x138] sm:$0xff] %v1766_v15  ;;  %v1512_v34 = vadd.f32 %v1511_v16, %v3125_v20  ;;  %v1577_v4 = vadd.f32 %v1576_v22, %v3127_v33 }
 0x329   : > { %v1763_v17 = vmax.f32 %v1512_v34, 0.0  ;;  %v1764_v58 = vmax.f32 %v1577_v4, 0.0  ;;  %v1644_v59 = vpop.f32.mrf.mxu0  ;;  %v1709_v31 = vpop.f32.mrf.mxu1 }
 0x32a   : > { %v1645_v45 = vadd.f32 %v1644_v59, %v3118_v9  ;;  %v1710_v13 = vadd.f32 %v1709_v31, %v3120_v11 }
 0x32b   : > { %1827 = vst [vmem:[%s3129_s30 + $0x120] sm:$0xff] %v1763_v17 }
 0x32c   : > { %1828 = vst [vmem:[%s3129_s30 + $0x128] sm:$0xff] %v1764_v58  ;;  %v1769_v52 = vmax.f32 %v1645_v45, 0.0  ;;  %v1770_v63 = vmax.f32 %v1710_v13, 0.0 }
 0x32e   : > { %1833 = vst [vmem:[%s3129_s30 + $0x150] sm:$0xff] %v1769_v52  ;;  %v1514_v51 = vpop.f32.mrf.mxu2  ;;  %v1579_v14 = vpop.f32.mrf.mxu3 }
 0x32f   : > { %1834 = vst [vmem:[%s3129_s30 + $0x158] sm:$0xff] %v1770_v63  ;;  %v1515_v46 = vadd.f32 %v1514_v51, %v3125_v20  ;;  %v1580_v37 = vadd.f32 %v1579_v14, %v3127_v33 }
 0x331   : > { %v1767_v5 = vmax.f32 %v1515_v46, 0.0  ;;  %v1768_v36 = vmax.f32 %v1580_v37, 0.0  ;;  %v1647_v43 = vpop.f32.mrf.mxu0  ;;  %v1712_v62 = vpop.f32.mrf.mxu1 }
 0x332   : > { %v1648_v18 = vadd.f32 %v1647_v43, %v3118_v9  ;;  %v1713_v38 = vadd.f32 %v1712_v62, %v3120_v11 }
 0x333   : > { %1831 = vst [vmem:[%s3129_s30 + $0x140] sm:$0xff] %v1767_v5 }
 0x334   : > { %1832 = vst [vmem:[%s3129_s30 + $0x148] sm:$0xff] %v1768_v36  ;;  %v1773_v25 = vmax.f32 %v1648_v18, 0.0  ;;  %v1774_v12 = vmax.f32 %v1713_v38, 0.0 }
 0x336   : > { %1837 = vst [vmem:[%s3129_s30 + $0x170] sm:$0xff] %v1773_v25  ;;  %v1517_v54 = vpop.f32.mrf.mxu2  ;;  %v1582_v61 = vpop.f32.mrf.mxu3 }
 0x337   : > { %1838 = vst [vmem:[%s3129_s30 + $0x178] sm:$0xff] %v1774_v12  ;;  %v1518_v0 = vadd.f32 %v1517_v54, %v3125_v20  ;;  %v1583_v2 = vadd.f32 %v1582_v61, %v3127_v33 }
 0x339   : > { %v1771_v3 = vmax.f32 %v1518_v0, 0.0  ;;  %v1772_v40 = vmax.f32 %v1583_v2, 0.0  ;;  %v1650_v44 = vpop.f32.mrf.mxu0  ;;  %v1715_v49 = vpop.f32.mrf.mxu1 }
 0x33a   : > { %v1651_v19 = vadd.f32 %v1650_v44, %v3118_v9  ;;  %v1716_v1 = vadd.f32 %v1715_v49, %v3120_v11 }
 0x33b   : > { %1835 = vst [vmem:[%s3129_s30 + $0x160] sm:$0xff] %v1771_v3 }
 0x33c   : > { %1836 = vst [vmem:[%s3129_s30 + $0x168] sm:$0xff] %v1772_v40  ;;  %v1777_v30 = vmax.f32 %v1651_v19, 0.0  ;;  %v1778_v10 = vmax.f32 %v1716_v1, 0.0 }
 0x33e   : > { %1841 = vst [vmem:[%s3129_s30 + $0x190] sm:$0xff] %v1777_v30  ;;  %v1520_v7 = vpop.f32.mrf.mxu2  ;;  %v1585_v55 = vpop.f32.mrf.mxu3 }
 0x33f   : > { %1842 = vst [vmem:[%s3129_s30 + $0x198] sm:$0xff] %v1778_v10  ;;  %v1521_v23 = vadd.f32 %v1520_v7, %v3125_v20  ;;  %v1586_v35 = vadd.f32 %v1585_v55, %v3127_v33 }
 0x341   : > { %v1775_v56 = vmax.f32 %v1521_v23, 0.0  ;;  %v1776_v50 = vmax.f32 %v1586_v35, 0.0  ;;  %v1653_v24 = vpop.f32.mrf.mxu0  ;;  %v1718_v47 = vpop.f32.mrf.mxu1 }
 0x342   : > { %v1654_v29 = vadd.f32 %v1653_v24, %v3118_v9  ;;  %v1719_v26 = vadd.f32 %v1718_v47, %v3120_v11 }
 0x343   : > { %1839 = vst [vmem:[%s3129_s30 + $0x180] sm:$0xff] %v1775_v56 }
 0x344   : > { %1840 = vst [vmem:[%s3129_s30 + $0x188] sm:$0xff] %v1776_v50  ;;  %v1781_v21 = vmax.f32 %v1654_v29, 0.0  ;;  %v1782_v53 = vmax.f32 %v1719_v26, 0.0 }
 0x346   : > { %1845 = vst [vmem:[%s3129_s30 + $0x1b0] sm:$0xff] %v1781_v21  ;;  %v1523_v60 = vpop.f32.mrf.mxu2  ;;  %v1588_v27 = vpop.f32.mrf.mxu3 }
 0x347   : > { %1846 = vst [vmem:[%s3129_s30 + $0x1b8] sm:$0xff] %v1782_v53  ;;  %v1524_v41 = vadd.f32 %v1523_v60, %v3125_v20  ;;  %v1589_v57 = vadd.f32 %v1588_v27, %v3127_v33 }
 0x349   : > { %v1779_v39 = vmax.f32 %v1524_v41, 0.0  ;;  %v1780_v8 = vmax.f32 %v1589_v57, 0.0  ;;  %v1656_v28 = vpop.f32.mrf.mxu0  ;;  %v1721_v32 = vpop.f32.mrf.mxu1 }
 0x34a   : > { %v1657_v6 = vadd.f32 %v1656_v28, %v3118_v9  ;;  %v1722_v42 = vadd.f32 %v1721_v32, %v3120_v11 }
 0x34b   : > { %1843 = vst [vmem:[%s3129_s30 + $0x1a0] sm:$0xff] %v1779_v39 }
 0x34c   : > { %1844 = vst [vmem:[%s3129_s30 + $0x1a8] sm:$0xff] %v1780_v8  ;;  %v1785_v48 = vmax.f32 %v1657_v6, 0.0  ;;  %v1786_v15 = vmax.f32 %v1722_v42, 0.0 }
 0x34e   : > { %1849 = vst [vmem:[%s3129_s30 + $0x1d0] sm:$0xff] %v1785_v48  ;;  %v1526_v16 = vpop.f32.mrf.mxu2  ;;  %v1591_v22 = vpop.f32.mrf.mxu3 }
 0x34f   : > { %1850 = vst [vmem:[%s3129_s30 + $0x1d8] sm:$0xff] %v1786_v15  ;;  %v1527_v34 = vadd.f32 %v1526_v16, %v3125_v20  ;;  %v1592_v4 = vadd.f32 %v1591_v22, %v3127_v33 }
 0x351   : > { %v1783_v17 = vmax.f32 %v1527_v34, 0.0  ;;  %v1784_v58 = vmax.f32 %v1592_v4, 0.0  ;;  %v1659_v59 = vpop.f32.mrf.mxu0  ;;  %v1724_v31 = vpop.f32.mrf.mxu1 }
 0x352   : > { %v1660_v45 = vadd.f32 %v1659_v59, %v3118_v9  ;;  %v1725_v13 = vadd.f32 %v1724_v31, %v3120_v11 }
 0x353   : > { %1847 = vst [vmem:[%s3129_s30 + $0x1c0] sm:$0xff] %v1783_v17 }
 0x354   : > { %1848 = vst [vmem:[%s3129_s30 + $0x1c8] sm:$0xff] %v1784_v58  ;;  %v1789_v52 = vmax.f32 %v1660_v45, 0.0  ;;  %v1790_v63 = vmax.f32 %v1725_v13, 0.0 }
 0x356   : > { %1853 = vst [vmem:[%s3129_s30 + $0x1f0] sm:$0xff] %v1789_v52  ;;  %v1529_v51 = vpop.f32.mrf.mxu2  ;;  %v1594_v14 = vpop.f32.mrf.mxu3 }
 0x357   : > { %1854 = vst [vmem:[%s3129_s30 + $0x1f8] sm:$0xff] %v1790_v63  ;;  %v1530_v46 = vadd.f32 %v1529_v51, %v3125_v20  ;;  %v1595_v37 = vadd.f32 %v1594_v14, %v3127_v33 }
 0x358   : > { %1862 = sbr.rel (!%p2575_p11) target bundleno = 892 (0x37c), region = 84 }
 0x359   : > { %v1787_v5 = vmax.f32 %v1530_v46, 0.0  ;;  %v1788_v36 = vmax.f32 %v1595_v37, 0.0 }
 0x35b   : > { %1851 = vst [vmem:[%s3129_s30 + $0x1e0] sm:$0xff] %v1787_v5 }
 0x35c   : > { %1852 = vst [vmem:[%s3129_s30 + $0x1e8] sm:$0xff] %v1788_v36 }
 0x35d   : > { %s3375_s15 = smov (!%p1865_p6, %s1864_s15), 16 }
 0x35e   : > { %s2040_s28 = sshll.u32 %s3375_s15, 5 }
 0x35f   : > { %s1869_s27 = ssub.s32 512, %s2040_s28 }
 0x360   : > { %s1870_s22 = sshll.u32 %s1869_s27, 4 }
 0x361   : > { %1871 = vsyncadd %s1856_s16, %s1870_s22  ;;  %p3266_p10 = scmp.ne.s32.totalorder %s2040_s28, 0  ;;  %s2042_s24 = sshll.u32 %s2544_s13, 9 }
 0x362   : > { %s3362_s29 = sld [smem:[#allocation26_spill]]  ;;  %s1877_s20 = sshll.u32 %s3129_s30, 4  ;;  %s3275_s20 = int_to_ptr.vmem [resolvable:$true] %s1877_s20 }
 0x363   : > { %s2034_s25 = sshll.u32 %s3375_s15, 9  ;;  %s2365_s1 = sshra.s32 %s3275_s20, 4  ;;  %s2366_s1 = int_to_ptr.vmem [resolvable:$true] %s2365_s1 }
 0x364   : > { %s2367_s19 = sshrl.u32 %s2034_s25, 4  ;;  %s2470_s13 = smov [#allocation13]  }
 0x365   : > { %s2372_s17 = scalar_lea.vmem %s2366_s1, %s2367_s19  ;;  %s2376_s3 = scalar_lea.vmem %s2470_s13, 1024 }
 0x366   : > { %p2373_p11 = scmp.ne.s32.totalorder %s2366_s1, %s2372_s17  ;;  %p2378_p3 = scmp.lt.s32.totalorder %s2376_s3, %s2372_s17 }
 0x368   : > { %s1875_s14 = scalar_lea.hbm %s3362_s29, %s2042_s24  ;;  %p2374_p1 = pnand %p2373_p11, %p3266_p10 }
 0x369   : > { %s1879_s23 = sshll.u32 %s1875_s14, 4  ;;  %s3277_s23 = int_to_ptr.hbm [resolvable:$true] %s1879_s23 }
 0x36a   : > { %p2375_p0 = pneg %p2374_p1 }
 0x36c   : > { %p2380_p7 = pnand %p2378_p3, %p2375_p0 }
 0x36e   : > { %2383 = shalt.err (!%p2380_p7)
}
 0x36f   : > { %s2384_s30 = sshra.s32 %s3277_s23, 4  ;;  %s2395_s22 = scalar_lea.hbm %s3362_s29, 800  ;;  %s2385_s30 = int_to_ptr.hbm [resolvable:$true] %s2384_s30 }
 0x370   : > { %s2391_s26 = scalar_lea.hbm %s2385_s30, %s2367_s19  ;;  %p2396_p13 = scmp.lt.s32.totalorder %s2385_s30, %s3362_s29 }
 0x371   : > { %p2392_p8 = scmp.ne.s32.totalorder %s2385_s30, %s2391_s26  ;;  %p2397_p2 = scmp.lt.s32.totalorder %s2395_s22, %s2391_s26 }
 0x373   : > { %p2393_p4 = pnand %p2392_p8, %p3266_p10  ;;  %p2398_p5 = por %p2397_p2, %p2396_p13 }
 0x375   : > { %p2394_p12 = pneg %p2393_p4 }
 0x377   : > { %p2399_p9 = pnand %p2398_p5, %p2394_p12 }
 0x379   : > { %2402 = shalt.err (!%p2399_p9)
}
 0x37a   : > { %s2471_s9 = smov 512   ;;  %s2472_s14 = smov 32  }
 0x37b   : > { %1885 = dma.vmem_to_hbm [thread:$0]  (%p3266_p10), %s3275_s20, %s2034_s25, %s3277_s23, %s1856_s16, %s2471_s9, %s2471_s9, %s2472_s14  }
 0x37c PF: > { %s3363_s1 = sld [smem:[#allocation19_spill]]  ;;  %p3366_p11 = scmp.ge.s32.totalorder %s2454_s12, 2 }
 0x37d   : > { %s3364_s19 = sld [smem:[#allocation22_spill]] }
 0x382   : > { %s1894_s17 = sand.u32 1, %s3363_s1  }
 0x383   : > { %p3365_p6 = scmp.ne.s32.totalorder %s3364_s19, 0  ;;  %s1895_s13 = scalar_lea.sflag [#allocation4], %s1894_s17 }
 0x385   : > { %p2114_p1 = pnand %p3366_p11, %p3365_p6 }
 0x387   : > { %p2115_p0 = pneg %p2114_p1 }
 0x389   : > { %2437 = dma.done.wait (%p2115_p0), %s1895_s13, 8192  }
 0x38a   : > { %2439 = vsyncadd (%p2115_p0), %s1895_s13, 4294959104  ;;  %s3367_s12 = sld [smem:[#allocation20_spill]]  ;;  %s3369_s30 = smov %s2446_s10 }
 0x38b   : > { %s3368_s21 = sld [smem:[#allocation21_spill]]  ;;  %s3370_s10 = smov %s2450_s11 }
 0x390   : > { %p25_p3 = scmp.ge.s32.totalorder %s3367_s12, 4  }
 0x391   : > { %s3371_s11 = smov %s3368_s21 }
 0x392   :  { %27 = sbr.rel (!%p25_p3) target bundleno = 13 (0xd), region = 121 }
 0x397   :  { %1901 = vsyncpa [#allocation3], 1 }
 0x398   :  { %1903 = vsyncpa [#allocation3 + $0x1], 1 }
 0x399   :  { %1904 = vsyncpa [#allocation6], 1 }
 0x39a   :  { %1905 = vsyncpa [#allocation9], 1 }
 0x39b   :  { %1906 = vsyncpa [#allocation12], 1 }
 0x39c   :  { %1907 = vsyncpa [#allocation4], 1 }
 0x39d   :  { %1909 = vsyncpa [#allocation4 + $0x1], 1 }

// kernel: discrete_actor_forward.1
= control target key start
LH: loop header
LB: loop body
LE: loop exit
PB: predicated region body
PF: predicated region fallthrough
CT: control target
= control target key end

     0   :  { %s3320_s0 = inlined_call_operand.hbm [shape: f32[200,256], index: 0, kind: input, shape index: {}]   ;;  %s3321_s1 = inlined_call_operand.hbm [shape: f32[256,256], index: 1, kind: input, shape index: {}]   ;;  %s3322_s2 = inlined_call_operand.hbm [shape: f32[1,256], index: 2, kind: input, shape index: {}]   ;;  %s3323_s3 = inlined_call_operand.hbm [shape: f32[256,256], index: 3, kind: input, shape index: {}]   ;;  %s3324_s4 = inlined_call_operand.vmem [shape: f32[1,256], index: 4, kind: input, shape index: {}]   ;;  %s3325_s5 = inlined_call_operand.hbm [shape: f32[256,128], index: 5, kind: input, shape index: {}]   ;;  %s3326_s6 = inlined_call_operand.vmem [shape: f32[1,128], index: 6, kind: input, shape index: {}]   ;;  %s3327_s7 = inlined_call_operand.hbm [shape: f32[128,512], index: 7, kind: input, shape index: {}]   ;;  %s3328_s8 = inlined_call_operand.vmem [shape: f32[1,512], index: 8, kind: input, shape index: {}]   ;;  %s3329_s9 = inlined_call_operand.hbm [shape: f32[200,512], index: 9, kind: output, shape index: {}]  }
   0x1   :  { %3337 = sst [smem:[#allocation23_spill]] %s3321_s1 }
   0x2   :  { %3338 = sst [smem:[#allocation24_spill]] %s3322_s2 }
   0x3   :  { %3339 = sst [smem:[#allocation25_spill]] %s3323_s3 }
   0x4   :  { %3340 = sst [smem:[#allocation26_spill]] %s3329_s9 }
   0x5   :  { %14 = vsyncpa [#allocation3], 0 }
   0x6   :  { %16 = vsyncpa [#allocation3 + $0x1], 0 }
   0x7   :  { %17 = vsyncpa [#allocation6], 0 }
   0x8   :  { %18 = vsyncpa [#allocation9], 0 }
   0x9   :  { %19 = vsyncpa [#allocation12], 0 }
   0xa   :  { %20 = vsyncpa [#allocation4], 0 }
   0xb   :  { %22 = vsyncpa [#allocation4 + $0x1], 0  ;;  %s2523_s30 = smov 0   ;;  %s2525_s10 = smov 0  }
   0xc   :  { %s2527_s11 = smov 0   ;;  %s2529_s12 = smov 0  }
   0xd LB: > { %3341 = sst [smem:[#allocation19_spill]] %s2442_s30  ;;  %s2544_s13 = sadd.s32 4294967295, %s2454_s12   ;;  %s2454_s12 = sphi %s2529_s12, %s3367_s12   ;;  %s2450_s11 = sphi %s2527_s11, %s3371_s11   ;;  %s2446_s10 = sphi %s2525_s10, %s3370_s10   ;;  %s2442_s30 = sphi %s2523_s30, %s3369_s30  }
   0xe   : > { %s2001_s14 = sadd.s32 4294967294, %s2454_s12   ;;  %s2548_s15 = sadd.s32 1, %s2454_s12  }
   0xf   : > { %3342 = sst [smem:[#allocation20_spill]] %s2548_s15  ;;  %s35_s16 = sadd.s32 1, %s2450_s11 }
  0x10   : > { %s32_s17 = ssub.s32 %s2454_s12, %s2548_s15  ;;  %p42_p0 = scmp.ne.s32.totalorder %s2450_s11, %s2446_s10 }
  0x11   : > { %p33_p1 = scmp.eq.s32.totalorder %s32_s17, 0  ;;  %p43_p2 = scmp.eq.s32.totalorder %s2454_s12, 0 }
  0x12   : > { %p48_p3 = scmp.ne.s32.totalorder %s2446_s10, %s2442_s30  ;;  %p3336_p4 = scmp.eq.s32.totalorder %s2544_s13, 0 }
  0x13   : > { %s2560_s18 = scalar_select %p33_p1, %s2450_s11, %s35_s16  }
  0x14   : > { %p2562_p5 = por %p43_p2, %p42_p0  ;;  %p2568_p6 = por %p3336_p4, %p48_p3 }
  0x15   : > { %3343 = sst [smem:[#allocation21_spill]] %s2560_s18  ;;  %p240_p7 = scmp.eq.s32.totalorder %s2544_s13, 1 }
  0x16   : > { %p246_p8 = scmp.eq.s32.totalorder %s2001_s14, 1  ;;  %p2002_p9 = scmp.ge.s32.totalorder %s2454_s12, 1 }
  0x17   : > { %p253_p10 = scmp.lt.s32.totalorder %s2454_s12, 3  ;;  %p2575_p11 = por %p240_p7, %p42_p0 }
  0x18   : > { %p2579_p12 = por %p246_p8, %p48_p3  ;;  %s3350_s1 = sld [smem:[#allocation23_spill]] }
  0x19   : > { %p2583_p13 = pnand %p2002_p9, %p253_p10  ;;  %s2456_s27 = smov [#allocation5]  }
  0x1a   : > { %s3347_s22 = scalar_select %p2579_p12, 1, 0 }
  0x1b   : > { %p2097_p1 = pneg %p2583_p13  ;;  %s266_s28 = sshll.u32 %s2456_s27, 4  ;;  %s267_s28 = int_to_ptr.vmem [resolvable:$true] %s266_s28 }
  0x1c   : > { %3348 = sst [smem:[#allocation22_spill]] %s3347_s22  ;;  %s2457_s24 = smov 256  }
  0x1d   : > { %p2594_p0 = pnand %p2097_p1, %p3336_p4  ;;  %s3352_s3 = sld [smem:[#allocation25_spill]] }
  0x1e   : > { %s264_s26 = sshll.u32 %s3350_s1, 4  ;;  %s2458_s25 = smov 16   ;;  %s265_s26 = int_to_ptr.hbm [resolvable:$true] %s264_s26 }
  0x1f   : > { %2100 = dma.hbm_to_vmem [thread:$0]  (!%p2594_p0), %s265_s26, 8192, %s267_s28, [#allocation6], %s2457_s24, %s2457_s24, %s2458_s25  }
  0x20   : > { %s3353_s2 = sld [smem:[#allocation24_spill]]  ;;  %s2459_s15 = smov [#allocation8]  }
  0x21   : > { %s292_s22 = sshll.u32 %s2459_s15, 4  ;;  %s2460_s14 = smov [#allocation7]   ;;  %s293_s22 = int_to_ptr.vmem [resolvable:$true] %s292_s22 }
  0x22   : > { %s281_s16 = sshll.u32 %s2460_s14, 4  ;;  %s307_s9 = sshll.u32 %s3325_s5, 4  ;;  %s282_s16 = int_to_ptr.vmem [resolvable:$true] %s281_s16  ;;  %s308_s9 = int_to_ptr.hbm [resolvable:$true] %s307_s9 }
  0x23   : > { %s290_s17 = sshll.u32 %s3352_s3, 4  ;;  %s2461_s1 = smov [#allocation10]   ;;  %s291_s17 = int_to_ptr.hbm [resolvable:$true] %s290_s17 }
  0x24   : > { %2106 = dma.hbm_to_vmem [thread:$0]  (!%p2594_p0), %s291_s17, 8192, %s293_s22, [#allocation9], %s2457_s24, %s2457_s24, %s2458_s25  }
  0x25   : > { %s309_s26 = sshll.u32 %s2461_s1, 4  ;;  %s324_s27 = sshll.u32 %s3327_s7, 4  ;;  %s310_s26 = int_to_ptr.vmem [resolvable:$true] %s309_s26  ;;  %s325_s27 = int_to_ptr.hbm [resolvable:$true] %s324_s27 }
  0x26   : > { %s279_s18 = sshll.u32 %s3353_s2, 4  ;;  %s2462_s2 = smov 128   ;;  %s280_s18 = int_to_ptr.hbm [resolvable:$true] %s279_s18 }
  0x27   : > { %2103 = dma.hbm_to_vmem [thread:$0]  (!%p2594_p0), %s280_s18, 32, %s282_s16, [#allocation6]  }
  0x28   : > { %s2463_s22 = smov 8   ;;  %s2464_s17 = smov [#allocation11]  }
  0x29   : > { %2109 = dma.hbm_to_vmem [thread:$0]  (!%p2594_p0), %s308_s9, 4096, %s310_s26, [#allocation9], %s2462_s2, %s2462_s2, %s2463_s22  }
  0x2a   : > { %s326_s3 = sshll.u32 %s2464_s17, 4  ;;  %s2465_s30 = smov 512   ;;  %s327_s3 = int_to_ptr.vmem [resolvable:$true] %s326_s3 }
  0x2b   : > { %s2466_s24 = smov 32   ;;  %p3335_p2 = scmp.ge.s32.totalorder %s2454_s12, 2 }
  0x2c   : > { %2112 = dma.hbm_to_vmem [thread:$0]  (!%p2594_p0), %s325_s27, 8192, %s327_s3, [#allocation12], %s2465_s30, %s2465_s30, %s2466_s24  }
  0x2d   : > { %339 = sbr.rel (%p3335_p2) target bundleno = 86 (0x56), region = 48 }
  0x32   : > { %342 = sbr.rel (!%p2562_p5) target bundleno = 86 (0x56), region = 52  ;;  %s343_s18 = sand.u32 (%p2562_p5), 1, %s2450_s11  }
  0x33   : > { %s2010_s2 = sshll.u32 (%p2562_p5), %s2454_s12, 4  ;;  %s2009_s9 = sshll.u32 (%p2562_p5), %s343_s18, 8 }
  0x34   : > { %s349_s25 = ssub.s32 (%p2562_p5), 25, %s2010_s2  ;;  %s2630_s1 = scalar_lea.sflag (%p2562_p5), [#allocation3], %s343_s18 }
  0x35   : > { %p350_p3 = scmp.lt.s32.totalorder (%p2562_p5), %s349_s25, 16  ;;  %s347_s26 = scalar_lea.vmem (%p2562_p5), [#allocation2], %s2009_s9 }
  0x37   : > { %s3373_s25 = smov (!%p350_p3, %s349_s25), 16 }
  0x38   : > { %s2037_s29 = sshll.u32 %s3373_s25, 4 }
  0x39   : > { %s354_s14 = ssub.s32 256, %s2037_s29 }
  0x3a   : > { %s355_s16 = sshll.u32 %s354_s14, 4 }
  0x3b   : > { %356 = vsyncadd %s2630_s1, %s355_s16  ;;  %p2633_p5 = scmp.ne.s32.totalorder %s2037_s29, 0  ;;  %s2039_s15 = sshll.u32 %s2454_s12, 8 }
  0x3c   : > { %s360_s22 = scalar_lea.hbm %s3320_s0, %s2039_s15  ;;  %s2641_s17 = sshll.u32 %s347_s26, 4  ;;  %s365_s17 = int_to_ptr.vmem [resolvable:$true] %s2641_s17 }
  0x3d   : > { %s362_s3 = sshll.u32 %s360_s22, 4  ;;  %s2017_s30 = sshll.u32 %s3373_s25, 8  ;;  %s2644_s3 = int_to_ptr.hbm [resolvable:$true] %s362_s3 }
  0x3e   : > { %s2326_s24 = sshra.s32 %s2644_s3, 4  ;;  %s2328_s18 = sshrl.u32 %s2017_s30, 4  ;;  %s2327_s24 = int_to_ptr.hbm [resolvable:$true] %s2326_s24 }
  0x3f   : > { %s2333_s2 = scalar_lea.hbm %s2327_s24, %s2328_s18  ;;  %s2337_s14 = scalar_lea.hbm %s3320_s0, 400 }
  0x40   : > { %p2334_p7 = scmp.ne.s32.totalorder %s2327_s24, %s2333_s2  ;;  %p2338_p10 = scmp.lt.s32.totalorder %s2327_s24, %s3320_s0 }
  0x41   : > { %p2339_p1 = scmp.lt.s32.totalorder %s2337_s14, %s2333_s2 }
  0x42   : > { %p2335_p8 = pnand %p2334_p7, %p2633_p5 }
  0x43   : > { %p2340_p0 = por %p2339_p1, %p2338_p10 }
  0x44   : > { %p2336_p9 = pneg %p2335_p8 }
  0x46   : > { %p2341_p3 = pnand %p2340_p0, %p2336_p9 }
  0x48   : > { %2344 = shalt.err (!%p2341_p3)
}
  0x49   : > { %s2345_s15 = sshra.s32 %s365_s17, 4  ;;  %s2467_s27 = smov [#allocation2]   ;;  %s2346_s15 = int_to_ptr.vmem [resolvable:$true] %s2345_s15 }
  0x4a   : > { %s2352_s28 = scalar_lea.vmem %s2346_s15, %s2328_s18  ;;  %s2356_s22 = scalar_lea.vmem %s2467_s27, 512 }
  0x4b   : > { %p2353_p7 = scmp.ne.s32.totalorder %s2346_s15, %s2352_s28  ;;  %p2358_p4 = scmp.lt.s32.totalorder %s2356_s22, %s2352_s28 }
  0x4d   : > { %p2354_p8 = pnand %p2353_p7, %p2633_p5 }
  0x4f   : > { %p2355_p2 = pneg %p2354_p8 }
  0x51   : > { %p2360_p12 = pnand %p2358_p4, %p2355_p2 }
  0x53   : > { %2363 = shalt.err (!%p2360_p12)
}
  0x54   : > { %s2468_s24 = smov 256   ;;  %s2469_s2 = smov 16  }
  0x55   : > { %370 = dma.hbm_to_vmem [thread:$0]  (%p2633_p5), %s2644_s3, %s2017_s30, %s365_s17, %s2630_s1, %s2468_s24, %s2468_s24, %s2469_s2  }
  0x56 PF: > { %376 = sbr.rel (%p2583_p13) target bundleno = 892 (0x37c), region = 56  ;;  %s2673_s18 = sand.u32 (!%p2583_p13), 1, %s2446_s10  }
  0x57   : > { %s2019_s9 = sshll.u32 (!%p2583_p13), %s2673_s18, 8  ;;  %s379_s29 = scalar_lea.sflag (!%p2583_p13), [#allocation3], %s2673_s18 }
  0x58   : > { %s2677_s14 = scalar_lea.vmem (!%p2583_p13), [#allocation2], %s2019_s9 }
  0x5b   : > { %2421 = dma.done.wait (%p2568_p6), %s379_s29, 4096  }
  0x5c   : > { %2423 = vsyncadd (%p2568_p6), %s379_s29, 4294963200  ;;  %p3355_p4 = scmp.eq.s32.totalorder %s2544_s13, 0 }
  0x5e   : > { %2425 = dma.done.wait (%p3355_p4), [#allocation6], 8224   ;;  %p3356_p12 = pmov %p3355_p4 }
  0x5f   : > { %p3357_p13 = pmov %p3355_p4 }
  0x60   : > { %2427 = vsyncadd (%p3356_p12), [#allocation6], 4294959072 }
  0x61   : > { %2429 = dma.done.wait (%p3357_p13), [#allocation9], 12288   ;;  %p3358_p2 = pmov %p3355_p4 }
  0x63   : > { %2431 = vsyncadd (%p3358_p2), [#allocation9], 4294955008  ;;  %p3359_p5 = pmov %p3358_p2 }
  0x64   : > { %p3360_p9 = pmov %p3358_p2 }
  0x65   : > { %2433 = dma.done.wait (%p3359_p5), [#allocation12], 8192  }
  0x66   : > { %2435 = vsyncadd (%p3360_p9), [#allocation12], 4294959104  ;;  %v517_v0 = vld [vmem:[#allocation5 + $0xf0] sm:$0xff]  ;;  %v515_v1 = vld [vmem:[#allocation5 + $0xe0] sm:$0xff]  ;;  %s2025_s3 = sshll.u32 %s2673_s18, 9  ;;  %s1856_s16 = scalar_lea.sflag [#allocation4], %s2673_s18 }
  0x67   : > { %v549_v2 = vld [vmem:[#allocation5 + $0x1f0] sm:$0xff]  ;;  %557 = vmatpush.msra.mxu0 %v517_v0  ;;  %2043 = vmatpush.msra.mxu2 %v517_v0  ;;  %v547_v3 = vld [vmem:[#allocation5 + $0x1e0] sm:$0xff]  ;;  %v518_v33 = vld [vmem:[#allocation5 + $0xf8] sm:$0xff]  ;;  %s3129_s30 = scalar_lea.vmem [#allocation13], %s2025_s3  ;;  %s2027_s26 = sshll.u32 (%p2575_p11), %s2544_s13, 4 }
  0x68   : > { %622 = vmatpush.msra.mxu1 %v549_v2  ;;  %2059 = vmatpush.msra.mxu3 %v549_v2  ;;  %v513_v4 = vld [vmem:[#allocation5 + $0xd0] sm:$0xff]  ;;  %v511_v6 = vld [vmem:[#allocation5 + $0xc0] sm:$0xff]  ;;  %v2702_v35 = vld [vmem:[%s2677_s14 + $0x8] sm:$0xff]  ;;  %s1864_s15 = ssub.s32 (%p2575_p11), 25, %s2027_s26 }
  0x69   : > { %558 = vmatpush.msra.mxu0 %v515_v1  ;;  %2044 = vmatpush.msra.mxu2 %v515_v1  ;;  %v545_v5 = vld [vmem:[#allocation5 + $0x1d0] sm:$0xff]  ;;  %v543_v7 = vld [vmem:[#allocation5 + $0x1c0] sm:$0xff]  ;;  %v2707_v36 = vld [vmem:[%s2677_s14 + $0x88] sm:$0xff]  ;;  %p1865_p6 = scmp.lt.s32.totalorder (%p2575_p11), %s1864_s15, 16 }
  0x6a   : > { %623 = vmatpush.msra.mxu1 %v547_v3  ;;  %2060 = vmatpush.msra.mxu3 %v547_v3  ;;  %v509_v8 = vld [vmem:[#allocation5 + $0xb0] sm:$0xff]  ;;  %v507_v10 = vld [vmem:[#allocation5 + $0xa0] sm:$0xff]  ;;  %v516_v37 = vld [vmem:[#allocation5 + $0xe8] sm:$0xff] }
  0x6b   : > { %559 = vmatpush.msra.mxu0 %v513_v4  ;;  %2045 = vmatpush.msra.mxu2 %v513_v4  ;;  %v541_v9 = vld [vmem:[#allocation5 + $0x1b0] sm:$0xff]  ;;  %v539_v11 = vld [vmem:[#allocation5 + $0x1a0] sm:$0xff]  ;;  %v550_v38 = vld [vmem:[#allocation5 + $0x1f8] sm:$0xff] }
  0x6c   : > { %624 = vmatpush.msra.mxu1 %v545_v5  ;;  %2061 = vmatpush.msra.mxu3 %v545_v5  ;;  %v505_v12 = vld [vmem:[#allocation5 + $0x90] sm:$0xff]  ;;  %v503_v14 = vld [vmem:[#allocation5 + $0x80] sm:$0xff]  ;;  %v514_v39 = vld [vmem:[#allocation5 + $0xd8] sm:$0xff] }
  0x6d   : > { %560 = vmatpush.msra.mxu0 %v511_v6  ;;  %2046 = vmatpush.msra.mxu2 %v511_v6  ;;  %v537_v13 = vld [vmem:[#allocation5 + $0x190] sm:$0xff]  ;;  %v535_v15 = vld [vmem:[#allocation5 + $0x180] sm:$0xff]  ;;  %v548_v40 = vld [vmem:[#allocation5 + $0x1e8] sm:$0xff] }
  0x6e   : > { %625 = vmatpush.msra.mxu1 %v543_v7  ;;  %2062 = vmatpush.msra.mxu3 %v543_v7  ;;  %v501_v16 = vld [vmem:[#allocation5 + $0x70] sm:$0xff]  ;;  %v499_v18 = vld [vmem:[#allocation5 + $0x60] sm:$0xff]  ;;  %v512_v41 = vld [vmem:[#allocation5 + $0xc8] sm:$0xff] }
  0x6f   : > { %561 = vmatpush.msra.mxu0 %v509_v8  ;;  %2047 = vmatpush.msra.mxu2 %v509_v8  ;;  %v533_v17 = vld [vmem:[#allocation5 + $0x170] sm:$0xff]  ;;  %v531_v19 = vld [vmem:[#allocation5 + $0x160] sm:$0xff]  ;;  %v546_v44 = vld [vmem:[#allocation5 + $0x1d8] sm:$0xff] }
  0x70   : > { %626 = vmatpush.msra.mxu1 %v541_v9  ;;  %2063 = vmatpush.msra.mxu3 %v541_v9  ;;  %v497_v20 = vld [vmem:[#allocation5 + $0x50] sm:$0xff]  ;;  %v495_v22 = vld [vmem:[#allocation5 + $0x40] sm:$0xff]  ;;  %v510_v45 = vld [vmem:[#allocation5 + $0xb8] sm:$0xff] }
  0x71   : > { %562 = vmatpush.msra.mxu0 %v507_v10  ;;  %2048 = vmatpush.msra.mxu2 %v507_v10  ;;  %v529_v21 = vld [vmem:[#allocation5 + $0x150] sm:$0xff]  ;;  %v527_v23 = vld [vmem:[#allocation5 + $0x140] sm:$0xff]  ;;  %v2718_v46 = vld [vmem:[%s2677_s14 + $0x18] sm:$0xff] }
  0x72   : > { %627 = vmatpush.msra.mxu1 %v539_v11  ;;  %2064 = vmatpush.msra.mxu3 %v539_v11  ;;  %v493_v24 = vld [vmem:[#allocation5 + $0x30] sm:$0xff]  ;;  %v491_v26 = vld [vmem:[#allocation5 + $0x20] sm:$0xff]  ;;  %v2723_v47 = vld [vmem:[%s2677_s14 + $0x98] sm:$0xff] }
  0x73   : > { %563 = vmatpush.msra.mxu0 %v505_v12  ;;  %2049 = vmatpush.msra.mxu2 %v505_v12  ;;  %v525_v25 = vld [vmem:[#allocation5 + $0x130] sm:$0xff]  ;;  %v523_v27 = vld [vmem:[#allocation5 + $0x120] sm:$0xff]  ;;  %v508_v48 = vld [vmem:[#allocation5 + $0xa8] sm:$0xff] }
  0x74   : > { %628 = vmatpush.msra.mxu1 %v537_v13  ;;  %2065 = vmatpush.msra.mxu3 %v537_v13  ;;  %v489_v28 = vld [vmem:[#allocation5 + $0x10] sm:$0xff]  ;;  %v487_v30 = vld [vmem:[#allocation5] sm:$0xff]  ;;  %v544_v49 = vld [vmem:[#allocation5 + $0x1c8] sm:$0xff] }
  0x75   : > { %564 = vmatpush.msra.mxu0 %v503_v14  ;;  %2050 = vmatpush.msra.mxu2 %v503_v14  ;;  %v521_v29 = vld [vmem:[#allocation5 + $0x110] sm:$0xff]  ;;  %v2696_v31 = vld [vmem:[%s2677_s14] sm:$0xff]  ;;  %v506_v50 = vld [vmem:[#allocation5 + $0x98] sm:$0xff] }
  0x76   : > { %629 = vmatpush.msra.mxu1 %v535_v15  ;;  %2066 = vmatpush.msra.mxu3 %v535_v15  ;;  %v2699_v32 = vld [vmem:[%s2677_s14 + $0x80] sm:$0xff]  ;;  %v2712_v42 = vld [vmem:[%s2677_s14 + $0x10] sm:$0xff]  ;;  %v542_v51 = vld [vmem:[#allocation5 + $0x1b8] sm:$0xff] }
  0x77   : > { %565 = vmatpush.msra.mxu0 %v501_v16  ;;  %2051 = vmatpush.msra.mxu2 %v501_v16  ;;  %v519_v34 = vld [vmem:[#allocation5 + $0x100] sm:$0xff]  ;;  %v2715_v43 = vld [vmem:[%s2677_s14 + $0x90] sm:$0xff]  ;;  %v504_v52 = vld [vmem:[#allocation5 + $0x88] sm:$0xff] }
  0x78   : > { %630 = vmatpush.msra.mxu1 %v533_v17  ;;  %2067 = vmatpush.msra.mxu3 %v533_v17  ;;  %v2728_v53 = vld [vmem:[%s2677_s14 + $0x20] sm:$0xff]  ;;  %v540_v55 = vld [vmem:[#allocation5 + $0x1a8] sm:$0xff]  ;;  %v502_v56 = vld [vmem:[#allocation5 + $0x78] sm:$0xff] }
  0x79   : > { %566 = vmatpush.msra.mxu0 %v499_v18  ;;  %2052 = vmatpush.msra.mxu2 %v499_v18  ;;  %v2731_v54 = vld [vmem:[%s2677_s14 + $0xa0] sm:$0xff]  ;;  %v2734_v57 = vld [vmem:[%s2677_s14 + $0x28] sm:$0xff]  ;;  %v538_v60 = vld [vmem:[#allocation5 + $0x198] sm:$0xff] }
  0x7a   : > { %631 = vmatpush.msra.mxu1 %v531_v19  ;;  %2068 = vmatpush.msra.mxu3 %v531_v19  ;;  %v2739_v58 = vld [vmem:[%s2677_s14 + $0xa8] sm:$0xff]  ;;  %v498_v61 = vld [vmem:[#allocation5 + $0x58] sm:$0xff]  ;;  %v2744_v0 = vld [vmem:[%s2677_s14 + $0x30] sm:$0xff] }
  0x7b   : > { %567 = vmatpush.msra.mxu0 %v497_v20  ;;  %2053 = vmatpush.msra.mxu2 %v497_v20  ;;  %v500_v59 = vld [vmem:[#allocation5 + $0x68] sm:$0xff]  ;;  %v2747_v1 = vld [vmem:[%s2677_s14 + $0xb0] sm:$0xff]  ;;  %v534_v2 = vld [vmem:[#allocation5 + $0x178] sm:$0xff] }
  0x7c   : > { %632 = vmatpush.msra.mxu1 %v529_v21  ;;  %2069 = vmatpush.msra.mxu3 %v529_v21  ;;  %v536_v62 = vld [vmem:[#allocation5 + $0x188] sm:$0xff]  ;;  %v494_v3 = vld [vmem:[#allocation5 + $0x38] sm:$0xff]  ;;  %v2760_v11 = vld [vmem:[%s2677_s14 + $0x40] sm:$0xff] }
  0x7d   : > { %568 = vmatpush.msra.mxu0 %v495_v22  ;;  %2054 = vmatpush.msra.mxu2 %v495_v22  ;;  %v496_v63 = vld [vmem:[#allocation5 + $0x48] sm:$0xff]  ;;  %v2750_v4 = vld [vmem:[%s2677_s14 + $0x38] sm:$0xff]  ;;  %v2763_v12 = vld [vmem:[%s2677_s14 + $0xc0] sm:$0xff] }
  0x7e   : > { %633 = vmatpush.msra.mxu1 %v527_v23  ;;  %2070 = vmatpush.msra.mxu3 %v527_v23  ;;  %v2755_v5 = vld [vmem:[%s2677_s14 + $0xb8] sm:$0xff]  ;;  %v492_v6 = vld [vmem:[#allocation5 + $0x28] sm:$0xff]  ;;  %v2776_v18 = vld [vmem:[%s2677_s14 + $0x50] sm:$0xff] }
  0x7f   : > { %569 = vmatpush.msra.mxu0 %v493_v24  ;;  %2055 = vmatpush.msra.mxu2 %v493_v24  ;;  %v532_v7 = vld [vmem:[#allocation5 + $0x168] sm:$0xff]  ;;  %v490_v8 = vld [vmem:[#allocation5 + $0x18] sm:$0xff]  ;;  %v2779_v19 = vld [vmem:[%s2677_s14 + $0xd0] sm:$0xff] }
  0x80   : > { %634 = vmatpush.msra.mxu1 %v525_v25  ;;  %2071 = vmatpush.msra.mxu3 %v525_v25  ;;  %v530_v9 = vld [vmem:[#allocation5 + $0x158] sm:$0xff]  ;;  %v488_v10 = vld [vmem:[#allocation5 + $0x8] sm:$0xff] }
  0x81   : > { %570 = vmatpush.msra.mxu0 %v491_v26  ;;  %2056 = vmatpush.msra.mxu2 %v491_v26  ;;  %v528_v13 = vld [vmem:[#allocation5 + $0x148] sm:$0xff]  ;;  %v526_v16 = vld [vmem:[#allocation5 + $0x138] sm:$0xff]  ;;  %v2792_v26 = vld [vmem:[%s2677_s14 + $0x60] sm:$0xff] }
  0x82   : > { %635 = vmatpush.msra.mxu1 %v523_v27  ;;  %2072 = vmatpush.msra.mxu3 %v523_v27  ;;  %v2766_v14 = vld [vmem:[%s2677_s14 + $0x48] sm:$0xff]  ;;  %v522_v20 = vld [vmem:[#allocation5 + $0x118] sm:$0xff]  ;;  %v2795_v27 = vld [vmem:[%s2677_s14 + $0xe0] sm:$0xff] }
  0x83   : > { %571 = vmatpush.msra.mxu0 %v489_v28  ;;  %2057 = vmatpush.msra.mxu2 %v489_v28  ;;  %v2771_v15 = vld [vmem:[%s2677_s14 + $0xc8] sm:$0xff]  ;;  %v2782_v21 = vld [vmem:[%s2677_s14 + $0x58] sm:$0xff] }
  0x84   : > { %636 = vmatpush.msra.mxu1 %v521_v29  ;;  %2073 = vmatpush.msra.mxu3 %v521_v29  ;;  %v524_v17 = vld [vmem:[#allocation5 + $0x128] sm:$0xff]  ;;  %v2787_v22 = vld [vmem:[%s2677_s14 + $0xd8] sm:$0xff] }
  0x85   : > { %572 = vmatpush.msra.mxu0 %v487_v30  ;;  %2058 = vmatpush.msra.mxu2 %v487_v30  ;;  %v880_v23 = vld [vmem:[#allocation8 + $0xf8] sm:$0xff]  ;;  %v520_v24 = vld [vmem:[#allocation5 + $0x108] sm:$0xff] }
  0x86   : > { %573 = vmatmul.f32.vlgmr.msra.gmra.mxu0 %v2696_v31  ;;  %597 = vmatmul.f32.vlgmr.msra.gmra.mxu2 %v2699_v32  ;;  %v912_v25 = vld [vmem:[#allocation8 + $0x1f8] sm:$0xff]  ;;  %v2798_v28 = vld [vmem:[%s2677_s14 + $0x68] sm:$0xff] }
  0x87   : > { %687 = vmatpush.msrb.mxu2 %v518_v33  ;;  %637 = vmatpush.msra.mxu1 %v519_v34  ;;  %v2803_v29 = vld [vmem:[%s2677_s14 + $0xe8] sm:$0xff] }
  0x88   : > { %2074 = vmatpush.msra.mxu3 %v519_v34  ;;  %638 = vmatmul.f32.vlgmr.msra.gmra.mxu1 %v2702_v35  ;;  %v878_v30 = vld [vmem:[#allocation8 + $0xe8] sm:$0xff] }
  0x89   : > { %662 = vmatmul.f32.vlgmr.msra.gmra.mxu3 %v2707_v36  ;;  %688 = vmatpush.msrb.mxu2 %v516_v37  ;;  %v910_v33 = vld [vmem:[#allocation8 + $0x1e8] sm:$0xff] }
  0x8a   : > { %752 = vmatpush.msrb.mxu3 %v550_v38  ;;  %v2808_v34 = vld [vmem:[%s2677_s14 + $0x70] sm:$0xff]  ;;  %v2814_v38 = vld [vmem:[%s2677_s14 + $0x78] sm:$0xff] }
  0x8b   : > { %689 = vmatpush.msrb.mxu2 %v514_v39  ;;  %v2811_v37 = vld [vmem:[%s2677_s14 + $0xf0] sm:$0xff]  ;;  %v2819_v39 = vld [vmem:[%s2677_s14 + $0xf8] sm:$0xff] }
  0x8c   : > { %753 = vmatpush.msrb.mxu3 %v548_v40  ;;  %v876_v40 = vld [vmem:[#allocation8 + $0xd8] sm:$0xff] }
  0x8d   : > { %690 = vmatpush.msrb.mxu2 %v512_v41  ;;  %v908_v41 = vld [vmem:[#allocation8 + $0x1d8] sm:$0xff] }
  0x8e   : > { %576 = vmatmul.f32.gmra.mxu0 %v2712_v42  ;;  %600 = vmatmul.f32.gmra.mxu2 %v2715_v43 }
  0x8f   : > { %754 = vmatpush.msrb.mxu3 %v546_v44  ;;  %691 = vmatpush.msrb.mxu2 %v510_v45  ;;  %v874_v44 = vld [vmem:[#allocation8 + $0xc8] sm:$0xff] }
  0x90   : > { %641 = vmatmul.f32.gmra.mxu1 %v2718_v46  ;;  %v906_v45 = vld [vmem:[#allocation8 + $0x1c8] sm:$0xff] }
  0x91   : > { %665 = vmatmul.f32.gmra.mxu3 %v2723_v47  ;;  %692 = vmatpush.msrb.mxu2 %v508_v48  ;;  %v879_v48 = vld [vmem:[#allocation8 + $0xf0] sm:$0xff] }
  0x92   : > { %755 = vmatpush.msrb.mxu3 %v544_v49  ;;  %v877_v49 = vld [vmem:[#allocation8 + $0xe0] sm:$0xff]  ;;  %919 = vmatpush.msrb.mxu0 %v879_v48 }
  0x93   : > { %693 = vmatpush.msrb.mxu2 %v506_v50  ;;  %v872_v50 = vld [vmem:[#allocation8 + $0xb8] sm:$0xff] }
  0x94   : > { %756 = vmatpush.msrb.mxu3 %v542_v51  ;;  %920 = vmatpush.msrb.mxu0 %v877_v49  ;;  %v875_v51 = vld [vmem:[#allocation8 + $0xd0] sm:$0xff] }
  0x95   : > { %694 = vmatpush.msrb.mxu2 %v504_v52  ;;  %v904_v52 = vld [vmem:[#allocation8 + $0x1b8] sm:$0xff]  ;;  %v899_v49 = vld [vmem:[#allocation8 + $0x190] sm:$0xff] }
  0x96   : > { %579 = vmatmul.f32.gmra.mxu0 %v2728_v53  ;;  %603 = vmatmul.f32.gmra.mxu2 %v2731_v54 }
  0x97   : > { %757 = vmatpush.msrb.mxu3 %v540_v55  ;;  %695 = vmatpush.msrb.mxu2 %v502_v56  ;;  %v871_v55 = vld [vmem:[#allocation8 + $0xb0] sm:$0xff]  ;;  %v870_v56 = vld [vmem:[#allocation8 + $0xa8] sm:$0xff] }
  0x98   : > { %644 = vmatmul.f32.gmra.mxu1 %v2734_v57  ;;  %921 = vmatpush.msrb.mxu0 %v875_v51 }
  0x99   : > { %668 = vmatmul.f32.gmra.mxu3 %v2739_v58  ;;  %696 = vmatpush.msrb.mxu2 %v500_v59  ;;  %v867_v59 = vld [vmem:[#allocation8 + $0x90] sm:$0xff] }
  0x9a   : > { %758 = vmatpush.msrb.mxu3 %v538_v60  ;;  %v865_v60 = vld [vmem:[#allocation8 + $0x80] sm:$0xff] }
  0x9b   : > { %697 = vmatpush.msrb.mxu2 %v498_v61  ;;  %v863_v61 = vld [vmem:[#allocation8 + $0x70] sm:$0xff] }
  0x9c   : > { %759 = vmatpush.msrb.mxu3 %v536_v62  ;;  %v868_v62 = vld [vmem:[#allocation8 + $0x98] sm:$0xff] }
  0x9d   : > { %698 = vmatpush.msrb.mxu2 %v496_v63  ;;  %v859_v63 = vld [vmem:[#allocation8 + $0x50] sm:$0xff] }
  0x9e   : > { %582 = vmatmul.f32.gmra.mxu0 %v2744_v0  ;;  %606 = vmatmul.f32.gmra.mxu2 %v2747_v1 }
  0x9f   : > { %760 = vmatpush.msrb.mxu3 %v534_v2  ;;  %699 = vmatpush.msrb.mxu2 %v494_v3  ;;  %v857_v2 = vld [vmem:[#allocation8 + $0x40] sm:$0xff] }
  0xa0   : > { %647 = vmatmul.f32.gmra.mxu1 %v2750_v4  ;;  %v853_v3 = vld [vmem:[#allocation8 + $0x20] sm:$0xff] }
  0xa1   : > { %671 = vmatmul.f32.gmra.mxu3 %v2755_v5  ;;  %700 = vmatpush.msrb.mxu2 %v492_v6  ;;  %v851_v6 = vld [vmem:[#allocation8 + $0x10] sm:$0xff] }
  0xa2   : > { %761 = vmatpush.msrb.mxu3 %v532_v7  ;;  %v866_v7 = vld [vmem:[#allocation8 + $0x88] sm:$0xff] }
  0xa3   : > { %701 = vmatpush.msrb.mxu2 %v490_v8  ;;  %v849_v8 = vld [vmem:[#allocation8] sm:$0xff] }
  0xa4   : > { %762 = vmatpush.msrb.mxu3 %v530_v9  ;;  %v896_v9 = vld [vmem:[#allocation8 + $0x178] sm:$0xff] }
  0xa5   : > { %702 = vmatpush.msrb.mxu2 %v488_v10  ;;  %v911_v10 = vld [vmem:[#allocation8 + $0x1f0] sm:$0xff] }
  0xa6   : > { %585 = vmatmul.f32.gmra.mxu0 %v2760_v11  ;;  %609 = vmatmul.f32.gmra.mxu2 %v2763_v12 }
  0xa7   : > { %763 = vmatpush.msrb.mxu3 %v528_v13  ;;  %1049 = vmatpush.msra.mxu2 %v880_v23  ;;  %v909_v13 = vld [vmem:[#allocation8 + $0x1e0] sm:$0xff]  ;;  %v892_v23 = vld [vmem:[#allocation8 + $0x158] sm:$0xff] }
  0xa8   : > { %650 = vmatmul.f32.gmra.mxu1 %v2766_v14 }
  0xa9   : > { %674 = vmatmul.f32.gmra.mxu3 %v2771_v15  ;;  %1050 = vmatpush.msra.mxu2 %v878_v30 }
  0xaa   : > { %764 = vmatpush.msrb.mxu3 %v526_v16  ;;  %984 = vmatpush.msrb.mxu1 %v911_v10  ;;  %v2837_v16 = vld [vmem:[#allocation7] sm:$0x3] }
  0xab   : > { %1051 = vmatpush.msra.mxu2 %v876_v40  ;;  %v901_v40 = vld [vmem:[#allocation8 + $0x1a0] sm:$0xff] }
  0xac   : > { %765 = vmatpush.msrb.mxu3 %v524_v17  ;;  %985 = vmatpush.msrb.mxu1 %v909_v13  ;;  %v907_v17 = vld [vmem:[#allocation8 + $0x1d0] sm:$0xff] }
  0xad   : > { %1052 = vmatpush.msra.mxu2 %v874_v44  ;;  %v887_v13 = vld [vmem:[#allocation8 + $0x130] sm:$0xff] }
  0xae   : > { %588 = vmatmul.f32.gmra.mxu0 %v2776_v18  ;;  %612 = vmatmul.f32.gmra.mxu2 %v2779_v19 }
  0xaf   : > { %766 = vmatpush.msrb.mxu3 %v522_v20  ;;  %1053 = vmatpush.msra.mxu2 %v872_v50  ;;  %v2841_v20 = vperm.slane %v2837_v16, 0 }
  0xb0   : > { %653 = vmatmul.f32.gmra.mxu1 %v2782_v21 }
  0xb1   : > { %677 = vmatmul.f32.gmra.mxu3 %v2787_v22  ;;  %1054 = vmatpush.msra.mxu2 %v870_v56 }
  0xb2   : > { %767 = vmatpush.msrb.mxu3 %v520_v24  ;;  %986 = vmatpush.msrb.mxu1 %v907_v17 }
  0xb3   : > { %1055 = vmatpush.msra.mxu2 %v868_v62  ;;  %v893_v62 = vld [vmem:[#allocation8 + $0x160] sm:$0xff] }
  0xb4   : > { %1114 = vmatpush.msra.mxu3 %v912_v25 }
  0xb5   : > { %1056 = vmatpush.msra.mxu2 %v866_v7 }
  0xb6   : > { %591 = vmatmul.f32.gmra.mxu0 %v2792_v26  ;;  %615 = vmatmul.f32.gmra.mxu2 %v2795_v27 }
  0xb7   : > { %1115 = vmatpush.msra.mxu3 %v910_v33  ;;  %v858_v33 = vld [vmem:[#allocation8 + $0x48] sm:$0xff] }
  0xb8   : > { %656 = vmatmul.f32.gmra.mxu1 %v2798_v28 }
  0xb9   : > { %680 = vmatmul.f32.gmra.mxu3 %v2803_v29 }
  0xba   : > { %1116 = vmatpush.msra.mxu3 %v908_v41  ;;  %v890_v41 = vld [vmem:[#allocation8 + $0x148] sm:$0xff] }
  0xbc   : > { %1117 = vmatpush.msra.mxu3 %v906_v45 }
  0xbe   : > { %594 = vmatmul.f32.gmra.mxu0 %v2808_v34  ;;  %618 = vmatmul.f32.gmra.mxu2 %v2811_v37 }
  0xbf   : > { %1118 = vmatpush.msra.mxu3 %v904_v52 }
  0xc0   : > { %659 = vmatmul.f32.gmra.mxu1 %v2814_v38 }
  0xc1   : > { %683 = vmatmul.f32.gmra.mxu3 %v2819_v39 }
  0xc6   : > { %703 = vmatmul.f32.vlgmr.msrb.gmra.mxu2 %v2696_v31  ;;  %v873_v31 = vld [vmem:[#allocation8 + $0xc0] sm:$0xff] }
  0xc7   : > { %922 = vmatpush.msrb.mxu0 %v873_v31  ;;  %v897_v31 = vld [vmem:[#allocation8 + $0x180] sm:$0xff] }
  0xc9   : > { %768 = vmatmul.f32.vlgmr.msrb.gmra.mxu3 %v2702_v35  ;;  %v869_v35 = vld [vmem:[#allocation8 + $0xa0] sm:$0xff]  ;;  %923 = vmatpush.msrb.mxu0 %v871_v55  ;;  %v888_v55 = vld [vmem:[#allocation8 + $0x138] sm:$0xff] }
  0xcb   : > { %924 = vmatpush.msrb.mxu0 %v869_v35 }
  0xcd   : > { %925 = vmatpush.msrb.mxu0 %v867_v59 }
  0xce   : > { %706 = vmatmul.f32.gmra.mxu2 %v2712_v42  ;;  %v902_v42 = vld [vmem:[#allocation8 + $0x1a8] sm:$0xff] }
  0xcf   : > { %1119 = vmatpush.msra.mxu3 %v902_v42  ;;  %926 = vmatpush.msrb.mxu0 %v865_v60  ;;  %v895_v42 = vld [vmem:[#allocation8 + $0x170] sm:$0xff] }
  0xd1   : > { %771 = vmatmul.f32.gmra.mxu3 %v2718_v46  ;;  %v861_v46 = vld [vmem:[#allocation8 + $0x60] sm:$0xff]  ;;  %927 = vmatpush.msrb.mxu0 %v863_v61 }
  0xd3   : > { %928 = vmatpush.msrb.mxu0 %v861_v46 }
  0xd5   : > { %929 = vmatpush.msrb.mxu0 %v859_v63  ;;  %v886_v63 = vld [vmem:[#allocation8 + $0x128] sm:$0xff] }
  0xd6   : > { %709 = vmatmul.f32.gmra.mxu2 %v2728_v53  ;;  %v900_v53 = vld [vmem:[#allocation8 + $0x198] sm:$0xff] }
  0xd7   : > { %1120 = vmatpush.msra.mxu3 %v900_v53  ;;  %930 = vmatpush.msrb.mxu0 %v857_v2 }
  0xd9   : > { %774 = vmatmul.f32.gmra.mxu3 %v2734_v57  ;;  %v855_v57 = vld [vmem:[#allocation8 + $0x30] sm:$0xff] }
  0xda   : > { %931 = vmatpush.msrb.mxu0 %v855_v57 }
  0xdc   : > { %932 = vmatpush.msrb.mxu0 %v853_v3  ;;  %v891_v3 = vld [vmem:[#allocation8 + $0x150] sm:$0xff] }
  0xde   : > { %712 = vmatmul.f32.gmra.mxu2 %v2744_v0  ;;  %933 = vmatpush.msrb.mxu0 %v851_v6  ;;  %v898_v0 = vld [vmem:[#allocation8 + $0x188] sm:$0xff] }
  0xdf   : > { %1121 = vmatpush.msra.mxu3 %v898_v0 }
  0xe0   : > { %934 = vmatpush.msrb.mxu0 %v849_v8  ;;  %v889_v8 = vld [vmem:[#allocation8 + $0x140] sm:$0xff] }
  0xe1   : > { %777 = vmatmul.f32.gmra.mxu3 %v2750_v4  ;;  %v864_v4 = vld [vmem:[#allocation8 + $0x78] sm:$0xff] }
  0xe2   : > { %1057 = vmatpush.msra.mxu2 %v864_v4  ;;  %1122 = vmatpush.msra.mxu3 %v896_v9  ;;  %v884_v4 = vld [vmem:[#allocation8 + $0x118] sm:$0xff] }
  0xe6   : > { %715 = vmatmul.f32.gmra.mxu2 %v2760_v11  ;;  %v862_v11 = vld [vmem:[#allocation8 + $0x68] sm:$0xff] }
  0xe7   : > { %1058 = vmatpush.msra.mxu2 %v862_v11 }
  0xe9   : > { %780 = vmatmul.f32.gmra.mxu3 %v2766_v14  ;;  %v894_v14 = vld [vmem:[#allocation8 + $0x168] sm:$0xff] }
  0xea   : > { %1123 = vmatpush.msra.mxu3 %v894_v14  ;;  %v850_v14 = vld [vmem:[#allocation8 + $0x8] sm:$0xff] }
  0xec   : > { %1124 = vmatpush.msra.mxu3 %v892_v23 }
  0xee   : > { %718 = vmatmul.f32.gmra.mxu2 %v2776_v18  ;;  %v860_v18 = vld [vmem:[#allocation8 + $0x58] sm:$0xff]  ;;  %1125 = vmatpush.msra.mxu3 %v890_v41 }
  0xef   : > { %1059 = vmatpush.msra.mxu2 %v860_v18  ;;  %v882_v18 = vld [vmem:[#allocation8 + $0x108] sm:$0xff] }
  0xf0   : > { %1126 = vmatpush.msra.mxu3 %v888_v55  ;;  %v1242_v55 = vld [vmem:[#allocation10 + $0xf8] sm:$0xff] }
  0xf1   : > { %783 = vmatmul.f32.gmra.mxu3 %v2782_v21  ;;  %v905_v21 = vld [vmem:[#allocation8 + $0x1c0] sm:$0xff]  ;;  %1060 = vmatpush.msra.mxu2 %v858_v33 }
  0xf2   : > { %987 = vmatpush.msrb.mxu1 %v905_v21  ;;  %1127 = vmatpush.msra.mxu3 %v886_v63 }
  0xf4   : > { %1128 = vmatpush.msra.mxu3 %v884_v4  ;;  %v1223_v4 = vld [vmem:[#allocation10 + $0x60] sm:$0xff] }
  0xf6   : > { %721 = vmatmul.f32.gmra.mxu2 %v2792_v26  ;;  %1129 = vmatpush.msra.mxu3 %v882_v18 }
  0xf9   : > { %786 = vmatmul.f32.gmra.mxu3 %v2798_v28  ;;  %v903_v28 = vld [vmem:[#allocation8 + $0x1b0] sm:$0xff] }
  0xfa   : > { %988 = vmatpush.msrb.mxu1 %v903_v28  ;;  %v883_v28 = vld [vmem:[#allocation8 + $0x110] sm:$0xff] }
  0xfc   : > { %989 = vmatpush.msrb.mxu1 %v901_v40  ;;  %v881_v40 = vld [vmem:[#allocation8 + $0x100] sm:$0xff] }
  0xfe   : > { %724 = vmatmul.f32.gmra.mxu2 %v2808_v34  ;;  %990 = vmatpush.msrb.mxu1 %v899_v49 }
 0x100   : > { %991 = vmatpush.msrb.mxu1 %v897_v31 }
 0x101   : > { %789 = vmatmul.f32.gmra.mxu3 %v2814_v38 }
 0x102   : > { %992 = vmatpush.msrb.mxu1 %v895_v42 }
 0x103   : > { %v574_v24 = vpop.f32.mrf.mxu0 }
 0x104   : > { %v575_v25 = vadd.f32 %v574_v24, %v2841_v20  ;;  %993 = vmatpush.msrb.mxu1 %v893_v62 }
 0x105   : > { %v639_v26 = vpop.f32.mrf.mxu1 }
 0x106   : > { %v2845_v30 = vadd.f32 %v639_v26, %v575_v25  ;;  %727 = vmatmul.f32.gmra.mxu2 %v2699_v32  ;;  %994 = vmatpush.msrb.mxu1 %v891_v3 }
 0x108   : > { %v817_v34 = vmax.f32 %v2845_v30, 0.0  ;;  %995 = vmatpush.msrb.mxu1 %v889_v8  ;;  %v1240_v8 = vld [vmem:[#allocation10 + $0xe8] sm:$0xff] }
 0x109   : > { %792 = vmatmul.f32.gmra.mxu3 %v2707_v36  ;;  %v2850_v38 = vpop.f32.mrf.mxu2  ;;  %v856_v36 = vld [vmem:[#allocation8 + $0x38] sm:$0xff] }
 0x10a   : > { %935 = vmatmul.f32.vlgmr.msrb.gmra.mxu0 %v817_v34  ;;  %1061 = vmatpush.msra.mxu2 %v856_v36 }
 0x10b   : > { %v577_v44 = vpop.f32.mrf.mxu0  ;;  %996 = vmatpush.msrb.mxu1 %v887_v13  ;;  %v1239_v13 = vld [vmem:[#allocation10 + $0xe0] sm:$0xff] }
 0x10c   : > { %v578_v45 = vadd.f32 %v577_v44, %v2841_v20  ;;  %v2855_v32 = vpop.f32.mrf.mxu3 }
 0x10d   : > { %v642_v48 = vpop.f32.mrf.mxu1 }
 0x10e   : > { %v2857_v50 = vadd.f32 %v642_v48, %v578_v45  ;;  %730 = vmatmul.f32.gmra.mxu2 %v2715_v43 }
 0x110   : > { %v819_v51 = vmax.f32 %v2857_v50, 0.0 }
 0x111   : > { %795 = vmatmul.f32.gmra.mxu3 %v2723_v47  ;;  %v2862_v52 = vpop.f32.mrf.mxu2  ;;  %v854_v47 = vld [vmem:[#allocation8 + $0x28] sm:$0xff] }
 0x112   : > { %938 = vmatmul.f32.gmra.mxu0 %v819_v51  ;;  %1062 = vmatpush.msra.mxu2 %v854_v47  ;;  %v1225_v47 = vld [vmem:[#allocation10 + $0x70] sm:$0xff] }
 0x113   : > { %v580_v35 = vpop.f32.mrf.mxu0 }
 0x114   : > { %v581_v56 = vadd.f32 %v580_v35, %v2841_v20  ;;  %v2867_v43 = vpop.f32.mrf.mxu3 }
 0x115   : > { %v645_v59 = vpop.f32.mrf.mxu1 }
 0x116   : > { %v2869_v60 = vadd.f32 %v645_v59, %v581_v56  ;;  %733 = vmatmul.f32.gmra.mxu2 %v2731_v54 }
 0x118   : > { %v821_v61 = vmax.f32 %v2869_v60, 0.0 }
 0x119   : > { %798 = vmatmul.f32.gmra.mxu3 %v2739_v58  ;;  %v2874_v46 = vpop.f32.mrf.mxu2  ;;  %v852_v58 = vld [vmem:[#allocation8 + $0x18] sm:$0xff] }
 0x11a   : > { %941 = vmatmul.f32.gmra.mxu0 %v821_v61  ;;  %1063 = vmatpush.msra.mxu2 %v852_v58 }
 0x11b   : > { %v583_v53 = vpop.f32.mrf.mxu0 }
 0x11c   : > { %v584_v2 = vadd.f32 %v583_v53, %v2841_v20  ;;  %v2879_v54 = vpop.f32.mrf.mxu3  ;;  %1064 = vmatpush.msra.mxu2 %v850_v14  ;;  %v1241_v53 = vld [vmem:[#allocation10 + $0xf0] sm:$0xff] }
 0x11d   : > { %v648_v57 = vpop.f32.mrf.mxu1 }
 0x11e   : > { %v2881_v6 = vadd.f32 %v648_v57, %v584_v2  ;;  %736 = vmatmul.f32.gmra.mxu2 %v2747_v1  ;;  %v1224_v57 = vld [vmem:[#allocation10 + $0x68] sm:$0xff] }
 0x120   : > { %v823_v7 = vmax.f32 %v2881_v6, 0.0 }
 0x121   : > { %801 = vmatmul.f32.gmra.mxu3 %v2755_v5  ;;  %v2886_v0 = vpop.f32.mrf.mxu2  ;;  %v885_v5 = vld [vmem:[#allocation8 + $0x120] sm:$0xff] }
 0x122   : > { %944 = vmatmul.f32.gmra.mxu0 %v823_v7  ;;  %997 = vmatpush.msrb.mxu1 %v885_v5  ;;  %v608_v18 = vadd.f32 %v2886_v0, %v2841_v20  ;;  %v1221_v0 = vld [vmem:[#allocation10 + $0x50] sm:$0xff] }
 0x123   : > { %v586_v9 = vpop.f32.mrf.mxu0 }
 0x124   : > { %v587_v10 = vadd.f32 %v586_v9, %v2841_v20  ;;  %v2891_v1 = vpop.f32.mrf.mxu3  ;;  %998 = vmatpush.msrb.mxu1 %v883_v28  ;;  %v605_v9 = vadd.f32 %v2874_v46, %v2841_v20  ;;  %v1222_v46 = vld [vmem:[#allocation10 + $0x58] sm:$0xff] }
 0x125   : > { %v651_v11 = vpop.f32.mrf.mxu1  ;;  %v2979_v60 = vadd.f32 %v2891_v1, %v608_v18 }
 0x126   : > { %v2893_v17 = vadd.f32 %v651_v11, %v587_v10  ;;  %739 = vmatmul.f32.gmra.mxu2 %v2763_v12  ;;  %999 = vmatpush.msrb.mxu1 %v881_v40  ;;  %v2968_v50 = vadd.f32 %v2879_v54, %v605_v9 }
 0x128   : > { %v825_v21 = vmax.f32 %v2893_v17, 0.0  ;;  %1312 = vmatpush.msra.mxu1 %v1242_v55 }
 0x129   : > { %804 = vmatmul.f32.gmra.mxu3 %v2771_v15  ;;  %v2898_v23 = vpop.f32.mrf.mxu2 }
 0x12a   : > { %947 = vmatmul.f32.gmra.mxu0 %v825_v21  ;;  %1313 = vmatpush.msra.mxu1 %v1241_v53 }
 0x12b   : > { %v589_v24 = vpop.f32.mrf.mxu0 }
 0x12c   : > { %v590_v25 = vadd.f32 %v589_v24, %v2841_v20  ;;  %v2903_v26 = vpop.f32.mrf.mxu3  ;;  %1314 = vmatpush.msra.mxu1 %v1240_v8  ;;  %v837_v24 = vmax.f32 %v2968_v50, 0.0 }
 0x12d   : > { %v654_v12 = vpop.f32.mrf.mxu1 }
 0x12e   : > { %v2905_v33 = vadd.f32 %v654_v12, %v590_v25  ;;  %742 = vmatmul.f32.gmra.mxu2 %v2779_v19  ;;  %v1226_v19 = vld [vmem:[#allocation10 + $0x78] sm:$0xff]  ;;  %1315 = vmatpush.msra.mxu1 %v1239_v13 }
 0x12f   : > { %1247 = vmatpush.msra.mxu0 %v1226_v19  ;;  %v1238_v12 = vld [vmem:[#allocation10 + $0xd8] sm:$0xff]  ;;  %v1237_v19 = vld [vmem:[#allocation10 + $0xd0] sm:$0xff] }
 0x130   : > { %v827_v15 = vmax.f32 %v2905_v33, 0.0  ;;  %1316 = vmatpush.msra.mxu1 %v1238_v12 }
 0x131   : > { %807 = vmatmul.f32.gmra.mxu3 %v2787_v22  ;;  %v2910_v41 = vpop.f32.mrf.mxu2  ;;  %1248 = vmatpush.msra.mxu0 %v1225_v47 }
 0x132   : > { %950 = vmatmul.f32.gmra.mxu0 %v827_v15  ;;  %1317 = vmatpush.msra.mxu1 %v1237_v19  ;;  %v1214_v19 = vld [vmem:[#allocation10 + $0x18] sm:$0xff] }
 0x133   : > { %v592_v44 = vpop.f32.mrf.mxu0  ;;  %1249 = vmatpush.msra.mxu0 %v1224_v57 }
 0x134   : > { %v593_v45 = vadd.f32 %v592_v44, %v2841_v20  ;;  %v2915_v48 = vpop.f32.mrf.mxu3  ;;  %v611_v44 = vadd.f32 %v2898_v23, %v2841_v20  ;;  %v1220_v23 = vld [vmem:[#allocation10 + $0x48] sm:$0xff] }
 0x135   : > { %v657_v49 = vpop.f32.mrf.mxu1  ;;  %1250 = vmatpush.msra.mxu0 %v1223_v4 }
 0x136   : > { %v2917_v36 = vadd.f32 %v657_v49, %v593_v45  ;;  %745 = vmatmul.f32.gmra.mxu2 %v2795_v27  ;;  %v839_v45 = vmax.f32 %v2979_v60, 0.0  ;;  %v2990_v6 = vadd.f32 %v2903_v26, %v611_v44 }
 0x137   : > { %1251 = vmatpush.msra.mxu0 %v1222_v46 }
 0x138   : > { %v829_v31 = vmax.f32 %v2917_v36, 0.0 }
 0x139   : > { %810 = vmatmul.f32.gmra.mxu3 %v2803_v29  ;;  %v2922_v22 = vpop.f32.mrf.mxu2  ;;  %v599_v29 = vadd.f32 %v2850_v38, %v2841_v20  ;;  %v2948_v38 = vperm.slane %v2837_v16, 1  ;;  %1252 = vmatpush.msra.mxu0 %v1221_v0 }
 0x13a   : > { %953 = vmatmul.f32.gmra.mxu0 %v829_v31 }
 0x13b   : > { %v595_v35 = vpop.f32.mrf.mxu0  ;;  %v2941_v2 = vadd.f32 %v2855_v32, %v599_v29  ;;  %1253 = vmatpush.msra.mxu0 %v1220_v23  ;;  %v1236_v29 = vld [vmem:[#allocation10 + $0xc8] sm:$0xff] }
 0x13c   : > { %v596_v56 = vadd.f32 %v595_v35, %v2841_v20  ;;  %v2927_v59 = vpop.f32.mrf.mxu3  ;;  %1318 = vmatpush.msra.mxu1 %v1236_v29 }
 0x13d   : > { %v660_v42 = vpop.f32.mrf.mxu1  ;;  %v833_v3 = vmax.f32 %v2941_v2, 0.0 }
 0x13e   : > { %v2929_v27 = vadd.f32 %v660_v42, %v596_v56  ;;  %748 = vmatmul.f32.gmra.mxu2 %v2811_v37  ;;  %v614_v56 = vadd.f32 %v2910_v41, %v2841_v20  ;;  %v841_v42 = vmax.f32 %v2990_v6, 0.0  ;;  %v1219_v41 = vld [vmem:[#allocation10 + $0x40] sm:$0xff] }
 0x13f   : > { %1254 = vmatpush.msra.mxu0 %v1219_v41 }
 0x140   : > { %v831_v62 = vmax.f32 %v2929_v27, 0.0  ;;  %v3001_v17 = vadd.f32 %v2915_v48, %v614_v56  ;;  %v1216_v27 = vld [vmem:[#allocation10 + $0x28] sm:$0xff] }
 0x141   : > { %813 = vmatmul.f32.gmra.mxu3 %v2819_v39  ;;  %v2936_v63 = vpop.f32.mrf.mxu2  ;;  %v602_v39 = vadd.f32 %v2862_v52, %v2841_v20 }
 0x142   : > { %956 = vmatmul.f32.gmra.mxu0 %v831_v62  ;;  %v620_v4 = vadd.f32 %v2936_v63, %v2841_v20 }
 0x143   : > { %v2957_v30 = vadd.f32 %v2867_v43, %v602_v39  ;;  %v617_v39 = vadd.f32 %v2922_v22, %v2841_v20  ;;  %v1218_v22 = vld [vmem:[#allocation10 + $0x38] sm:$0xff]  ;;  %v1217_v20 = vld [vmem:[#allocation10 + $0x30] sm:$0xff] }
 0x144   : > { %v2943_v37 = vpop.f32.mrf.mxu3  ;;  %1255 = vmatpush.msra.mxu0 %v1218_v22 }
 0x145   : > { %v835_v10 = vmax.f32 %v2957_v30, 0.0  ;;  %v3012_v33 = vadd.f32 %v2927_v59, %v617_v39  ;;  %v3023_v36 = vadd.f32 %v2943_v37, %v620_v4 }
 0x146   : > { %1065 = vmatmul.f32.vlgmr.msra.gmra.mxu2 %v817_v34  ;;  %1256 = vmatpush.msra.mxu0 %v1217_v20 }
 0x148   : > { %1257 = vmatpush.msra.mxu0 %v1216_v27 }
 0x149   : > { %v704_v58 = vpop.f32.mrf.mxu2 }
 0x14a   : > { %v705_v32 = vadd.f32 %v704_v58, %v2948_v38  ;;  %959 = vmatmul.f32.gmra.mxu0 %v833_v3  ;;  %v843_v58 = vmax.f32 %v3001_v17, 0.0 }
 0x14c   : > { %v769_v16 = vpop.f32.mrf.mxu3 }
 0x14d   : > { %v770_v34 = vadd.f32 %v769_v16, %v705_v32  ;;  %v1235_v32 = vld [vmem:[#allocation10 + $0xc0] sm:$0xff] }
 0x14e   : > { %1068 = vmatmul.f32.gmra.mxu2 %v819_v51  ;;  %1319 = vmatpush.msra.mxu1 %v1235_v32 }
 0x14f   : > { %v818_v52 = vmax.f32 %v770_v34, 0.0 }
 0x151   : > { %1000 = vmatmul.f32.vlgmr.msrb.gmra.mxu1 %v818_v52  ;;  %1130 = vmatmul.f32.vlgmr.msra.gmra.mxu3 %v818_v52  ;;  %v707_v11 = vpop.f32.mrf.mxu2  ;;  %v845_v52 = vmax.f32 %v3012_v33, 0.0 }
 0x152   : > { %v708_v43 = vadd.f32 %v707_v11, %v2948_v38  ;;  %962 = vmatmul.f32.gmra.mxu0 %v835_v10  ;;  %v1234_v11 = vld [vmem:[#allocation10 + $0xb8] sm:$0xff] }
 0x153   : > { %1320 = vmatpush.msra.mxu1 %v1234_v11  ;;  %v1454_v11 = vld [vmem:[#allocation11 + $0x1e8] sm:$0xff] }
 0x154   : > { %v772_v51 = vpop.f32.mrf.mxu3  ;;  %1532 = vmatpush.msrb.mxu3 %v1454_v11 }
 0x155   : > { %v773_v14 = vadd.f32 %v772_v51, %v708_v43  ;;  %v847_v43 = vmax.f32 %v3023_v36, 0.0  ;;  %v913_v36 = vld [vmem:[%s3324_s4] sm:$0x3] }
 0x156   : > { %1071 = vmatmul.f32.gmra.mxu2 %v821_v61  ;;  %v3058_v27 = vperm.slane %v913_v36, 0 }
 0x157   : > { %v820_v5 = vmax.f32 %v773_v14, 0.0  ;;  %v1233_v14 = vld [vmem:[#allocation10 + $0xb0] sm:$0xff] }
 0x158   : > { %1321 = vmatpush.msra.mxu1 %v1233_v14  ;;  %v1449_v14 = vld [vmem:[#allocation11 + $0x1c0] sm:$0xff] }
 0x159   : > { %1003 = vmatmul.f32.gmra.mxu1 %v820_v5  ;;  %1133 = vmatmul.f32.gmra.mxu3 %v820_v5  ;;  %v710_v25 = vpop.f32.mrf.mxu2 }
 0x15a   : > { %v711_v54 = vadd.f32 %v710_v25, %v2948_v38  ;;  %965 = vmatmul.f32.gmra.mxu0 %v837_v24  ;;  %v1232_v25 = vld [vmem:[#allocation10 + $0xa8] sm:$0xff] }
 0x15b   : > { %1322 = vmatpush.msra.mxu1 %v1232_v25 }
 0x15c   : > { %v775_v61 = vpop.f32.mrf.mxu3 }
 0x15d   : > { %v776_v28 = vadd.f32 %v775_v61, %v711_v54 }
 0x15e   : > { %1074 = vmatmul.f32.gmra.mxu2 %v823_v7 }
 0x15f   : > { %v822_v40 = vmax.f32 %v776_v28, 0.0  ;;  %v1215_v28 = vld [vmem:[#allocation10 + $0x20] sm:$0xff] }
 0x160   : > { %1258 = vmatpush.msra.mxu0 %v1215_v28  ;;  %v3061_v28 = vperm.slane %v913_v36, 1 }
 0x161   : > { %1006 = vmatmul.f32.gmra.mxu1 %v822_v40  ;;  %1136 = vmatmul.f32.gmra.mxu3 %v822_v40  ;;  %v713_v49 = vpop.f32.mrf.mxu2 }
 0x162   : > { %v714_v1 = vadd.f32 %v713_v49, %v2948_v38  ;;  %968 = vmatmul.f32.gmra.mxu0 %v839_v45 }
 0x163   : > { %1259 = vmatpush.msra.mxu0 %v1214_v19  ;;  %v1448_v19 = vld [vmem:[#allocation11 + $0x1b8] sm:$0xff] }
 0x164   : > { %v778_v7 = vpop.f32.mrf.mxu3 }
 0x165   : > { %v779_v55 = vadd.f32 %v778_v7, %v714_v1 }
 0x166   : > { %1077 = vmatmul.f32.gmra.mxu2 %v825_v21 }
 0x167   : > { %v824_v35 = vmax.f32 %v779_v55, 0.0 }
 0x169   : > { %1009 = vmatmul.f32.gmra.mxu1 %v824_v35  ;;  %1139 = vmatmul.f32.gmra.mxu3 %v824_v35  ;;  %v716_v47 = vpop.f32.mrf.mxu2  ;;  %v1213_v35 = vld [vmem:[#allocation10 + $0x10] sm:$0xff] }
 0x16a   : > { %v717_v26 = vadd.f32 %v716_v47, %v2948_v38  ;;  %971 = vmatmul.f32.gmra.mxu0 %v841_v42 }
 0x16b   : > { %1260 = vmatpush.msra.mxu0 %v1213_v35 }
 0x16c   : > { %v781_v21 = vpop.f32.mrf.mxu3 }
 0x16d   : > { %v782_v53 = vadd.f32 %v781_v21, %v717_v26  ;;  %v1212_v21 = vld [vmem:[#allocation10 + $0x8] sm:$0xff] }
 0x16e   : > { %1080 = vmatmul.f32.gmra.mxu2 %v827_v15  ;;  %1261 = vmatpush.msra.mxu0 %v1212_v21  ;;  %v1444_v21 = vld [vmem:[#allocation11 + $0x198] sm:$0xff] }
 0x16f   : > { %v826_v57 = vmax.f32 %v782_v53, 0.0 }
 0x171   : > { %1012 = vmatmul.f32.gmra.mxu1 %v826_v57  ;;  %1142 = vmatmul.f32.gmra.mxu3 %v826_v57  ;;  %v719_v8 = vpop.f32.mrf.mxu2 }
 0x172   : > { %v720_v48 = vadd.f32 %v719_v8, %v2948_v38  ;;  %974 = vmatmul.f32.gmra.mxu0 %v843_v58 }
 0x174   : > { %v784_v15 = vpop.f32.mrf.mxu3 }
 0x175   : > { %v785_v16 = vadd.f32 %v784_v15, %v720_v48  ;;  %v1227_v48 = vld [vmem:[#allocation10 + $0x80] sm:$0xff] }
 0x176   : > { %1083 = vmatmul.f32.gmra.mxu2 %v829_v31 }
 0x177   : > { %v828_v34 = vmax.f32 %v785_v16, 0.0 }
 0x179   : > { %1015 = vmatmul.f32.gmra.mxu1 %v828_v34  ;;  %1145 = vmatmul.f32.gmra.mxu3 %v828_v34  ;;  %v722_v9 = vpop.f32.mrf.mxu2 }
 0x17a   : > { %v723_v59 = vadd.f32 %v722_v9, %v2948_v38  ;;  %977 = vmatmul.f32.gmra.mxu0 %v845_v52  ;;  %v1453_v9 = vld [vmem:[#allocation11 + $0x1e0] sm:$0xff] }
 0x17b   : > { %1467 = vmatpush.msrb.mxu2 %v1453_v9 }
 0x17c   : > { %v787_v31 = vpop.f32.mrf.mxu3 }
 0x17d   : > { %v788_v13 = vadd.f32 %v787_v31, %v723_v59  ;;  %1468 = vmatpush.msrb.mxu2 %v1449_v14 }
 0x17e   : > { %1086 = vmatmul.f32.gmra.mxu2 %v831_v62 }
 0x17f   : > { %v830_v63 = vmax.f32 %v788_v13, 0.0 }
 0x181   : > { %1018 = vmatmul.f32.gmra.mxu1 %v830_v63  ;;  %1148 = vmatmul.f32.gmra.mxu3 %v830_v63  ;;  %v725_v51 = vpop.f32.mrf.mxu2  ;;  %v1456_v63 = vld [vmem:[#allocation11 + $0x1f8] sm:$0xff] }
 0x182   : > { %v726_v46 = vadd.f32 %v725_v51, %v2948_v38  ;;  %980 = vmatmul.f32.gmra.mxu0 %v847_v43 }
 0x184   : > { %v790_v37 = vpop.f32.mrf.mxu3 }
 0x185   : > { %v791_v5 = vadd.f32 %v790_v37, %v726_v46  ;;  %v1450_v46 = vld [vmem:[#allocation11 + $0x1c8] sm:$0xff] }
 0x186   : > { %1089 = vmatmul.f32.gmra.mxu2 %v833_v3  ;;  %v1231_v3 = vld [vmem:[#allocation10 + $0xa0] sm:$0xff]  ;;  %1533 = vmatpush.msrb.mxu3 %v1450_v46 }
 0x187   : > { %v832_v62 = vmax.f32 %v791_v5, 0.0  ;;  %1323 = vmatpush.msra.mxu1 %v1231_v3  ;;  %v936_v57 = vpop.f32.mrf.mxu0  ;;  %v1429_v46 = vld [vmem:[#allocation11 + $0x120] sm:$0xff] }
 0x189   : > { %1021 = vmatmul.f32.gmra.mxu1 %v832_v62  ;;  %1151 = vmatmul.f32.gmra.mxu3 %v832_v62  ;;  %v728_v18 = vpop.f32.mrf.mxu2 }
 0x18a   : > { %v729_v12 = vadd.f32 %v728_v18, %v2948_v38  ;;  %v1451_v18 = vld [vmem:[#allocation11 + $0x1d0] sm:$0xff] }
 0x18c   : > { %v793_v54 = vpop.f32.mrf.mxu3 }
 0x18d   : > { %v794_v61 = vadd.f32 %v793_v54, %v729_v12  ;;  %v937_v12 = vadd.f32 %v936_v57, %v3058_v27  ;;  %v1445_v54 = vld [vmem:[#allocation11 + $0x1a0] sm:$0xff] }
 0x18e   : > { %1092 = vmatmul.f32.gmra.mxu2 %v835_v10  ;;  %v1230_v10 = vld [vmem:[#allocation10 + $0x98] sm:$0xff] }
 0x18f   : > { %v834_v0 = vmax.f32 %v794_v61, 0.0  ;;  %1324 = vmatpush.msra.mxu1 %v1230_v10  ;;  %v939_v34 = vpop.f32.mrf.mxu0  ;;  %v1446_v61 = vld [vmem:[#allocation11 + $0x1a8] sm:$0xff]  ;;  %1469 = vmatpush.msrb.mxu2 %v1445_v54  ;;  %v1431_v54 = vld [vmem:[#allocation11 + $0x130] sm:$0xff] }
 0x190   : > { %1534 = vmatpush.msrb.mxu3 %v1446_v61  ;;  %v1442_v10 = vld [vmem:[#allocation11 + $0x188] sm:$0xff]  ;;  %v1432_v61 = vld [vmem:[#allocation11 + $0x138] sm:$0xff] }
 0x191   : > { %1024 = vmatmul.f32.gmra.mxu1 %v834_v0  ;;  %1154 = vmatmul.f32.gmra.mxu3 %v834_v0  ;;  %v731_v2 = vpop.f32.mrf.mxu2 }
 0x192   : > { %v732_v40 = vadd.f32 %v731_v2, %v2948_v38  ;;  %1535 = vmatpush.msrb.mxu3 %v1442_v10 }
 0x194   : > { %v796_v44 = vpop.f32.mrf.mxu3 }
 0x195   : > { %v797_v49 = vadd.f32 %v796_v44, %v732_v40 }
 0x196   : > { %1095 = vmatmul.f32.gmra.mxu2 %v837_v24  ;;  %v1229_v24 = vld [vmem:[#allocation10 + $0x90] sm:$0xff] }
 0x197   : > { %v836_v1 = vmax.f32 %v797_v49, 0.0  ;;  %1325 = vmatpush.msra.mxu1 %v1229_v24  ;;  %v942_v20 = vpop.f32.mrf.mxu0  ;;  %v1447_v49 = vld [vmem:[#allocation11 + $0x1b0] sm:$0xff] }
 0x199   : > { %1027 = vmatmul.f32.gmra.mxu1 %v836_v1  ;;  %1157 = vmatmul.f32.gmra.mxu3 %v836_v1  ;;  %v734_v30 = vpop.f32.mrf.mxu2  ;;  %v940_v1 = vadd.f32 %v939_v34, %v3058_v27 }
 0x19a   : > { %v735_v7 = vadd.f32 %v734_v30, %v2948_v38  ;;  %v1441_v30 = vld [vmem:[#allocation11 + $0x180] sm:$0xff] }
 0x19b   : > { %1470 = vmatpush.msrb.mxu2 %v1441_v30 }
 0x19c   : > { %v799_v55 = vpop.f32.mrf.mxu3 }
 0x19d   : > { %v800_v23 = vadd.f32 %v799_v55, %v735_v7 }
 0x19e   : > { %1098 = vmatmul.f32.gmra.mxu2 %v839_v45  ;;  %v1228_v45 = vld [vmem:[#allocation10 + $0x88] sm:$0xff] }
 0x19f   : > { %v838_v56 = vmax.f32 %v800_v23, 0.0  ;;  %1326 = vmatpush.msra.mxu1 %v1228_v45  ;;  %v945_v25 = vpop.f32.mrf.mxu0  ;;  %v1438_v45 = vld [vmem:[#allocation11 + $0x168] sm:$0xff] }
 0x1a0   : > { %1536 = vmatpush.msrb.mxu3 %v1438_v45  ;;  %v946_v34 = vadd.f32 %v945_v25, %v3058_v27 }
 0x1a1   : > { %1030 = vmatmul.f32.gmra.mxu1 %v838_v56  ;;  %1160 = vmatmul.f32.gmra.mxu3 %v838_v56  ;;  %v737_v50 = vpop.f32.mrf.mxu2 }
 0x1a2   : > { %v738_v47 = vadd.f32 %v737_v50, %v2948_v38  ;;  %1327 = vmatpush.msra.mxu1 %v1227_v48 }
 0x1a4   : > { %v802_v29 = vpop.f32.mrf.mxu3  ;;  %1662 = vmatpush.msrb.mxu1 %v1456_v63  ;;  %v1435_v63 = vld [vmem:[#allocation11 + $0x150] sm:$0xff] }
 0x1a5   : > { %v803_v26 = vadd.f32 %v802_v29, %v738_v47 }
 0x1a6   : > { %1101 = vmatmul.f32.gmra.mxu2 %v841_v42  ;;  %v1211_v42 = vld [vmem:[#allocation10] sm:$0xff] }
 0x1a7   : > { %v840_v53 = vmax.f32 %v803_v26, 0.0  ;;  %1262 = vmatpush.msra.mxu0 %v1211_v42  ;;  %v948_v7 = vpop.f32.mrf.mxu0  ;;  %v1443_v26 = vld [vmem:[#allocation11 + $0x190] sm:$0xff] }
 0x1a8   : > { %v949_v14 = vadd.f32 %v948_v7, %v3058_v27 }
 0x1a9   : > { %1033 = vmatmul.f32.gmra.mxu1 %v840_v53  ;;  %1163 = vmatmul.f32.gmra.mxu3 %v840_v53  ;;  %v740_v60 = vpop.f32.mrf.mxu2  ;;  %v943_v53 = vadd.f32 %v942_v20, %v3058_v27 }
 0x1aa   : > { %v741_v41 = vadd.f32 %v740_v60, %v2948_v38  ;;  %v1437_v60 = vld [vmem:[#allocation11 + $0x160] sm:$0xff] }
 0x1ab   : > { %1471 = vmatpush.msrb.mxu2 %v1437_v60 }
 0x1ac   : > { %v805_v39 = vpop.f32.mrf.mxu3 }
 0x1ad   : > { %v806_v8 = vadd.f32 %v805_v39, %v741_v41 }
 0x1ae   : > { %1104 = vmatmul.f32.gmra.mxu2 %v843_v58 }
 0x1af   : > { %v842_v32 = vmax.f32 %v806_v8, 0.0  ;;  %v951_v39 = vpop.f32.mrf.mxu0 }
 0x1b1   : > { %1036 = vmatmul.f32.gmra.mxu1 %v842_v32  ;;  %1166 = vmatmul.f32.gmra.mxu3 %v842_v32  ;;  %v743_v6 = vpop.f32.mrf.mxu2 }
 0x1b2   : > { %v744_v15 = vadd.f32 %v743_v6, %v2948_v38 }
 0x1b4   : > { %v808_v16 = vpop.f32.mrf.mxu3 }
 0x1b5   : > { %v809_v22 = vadd.f32 %v808_v16, %v744_v15  ;;  %v1439_v16 = vld [vmem:[#allocation11 + $0x170] sm:$0xff] }
 0x1b6   : > { %1107 = vmatmul.f32.gmra.mxu2 %v845_v52  ;;  %v1455_v52 = vld [vmem:[#allocation11 + $0x1f0] sm:$0xff] }
 0x1b7   : > { %v844_v4 = vmax.f32 %v809_v22, 0.0  ;;  %1597 = vmatpush.msrb.mxu0 %v1455_v52  ;;  %v1440_v22 = vld [vmem:[#allocation11 + $0x178] sm:$0xff] }
 0x1b9   : > { %1039 = vmatmul.f32.gmra.mxu1 %v844_v4  ;;  %1169 = vmatmul.f32.gmra.mxu3 %v844_v4  ;;  %v746_v17 = vpop.f32.mrf.mxu2  ;;  %v1433_v4 = vld [vmem:[#allocation11 + $0x140] sm:$0xff] }
 0x1ba   : > { %v747_v58 = vadd.f32 %v746_v17, %v2948_v38  ;;  %1598 = vmatpush.msrb.mxu0 %v1451_v18  ;;  %v1434_v17 = vld [vmem:[#allocation11 + $0x148] sm:$0xff]  ;;  %1472 = vmatpush.msrb.mxu2 %v1433_v4 }
 0x1bb   : > { %1537 = vmatpush.msrb.mxu3 %v1434_v17 }
 0x1bc   : > { %v811_v59 = vpop.f32.mrf.mxu3  ;;  %1599 = vmatpush.msrb.mxu0 %v1447_v49  ;;  %1473 = vmatpush.msrb.mxu2 %v1429_v46 }
 0x1bd   : > { %v812_v31 = vadd.f32 %v811_v59, %v747_v58 }
 0x1be   : > { %1110 = vmatmul.f32.gmra.mxu2 %v847_v43  ;;  %1600 = vmatpush.msrb.mxu0 %v1443_v26 }
 0x1bf   : > { %v846_v13 = vmax.f32 %v812_v31, 0.0 }
 0x1c0   : > { %1601 = vmatpush.msrb.mxu0 %v1439_v16 }
 0x1c1   : > { %1042 = vmatmul.f32.gmra.mxu1 %v846_v13  ;;  %1172 = vmatmul.f32.gmra.mxu3 %v846_v13  ;;  %v749_v33 = vpop.f32.mrf.mxu2  ;;  %v954_v13 = vpop.f32.mrf.mxu0 }
 0x1c2   : > { %v750_v51 = vadd.f32 %v749_v33, %v2948_v38  ;;  %v1452_v38 = vld [vmem:[#allocation11 + $0x1d8] sm:$0xff]  ;;  %1602 = vmatpush.msrb.mxu0 %v1435_v63 }
 0x1c3   : > { %1663 = vmatpush.msrb.mxu1 %v1452_v38 }
 0x1c4   : > { %v814_v37 = vpop.f32.mrf.mxu3  ;;  %1603 = vmatpush.msrb.mxu0 %v1431_v54 }
 0x1c5   : > { %v815_v5 = vadd.f32 %v814_v37, %v750_v51  ;;  %1664 = vmatpush.msrb.mxu1 %v1448_v19  ;;  %v1436_v51 = vld [vmem:[#allocation11 + $0x158] sm:$0xff]  ;;  %v1430_v37 = vld [vmem:[#allocation11 + $0x128] sm:$0xff] }
 0x1c6   : > { %1538 = vmatpush.msrb.mxu3 %v1430_v37 }
 0x1c7   : > { %v848_v43 = vmax.f32 %v815_v5, 0.0  ;;  %1665 = vmatpush.msrb.mxu1 %v1444_v21 }
 0x1c9   : > { %1045 = vmatmul.f32.gmra.mxu1 %v848_v43  ;;  %1175 = vmatmul.f32.gmra.mxu3 %v848_v43  ;;  %v1066_v62 = vpop.f32.mrf.mxu2 }
 0x1ca   : > { %v1067_v3 = vadd.f32 %v1066_v62, %v3061_v28  ;;  %1666 = vmatpush.msrb.mxu1 %v1440_v22 }
 0x1cc   : > { %1667 = vmatpush.msrb.mxu1 %v1436_v51 }
 0x1ce   : > { %v1001_v0 = vpop.f32.mrf.mxu1  ;;  %1668 = vmatpush.msrb.mxu1 %v1432_v61 }
 0x1cf   : > { %v1002_v2 = vadd.f32 %v1001_v0, %v937_v12  ;;  %v957_v0 = vpop.f32.mrf.mxu0 }
 0x1d1   : > { %v1179_v40 = vmax.f32 %v1002_v2, 0.0  ;;  %v1069_v44 = vpop.f32.mrf.mxu2  ;;  %v952_v2 = vadd.f32 %v951_v39, %v3058_v27  ;;  %v1423_v39 = vld [vmem:[#allocation11 + $0xf0] sm:$0xff] }
 0x1d2   : > { %v1070_v24 = vadd.f32 %v1069_v44, %v3061_v28 }
 0x1d3   : > { %1263 = vmatmul.f32.vlgmr.msra.gmra.mxu0 %v1179_v40  ;;  %v1426_v40 = vld [vmem:[#allocation11 + $0x108] sm:$0xff] }
 0x1d4   : > { %v1131_v55 = vpop.f32.mrf.mxu3  ;;  %1539 = vmatpush.msrb.mxu3 %v1426_v40 }
 0x1d5   : > { %v1132_v23 = vadd.f32 %v1131_v55, %v1067_v3  ;;  %v1425_v3 = vld [vmem:[#allocation11 + $0x100] sm:$0xff] }
 0x1d6   : > { %v1004_v35 = vpop.f32.mrf.mxu1  ;;  %1474 = vmatpush.msrb.mxu2 %v1425_v3 }
 0x1d7   : > { %v1180_v56 = vmax.f32 %v1132_v23, 0.0  ;;  %v1005_v50 = vadd.f32 %v1004_v35, %v940_v1  ;;  %v1427_v23 = vld [vmem:[#allocation11 + $0x110] sm:$0xff]  ;;  %v1428_v35 = vld [vmem:[#allocation11 + $0x118] sm:$0xff] }
 0x1d8   : > { %1604 = vmatpush.msrb.mxu0 %v1427_v23  ;;  %1669 = vmatpush.msrb.mxu1 %v1428_v35 }
 0x1d9   : > { %v1181_v47 = vmax.f32 %v1005_v50, 0.0  ;;  %1328 = vmatmul.f32.vlgmr.msra.gmra.mxu1 %v1180_v56  ;;  %v1072_v29 = vpop.f32.mrf.mxu2  ;;  %v955_v56 = vadd.f32 %v954_v13, %v3058_v27  ;;  %v1421_v50 = vld [vmem:[#allocation11 + $0xe0] sm:$0xff]  ;;  %v1414_v13 = vld [vmem:[#allocation11 + $0xa8] sm:$0xff] }
 0x1da   : > { %v1073_v42 = vadd.f32 %v1072_v29, %v3061_v28  ;;  %1475 = vmatpush.msrb.mxu2 %v1421_v50  ;;  %1605 = vmatpush.msrb.mxu0 %v1423_v39 }
 0x1db   : > { %1266 = vmatmul.f32.gmra.mxu0 %v1181_v47  ;;  %v960_v47 = vpop.f32.mrf.mxu0 }
 0x1dc   : > { %v1134_v41 = vpop.f32.mrf.mxu3 }
 0x1dd   : > { %v1135_v57 = vadd.f32 %v1134_v41, %v1070_v24  ;;  %v1422_v24 = vld [vmem:[#allocation11 + $0xe8] sm:$0xff] }
 0x1de   : > { %v1007_v8 = vpop.f32.mrf.mxu1  ;;  %1540 = vmatpush.msrb.mxu3 %v1422_v24 }
 0x1df   : > { %v1182_v32 = vmax.f32 %v1135_v57, 0.0  ;;  %v1008_v6 = vadd.f32 %v1007_v8, %v943_v53  ;;  %v1424_v8 = vld [vmem:[#allocation11 + $0xf8] sm:$0xff] }
 0x1e0   : > { %1670 = vmatpush.msrb.mxu1 %v1424_v8 }
 0x1e1   : > { %v1183_v48 = vmax.f32 %v1008_v6, 0.0  ;;  %1331 = vmatmul.f32.gmra.mxu1 %v1182_v32  ;;  %v1075_v15 = vpop.f32.mrf.mxu2  ;;  %v958_v32 = vadd.f32 %v957_v0, %v3058_v27  ;;  %v1417_v6 = vld [vmem:[#allocation11 + $0xc0] sm:$0xff] }
 0x1e2   : > { %v1076_v20 = vadd.f32 %v1075_v15, %v3061_v28  ;;  %1476 = vmatpush.msrb.mxu2 %v1417_v6 }
 0x1e3   : > { %1269 = vmatmul.f32.gmra.mxu0 %v1183_v48  ;;  %v963_v16 = vpop.f32.mrf.mxu0 }
 0x1e4   : > { %v1137_v58 = vpop.f32.mrf.mxu3 }
 0x1e5   : > { %v1138_v9 = vadd.f32 %v1137_v58, %v1073_v42  ;;  %v1418_v42 = vld [vmem:[#allocation11 + $0xc8] sm:$0xff] }
 0x1e6   : > { %v1010_v11 = vpop.f32.mrf.mxu1  ;;  %1541 = vmatpush.msrb.mxu3 %v1418_v42 }
 0x1e7   : > { %v1184_v59 = vmax.f32 %v1138_v9, 0.0  ;;  %v1011_v31 = vadd.f32 %v1010_v11, %v946_v34  ;;  %v1419_v11 = vld [vmem:[#allocation11 + $0xd0] sm:$0xff] }
 0x1e8   : > { %1606 = vmatpush.msrb.mxu0 %v1419_v11  ;;  %1542 = vmatpush.msrb.mxu3 %v1414_v13 }
 0x1e9   : > { %v1185_v33 = vmax.f32 %v1011_v31, 0.0  ;;  %1334 = vmatmul.f32.gmra.mxu1 %v1184_v59  ;;  %v1078_v52 = vpop.f32.mrf.mxu2  ;;  %v1420_v59 = vld [vmem:[#allocation11 + $0xd8] sm:$0xff]  ;;  %v1413_v31 = vld [vmem:[#allocation11 + $0xa0] sm:$0xff] }
 0x1ea   : > { %v1079_v38 = vadd.f32 %v1078_v52, %v3061_v28  ;;  %1671 = vmatpush.msrb.mxu1 %v1420_v59  ;;  %1477 = vmatpush.msrb.mxu2 %v1413_v31 }
 0x1eb   : > { %1272 = vmatmul.f32.gmra.mxu0 %v1185_v33  ;;  %v961_v33 = vadd.f32 %v960_v47, %v3058_v27  ;;  %v966_v46 = vpop.f32.mrf.mxu0 }
 0x1ec   : > { %v1140_v5 = vpop.f32.mrf.mxu3 }
 0x1ed   : > { %v1141_v36 = vadd.f32 %v1140_v5, %v1076_v20 }
 0x1ee   : > { %v1013_v43 = vpop.f32.mrf.mxu1 }
 0x1ef   : > { %v1186_v62 = vmax.f32 %v1141_v36, 0.0  ;;  %v1014_v18 = vadd.f32 %v1013_v43, %v949_v14  ;;  %v1415_v36 = vld [vmem:[#allocation11 + $0xb0] sm:$0xff]  ;;  %v1416_v43 = vld [vmem:[#allocation11 + $0xb8] sm:$0xff] }
 0x1f0   : > { %1607 = vmatpush.msrb.mxu0 %v1415_v36  ;;  %1672 = vmatpush.msrb.mxu1 %v1416_v43 }
 0x1f1   : > { %v1187_v25 = vmax.f32 %v1014_v18, 0.0  ;;  %1337 = vmatmul.f32.gmra.mxu1 %v1186_v62  ;;  %v1081_v12 = vpop.f32.mrf.mxu2  ;;  %v1409_v18 = vld [vmem:[#allocation11 + $0x80] sm:$0xff] }
 0x1f2   : > { %v1082_v10 = vadd.f32 %v1081_v12, %v3061_v28  ;;  %1478 = vmatpush.msrb.mxu2 %v1409_v18  ;;  %v964_v12 = vadd.f32 %v963_v16, %v3058_v27 }
 0x1f3   : > { %1275 = vmatmul.f32.gmra.mxu0 %v1187_v25 }
 0x1f4   : > { %v1143_v44 = vpop.f32.mrf.mxu3 }
 0x1f5   : > { %v1144_v49 = vadd.f32 %v1143_v44, %v1079_v38  ;;  %v1410_v38 = vld [vmem:[#allocation11 + $0x88] sm:$0xff]  ;;  %v1411_v44 = vld [vmem:[#allocation11 + $0x90] sm:$0xff] }
 0x1f6   : > { %v1016_v19 = vpop.f32.mrf.mxu1  ;;  %1543 = vmatpush.msrb.mxu3 %v1410_v38  ;;  %1608 = vmatpush.msrb.mxu0 %v1411_v44 }
 0x1f7   : > { %v1188_v1 = vmax.f32 %v1144_v49, 0.0  ;;  %v1017_v30 = vadd.f32 %v1016_v19, %v952_v2  ;;  %v1412_v49 = vld [vmem:[#allocation11 + $0x98] sm:$0xff]  ;;  %v969_v19 = vpop.f32.mrf.mxu0 }
 0x1f8   : > { %1673 = vmatpush.msrb.mxu1 %v1412_v49 }
 0x1f9   : > { %v1189_v7 = vmax.f32 %v1017_v30, 0.0  ;;  %1340 = vmatmul.f32.gmra.mxu1 %v1188_v1  ;;  %v1084_v55 = vpop.f32.mrf.mxu2  ;;  %v1405_v30 = vld [vmem:[#allocation11 + $0x60] sm:$0xff] }
 0x1fa   : > { %v1085_v45 = vadd.f32 %v1084_v55, %v3061_v28  ;;  %1479 = vmatpush.msrb.mxu2 %v1405_v30  ;;  %v967_v55 = vadd.f32 %v966_v46, %v3058_v27 }
 0x1fb   : > { %1278 = vmatmul.f32.gmra.mxu0 %v1189_v7 }
 0x1fc   : > { %v1146_v29 = vpop.f32.mrf.mxu3 }
 0x1fd   : > { %v1147_v26 = vadd.f32 %v1146_v29, %v1082_v10  ;;  %v1406_v10 = vld [vmem:[#allocation11 + $0x68] sm:$0xff]  ;;  %v1407_v29 = vld [vmem:[#allocation11 + $0x70] sm:$0xff] }
 0x1fe   : > { %v1019_v21 = vpop.f32.mrf.mxu1  ;;  %1544 = vmatpush.msrb.mxu3 %v1406_v10  ;;  %1609 = vmatpush.msrb.mxu0 %v1407_v29 }
 0x1ff   : > { %v1190_v53 = vmax.f32 %v1147_v26, 0.0  ;;  %v1020_v60 = vadd.f32 %v1019_v21, %v955_v56  ;;  %v1408_v26 = vld [vmem:[#allocation11 + $0x78] sm:$0xff] }
 0x200   : > { %1674 = vmatpush.msrb.mxu1 %v1408_v26 }
 0x201   : > { %v1191_v41 = vmax.f32 %v1020_v60, 0.0  ;;  %1343 = vmatmul.f32.gmra.mxu1 %v1190_v53  ;;  %v1087_v57 = vpop.f32.mrf.mxu2  ;;  %v1401_v53 = vld [vmem:[#allocation11 + $0x40] sm:$0xff]  ;;  %v1402_v60 = vld [vmem:[#allocation11 + $0x48] sm:$0xff] }
 0x202   : > { %v1088_v17 = vadd.f32 %v1087_v57, %v3061_v28  ;;  %1480 = vmatpush.msrb.mxu2 %v1401_v53  ;;  %1545 = vmatpush.msrb.mxu3 %v1402_v60  ;;  %v970_v57 = vadd.f32 %v969_v19, %v3058_v27 }
 0x203   : > { %1281 = vmatmul.f32.gmra.mxu0 %v1191_v41 }
 0x204   : > { %v1149_v48 = vpop.f32.mrf.mxu3 }
 0x205   : > { %v1150_v15 = vadd.f32 %v1149_v48, %v1085_v45  ;;  %v972_v45 = vpop.f32.mrf.mxu0  ;;  %v1403_v48 = vld [vmem:[#allocation11 + $0x50] sm:$0xff] }
 0x206   : > { %v1022_v22 = vpop.f32.mrf.mxu1  ;;  %1610 = vmatpush.msrb.mxu0 %v1403_v48 }
 0x207   : > { %v1192_v34 = vmax.f32 %v1150_v15, 0.0  ;;  %v1023_v4 = vadd.f32 %v1022_v22, %v958_v32  ;;  %v1404_v15 = vld [vmem:[#allocation11 + $0x58] sm:$0xff] }
 0x208   : > { %1675 = vmatpush.msrb.mxu1 %v1404_v15 }
 0x209   : > { %v1193_v58 = vmax.f32 %v1023_v4, 0.0  ;;  %1346 = vmatmul.f32.gmra.mxu1 %v1192_v34  ;;  %v1090_v9 = vpop.f32.mrf.mxu2  ;;  %v1397_v34 = vld [vmem:[#allocation11 + $0x20] sm:$0xff]  ;;  %v1398_v4 = vld [vmem:[#allocation11 + $0x28] sm:$0xff] }
 0x20a   : > { %v1091_v62 = vadd.f32 %v1090_v9, %v3061_v28  ;;  %1481 = vmatpush.msrb.mxu2 %v1397_v34  ;;  %1546 = vmatpush.msrb.mxu3 %v1398_v4 }
 0x20b   : > { %1284 = vmatmul.f32.gmra.mxu0 %v1193_v58  ;;  %v973_v58 = vadd.f32 %v972_v45, %v3058_v27  ;;  %v3097_v45 = vld [vmem:[%s3326_s6] ss:$0 sm:$0xff] }
 0x20c   : > { %v1152_v20 = vpop.f32.mrf.mxu3 }
 0x20d   : > { %v1153_v52 = vadd.f32 %v1152_v20, %v1088_v17  ;;  %v975_v11 = vpop.f32.mrf.mxu0 }
 0x20e   : > { %v1025_v63 = vpop.f32.mrf.mxu1 }
 0x20f   : > { %v1194_v51 = vmax.f32 %v1153_v52, 0.0  ;;  %v1026_v14 = vadd.f32 %v1025_v63, %v961_v33  ;;  %v1399_v33 = vld [vmem:[#allocation11 + $0x30] sm:$0xff]  ;;  %v1400_v52 = vld [vmem:[#allocation11 + $0x38] sm:$0xff]  ;;  %v1393_v63 = vld [vmem:[#allocation11] sm:$0xff] }
 0x210   : > { %1611 = vmatpush.msrb.mxu0 %v1399_v33  ;;  %1676 = vmatpush.msrb.mxu1 %v1400_v52 }
 0x211   : > { %v1195_v37 = vmax.f32 %v1026_v14, 0.0  ;;  %1349 = vmatmul.f32.gmra.mxu1 %v1194_v51  ;;  %v1093_v5 = vpop.f32.mrf.mxu2  ;;  %v1394_v51 = vld [vmem:[#allocation11 + $0x8] sm:$0xff]  ;;  %1482 = vmatpush.msrb.mxu2 %v1393_v63 }
 0x212   : > { %v1094_v1 = vadd.f32 %v1093_v5, %v3061_v28  ;;  %1547 = vmatpush.msrb.mxu3 %v1394_v51  ;;  %v976_v5 = vadd.f32 %v975_v11, %v3058_v27 }
 0x213   : > { %1287 = vmatmul.f32.gmra.mxu0 %v1195_v37 }
 0x214   : > { %v1155_v25 = vpop.f32.mrf.mxu3 }
 0x215   : > { %v1156_v54 = vadd.f32 %v1155_v25, %v1091_v62  ;;  %v978_v38 = vpop.f32.mrf.mxu0 }
 0x216   : > { %v1028_v61 = vpop.f32.mrf.mxu1 }
 0x217   : > { %v1196_v0 = vmax.f32 %v1156_v54, 0.0  ;;  %v1029_v2 = vadd.f32 %v1028_v61, %v964_v12  ;;  %v1395_v12 = vld [vmem:[#allocation11 + $0x10] sm:$0xff]  ;;  %v1396_v54 = vld [vmem:[#allocation11 + $0x18] sm:$0xff] }
 0x218   : > { %1612 = vmatpush.msrb.mxu0 %v1395_v12  ;;  %1677 = vmatpush.msrb.mxu1 %v1396_v54 }
 0x219   : > { %v1197_v3 = vmax.f32 %v1029_v2, 0.0  ;;  %1352 = vmatmul.f32.gmra.mxu1 %v1196_v0  ;;  %v1096_v40 = vpop.f32.mrf.mxu2  ;;  %v979_v2 = vadd.f32 %v978_v38, %v3058_v27 }
 0x21a   : > { %v1097_v21 = vadd.f32 %v1096_v40, %v3061_v28 }
 0x21b   : > { %1290 = vmatmul.f32.gmra.mxu0 %v1197_v3 }
 0x21c   : > { %v1158_v7 = vpop.f32.mrf.mxu3 }
 0x21d   : > { %v1159_v23 = vadd.f32 %v1158_v7, %v1094_v1  ;;  %v981_v30 = vpop.f32.mrf.mxu0 }
 0x21e   : > { %v1031_v35 = vpop.f32.mrf.mxu1 }
 0x21f   : > { %v1198_v56 = vmax.f32 %v1159_v23, 0.0  ;;  %v1032_v50 = vadd.f32 %v1031_v35, %v967_v55  ;;  %v982_v55 = vadd.f32 %v981_v30, %v3058_v27 }
 0x221   : > { %v1199_v24 = vmax.f32 %v1032_v50, 0.0  ;;  %1355 = vmatmul.f32.gmra.mxu1 %v1198_v56  ;;  %v1099_v47 = vpop.f32.mrf.mxu2 }
 0x222   : > { %v1100_v22 = vadd.f32 %v1099_v47, %v3061_v28 }
 0x223   : > { %1293 = vmatmul.f32.gmra.mxu0 %v1199_v24 }
 0x224   : > { %v1161_v41 = vpop.f32.mrf.mxu3 }
 0x225   : > { %v1162_v39 = vadd.f32 %v1161_v41, %v1097_v21 }
 0x226   : > { %v1034_v8 = vpop.f32.mrf.mxu1 }
 0x227   : > { %v1200_v32 = vmax.f32 %v1162_v39, 0.0  ;;  %v1035_v6 = vadd.f32 %v1034_v8, %v970_v57 }
 0x229   : > { %v1201_v42 = vmax.f32 %v1035_v6, 0.0  ;;  %1358 = vmatmul.f32.gmra.mxu1 %v1200_v32  ;;  %v1102_v16 = vpop.f32.mrf.mxu2 }
 0x22a   : > { %v1103_v14 = vadd.f32 %v1102_v16, %v3061_v28 }
 0x22b   : > { %1296 = vmatmul.f32.gmra.mxu0 %v1201_v42 }
 0x22c   : > { %v1164_v17 = vpop.f32.mrf.mxu3 }
 0x22d   : > { %v1165_v9 = vadd.f32 %v1164_v17, %v1100_v22 }
 0x22e   : > { %v1037_v59 = vpop.f32.mrf.mxu1 }
 0x22f   : > { %v1202_v31 = vmax.f32 %v1165_v9, 0.0  ;;  %v1038_v13 = vadd.f32 %v1037_v59, %v973_v58 }
 0x231   : > { %v1203_v20 = vmax.f32 %v1038_v13, 0.0  ;;  %1361 = vmatmul.f32.gmra.mxu1 %v1202_v31  ;;  %v1105_v46 = vpop.f32.mrf.mxu2 }
 0x232   : > { %v1106_v61 = vadd.f32 %v1105_v46, %v3061_v28 }
 0x233   : > { %1299 = vmatmul.f32.gmra.mxu0 %v1203_v20 }
 0x234   : > { %v1167_v37 = vpop.f32.mrf.mxu3 }
 0x235   : > { %v1168_v36 = vadd.f32 %v1167_v37, %v1103_v14 }
 0x236   : > { %v1040_v43 = vpop.f32.mrf.mxu1 }
 0x237   : > { %v1204_v62 = vmax.f32 %v1168_v36, 0.0  ;;  %v1041_v18 = vadd.f32 %v1040_v43, %v976_v5 }
 0x239   : > { %v1205_v25 = vmax.f32 %v1041_v18, 0.0  ;;  %1364 = vmatmul.f32.gmra.mxu1 %v1204_v62  ;;  %v1108_v40 = vpop.f32.mrf.mxu2 }
 0x23a   : > { %v1109_v10 = vadd.f32 %v1108_v40, %v3061_v28 }
 0x23b   : > { %1302 = vmatmul.f32.gmra.mxu0 %v1205_v25 }
 0x23c   : > { %v1170_v0 = vpop.f32.mrf.mxu3 }
 0x23d   : > { %v1171_v3 = vadd.f32 %v1170_v0, %v1106_v61 }
 0x23e   : > { %v1043_v44 = vpop.f32.mrf.mxu1 }
 0x23f   : > { %v1206_v49 = vmax.f32 %v1171_v3, 0.0  ;;  %v1044_v19 = vadd.f32 %v1043_v44, %v979_v2 }
 0x241   : > { %v1207_v1 = vmax.f32 %v1044_v19, 0.0  ;;  %1367 = vmatmul.f32.gmra.mxu1 %v1206_v49  ;;  %v1111_v24 = vpop.f32.mrf.mxu2 }
 0x242   : > { %v1112_v29 = vadd.f32 %v1111_v24, %v3061_v28 }
 0x243   : > { %1305 = vmatmul.f32.gmra.mxu0 %v1207_v1 }
 0x244   : > { %v1173_v7 = vpop.f32.mrf.mxu3 }
 0x245   : > { %v1174_v23 = vadd.f32 %v1173_v7, %v1109_v10 }
 0x246   : > { %v1046_v35 = vpop.f32.mrf.mxu1 }
 0x247   : > { %v1208_v56 = vmax.f32 %v1174_v23, 0.0  ;;  %v1047_v50 = vadd.f32 %v1046_v35, %v982_v55 }
 0x249   : > { %v1209_v47 = vmax.f32 %v1047_v50, 0.0  ;;  %1370 = vmatmul.f32.gmra.mxu1 %v1208_v56 }
 0x24b   : > { %1308 = vmatmul.f32.gmra.mxu0 %v1209_v47 }
 0x24c   : > { %v1176_v26 = vpop.f32.mrf.mxu3 }
 0x24d   : > { %v1177_v21 = vadd.f32 %v1176_v26, %v1112_v29 }
 0x24f   : > { %v1210_v53 = vmax.f32 %v1177_v21, 0.0 }
 0x250   : > { %v1264_v60 = vpop.f32.mrf.mxu0 }
 0x251   : > { %1373 = vmatmul.f32.gmra.mxu1 %v1210_v53  ;;  %v1265_v27 = vadd.f32 %v3097_v45, %v1264_v60 }
 0x256   : > { %v1329_v41 = vpop.f32.mrf.mxu1 }
 0x257   : > { %v1330_v57 = vadd.f32 %v1329_v41, %v1265_v27 }
 0x258   : > { %v1267_v39 = vpop.f32.mrf.mxu0 }
 0x259   : > { %v1377_v8 = vmax.f32 %v1330_v57, 0.0  ;;  %v1268_v28 = vadd.f32 %v3097_v45, %v1267_v39 }
 0x25b   : > { %1483 = vmatmul.f32.vlgmr.msrb.gmra.mxu2 %v1377_v8  ;;  %1548 = vmatmul.f32.vlgmr.msrb.gmra.mxu3 %v1377_v8 }
 0x25c   : > { %1613 = vmatmul.f32.vlgmr.msrb.gmra.mxu0 %v1377_v8  ;;  %1678 = vmatmul.f32.vlgmr.msrb.gmra.mxu1 %v1377_v8 }
 0x25e   : > { %v1332_v32 = vpop.f32.mrf.mxu1 }
 0x25f   : > { %v1333_v6 = vadd.f32 %v1332_v32, %v1268_v28 }
 0x260   : > { %v1270_v42 = vpop.f32.mrf.mxu0 }
 0x261   : > { %v1378_v48 = vmax.f32 %v1333_v6, 0.0  ;;  %v1271_v15 = vadd.f32 %v3097_v45, %v1270_v42 }
 0x263   : > { %1486 = vmatmul.f32.gmra.mxu2 %v1378_v48  ;;  %1551 = vmatmul.f32.gmra.mxu3 %v1378_v48 }
 0x264   : > { %1616 = vmatmul.f32.gmra.mxu0 %v1378_v48  ;;  %1681 = vmatmul.f32.gmra.mxu1 %v1378_v48 }
 0x266   : > { %v1335_v16 = vpop.f32.mrf.mxu1 }
 0x267   : > { %v1336_v22 = vadd.f32 %v1335_v16, %v1271_v15 }
 0x268   : > { %v1273_v34 = vpop.f32.mrf.mxu0 }
 0x269   : > { %v1379_v4 = vmax.f32 %v1336_v22, 0.0  ;;  %v1274_v17 = vadd.f32 %v3097_v45, %v1273_v34 }
 0x26b   : > { %1489 = vmatmul.f32.gmra.mxu2 %v1379_v4  ;;  %1554 = vmatmul.f32.gmra.mxu3 %v1379_v4 }
 0x26c   : > { %1619 = vmatmul.f32.gmra.mxu0 %v1379_v4  ;;  %1684 = vmatmul.f32.gmra.mxu1 %v1379_v4 }
 0x26e   : > { %v1338_v58 = vpop.f32.mrf.mxu1 }
 0x26f   : > { %v1339_v9 = vadd.f32 %v1338_v58, %v1274_v17  ;;  %v1457_v58 = vld [vmem:[%s3328_s8] sm:$0xf] }
 0x270   : > { %v1276_v11 = vpop.f32.mrf.mxu0 }
 0x271   : > { %v1380_v59 = vmax.f32 %v1339_v9, 0.0  ;;  %v1277_v31 = vadd.f32 %v3097_v45, %v1276_v11  ;;  %v3118_v9 = vperm.slane %v1457_v58, 2  ;;  %v3120_v11 = vperm.slane %v1457_v58, 3 }
 0x273   : > { %1492 = vmatmul.f32.gmra.mxu2 %v1380_v59  ;;  %1557 = vmatmul.f32.gmra.mxu3 %v1380_v59 }
 0x274   : > { %1622 = vmatmul.f32.gmra.mxu0 %v1380_v59  ;;  %1687 = vmatmul.f32.gmra.mxu1 %v1380_v59 }
 0x276   : > { %v1341_v13 = vpop.f32.mrf.mxu1 }
 0x277   : > { %v1342_v20 = vadd.f32 %v1341_v13, %v1277_v31 }
 0x278   : > { %v1279_v33 = vpop.f32.mrf.mxu0 }
 0x279   : > { %v1381_v52 = vmax.f32 %v1342_v20, 0.0  ;;  %v1280_v63 = vadd.f32 %v3097_v45, %v1279_v33  ;;  %v3125_v20 = vperm.slane %v1457_v58, 0  ;;  %v3127_v33 = vperm.slane %v1457_v58, 1 }
 0x27b   : > { %1495 = vmatmul.f32.gmra.mxu2 %v1381_v52  ;;  %1560 = vmatmul.f32.gmra.mxu3 %v1381_v52 }
 0x27c   : > { %1625 = vmatmul.f32.gmra.mxu0 %v1381_v52  ;;  %1690 = vmatmul.f32.gmra.mxu1 %v1381_v52 }
 0x27e   : > { %v1344_v51 = vpop.f32.mrf.mxu1 }
 0x27f   : > { %v1345_v14 = vadd.f32 %v1344_v51, %v1280_v63 }
 0x280   : > { %v1282_v46 = vpop.f32.mrf.mxu0 }
 0x281   : > { %v1382_v37 = vmax.f32 %v1345_v14, 0.0  ;;  %v1283_v5 = vadd.f32 %v3097_v45, %v1282_v46 }
 0x283   : > { %1498 = vmatmul.f32.gmra.mxu2 %v1382_v37  ;;  %1563 = vmatmul.f32.gmra.mxu3 %v1382_v37 }
 0x284   : > { %1628 = vmatmul.f32.gmra.mxu0 %v1382_v37  ;;  %1693 = vmatmul.f32.gmra.mxu1 %v1382_v37 }
 0x286   : > { %v1347_v36 = vpop.f32.mrf.mxu1 }
 0x287   : > { %v1348_v43 = vadd.f32 %v1347_v36, %v1283_v5 }
 0x288   : > { %v1285_v62 = vpop.f32.mrf.mxu0 }
 0x289   : > { %v1383_v18 = vmax.f32 %v1348_v43, 0.0  ;;  %v1286_v38 = vadd.f32 %v3097_v45, %v1285_v62 }
 0x28b   : > { %1501 = vmatmul.f32.gmra.mxu2 %v1383_v18  ;;  %1566 = vmatmul.f32.gmra.mxu3 %v1383_v18 }
 0x28c   : > { %1631 = vmatmul.f32.gmra.mxu0 %v1383_v18  ;;  %1696 = vmatmul.f32.gmra.mxu1 %v1383_v18 }
 0x28e   : > { %v1350_v25 = vpop.f32.mrf.mxu1 }
 0x28f   : > { %v1351_v12 = vadd.f32 %v1350_v25, %v1286_v38 }
 0x290   : > { %v1288_v54 = vpop.f32.mrf.mxu0 }
 0x291   : > { %v1384_v61 = vmax.f32 %v1351_v12, 0.0  ;;  %v1289_v0 = vadd.f32 %v3097_v45, %v1288_v54 }
 0x293   : > { %1504 = vmatmul.f32.gmra.mxu2 %v1384_v61  ;;  %1569 = vmatmul.f32.gmra.mxu3 %v1384_v61 }
 0x294   : > { %1634 = vmatmul.f32.gmra.mxu0 %v1384_v61  ;;  %1699 = vmatmul.f32.gmra.mxu1 %v1384_v61 }
 0x296   : > { %v1353_v2 = vpop.f32.mrf.mxu1 }
 0x297   : > { %v1354_v3 = vadd.f32 %v1353_v2, %v1289_v0 }
 0x298   : > { %v1291_v40 = vpop.f32.mrf.mxu0 }
 0x299   : > { %v1385_v44 = vmax.f32 %v1354_v3, 0.0  ;;  %v1292_v49 = vadd.f32 %v3097_v45, %v1291_v40 }
 0x29b   : > { %1507 = vmatmul.f32.gmra.mxu2 %v1385_v44  ;;  %1572 = vmatmul.f32.gmra.mxu3 %v1385_v44 }
 0x29c   : > { %1637 = vmatmul.f32.gmra.mxu0 %v1385_v44  ;;  %1702 = vmatmul.f32.gmra.mxu1 %v1385_v44 }
 0x29e   : > { %v1356_v19 = vpop.f32.mrf.mxu1 }
 0x29f   : > { %v1357_v1 = vadd.f32 %v1356_v19, %v1292_v49 }
 0x2a0   : > { %v1294_v30 = vpop.f32.mrf.mxu0 }
 0x2a1   : > { %v1386_v10 = vmax.f32 %v1357_v1, 0.0  ;;  %v1295_v7 = vadd.f32 %v3097_v45, %v1294_v30 }
 0x2a3   : > { %1510 = vmatmul.f32.gmra.mxu2 %v1386_v10  ;;  %1575 = vmatmul.f32.gmra.mxu3 %v1386_v10 }
 0x2a4   : > { %1640 = vmatmul.f32.gmra.mxu0 %v1386_v10  ;;  %1705 = vmatmul.f32.gmra.mxu1 %v1386_v10 }
 0x2a6   : > { %v1359_v55 = vpop.f32.mrf.mxu1 }
 0x2a7   : > { %v1360_v23 = vadd.f32 %v1359_v55, %v1295_v7 }
 0x2a8   : > { %v1297_v35 = vpop.f32.mrf.mxu0 }
 0x2a9   : > { %v1387_v56 = vmax.f32 %v1360_v23, 0.0  ;;  %v1298_v50 = vadd.f32 %v3097_v45, %v1297_v35 }
 0x2ab   : > { %1513 = vmatmul.f32.gmra.mxu2 %v1387_v56  ;;  %1578 = vmatmul.f32.gmra.mxu3 %v1387_v56 }
 0x2ac   : > { %1643 = vmatmul.f32.gmra.mxu0 %v1387_v56  ;;  %1708 = vmatmul.f32.gmra.mxu1 %v1387_v56 }
 0x2ae   : > { %v1362_v24 = vpop.f32.mrf.mxu1 }
 0x2af   : > { %v1363_v47 = vadd.f32 %v1362_v24, %v1298_v50 }
 0x2b0   : > { %v1300_v29 = vpop.f32.mrf.mxu0 }
 0x2b1   : > { %v1388_v26 = vmax.f32 %v1363_v47, 0.0  ;;  %v1301_v21 = vadd.f32 %v3097_v45, %v1300_v29 }
 0x2b3   : > { %1516 = vmatmul.f32.gmra.mxu2 %v1388_v26  ;;  %1581 = vmatmul.f32.gmra.mxu3 %v1388_v26 }
 0x2b4   : > { %1646 = vmatmul.f32.gmra.mxu0 %v1388_v26  ;;  %1711 = vmatmul.f32.gmra.mxu1 %v1388_v26 }
 0x2b6   : > { %v1365_v53 = vpop.f32.mrf.mxu1 }
 0x2b7   : > { %v1366_v60 = vadd.f32 %v1365_v53, %v1301_v21 }
 0x2b8   : > { %v1303_v27 = vpop.f32.mrf.mxu0 }
 0x2b9   : > { %v1389_v41 = vmax.f32 %v1366_v60, 0.0  ;;  %v1304_v57 = vadd.f32 %v3097_v45, %v1303_v27 }
 0x2bb   : > { %1519 = vmatmul.f32.gmra.mxu2 %v1389_v41  ;;  %1584 = vmatmul.f32.gmra.mxu3 %v1389_v41 }
 0x2bc   : > { %1649 = vmatmul.f32.gmra.mxu0 %v1389_v41  ;;  %1714 = vmatmul.f32.gmra.mxu1 %v1389_v41 }
 0x2be   : > { %v1368_v39 = vpop.f32.mrf.mxu1 }
 0x2bf   : > { %v1369_v8 = vadd.f32 %v1368_v39, %v1304_v57 }
 0x2c0   : > { %v1306_v28 = vpop.f32.mrf.mxu0 }
 0x2c1   : > { %v1390_v32 = vmax.f32 %v1369_v8, 0.0  ;;  %v1307_v6 = vadd.f32 %v3097_v45, %v1306_v28 }
 0x2c3   : > { %1522 = vmatmul.f32.gmra.mxu2 %v1390_v32  ;;  %1587 = vmatmul.f32.gmra.mxu3 %v1390_v32 }
 0x2c4   : > { %1652 = vmatmul.f32.gmra.mxu0 %v1390_v32  ;;  %1717 = vmatmul.f32.gmra.mxu1 %v1390_v32 }
 0x2c6   : > { %v1371_v42 = vpop.f32.mrf.mxu1 }
 0x2c7   : > { %v1372_v48 = vadd.f32 %v1371_v42, %v1307_v6 }
 0x2c8   : > { %v1309_v16 = vpop.f32.mrf.mxu0 }
 0x2c9   : > { %v1391_v15 = vmax.f32 %v1372_v48, 0.0  ;;  %v1310_v22 = vadd.f32 %v3097_v45, %v1309_v16 }
 0x2cb   : > { %1525 = vmatmul.f32.gmra.mxu2 %v1391_v15  ;;  %1590 = vmatmul.f32.gmra.mxu3 %v1391_v15 }
 0x2cc   : > { %1655 = vmatmul.f32.gmra.mxu0 %v1391_v15  ;;  %1720 = vmatmul.f32.gmra.mxu1 %v1391_v15 }
 0x2ce   : > { %v1374_v34 = vpop.f32.mrf.mxu1 }
 0x2cf   : > { %v1375_v4 = vadd.f32 %v1374_v34, %v1310_v22 }
 0x2d1   : > { %v1392_v17 = vmax.f32 %v1375_v4, 0.0 }
 0x2d3   : > { %1528 = vmatmul.f32.gmra.mxu2 %v1392_v17  ;;  %1593 = vmatmul.f32.gmra.mxu3 %v1392_v17 }
 0x2d4   : > { %1658 = vmatmul.f32.gmra.mxu0 %v1392_v17  ;;  %1723 = vmatmul.f32.gmra.mxu1 %v1392_v17 }
 0x2d9   : > { %v1614_v59 = vpop.f32.mrf.mxu0  ;;  %v1679_v31 = vpop.f32.mrf.mxu1 }
 0x2da   : > { %v1615_v45 = vadd.f32 %v1614_v59, %v3118_v9  ;;  %v1680_v13 = vadd.f32 %v1679_v31, %v3120_v11 }
 0x2dc   : > { %v1729_v52 = vmax.f32 %v1615_v45, 0.0  ;;  %v1730_v63 = vmax.f32 %v1680_v13, 0.0 }
 0x2de   : > { %1793 = vst [vmem:[%s3129_s30 + $0x10] sm:$0xff] %v1729_v52  ;;  %v1484_v51 = vpop.f32.mrf.mxu2  ;;  %v1549_v14 = vpop.f32.mrf.mxu3 }
 0x2df   : > { %1794 = vst [vmem:[%s3129_s30 + $0x18] sm:$0xff] %v1730_v63  ;;  %v1485_v46 = vadd.f32 %v1484_v51, %v3125_v20  ;;  %v1550_v37 = vadd.f32 %v1549_v14, %v3127_v33 }
 0x2e1   : > { %v1727_v5 = vmax.f32 %v1485_v46, 0.0  ;;  %v1728_v36 = vmax.f32 %v1550_v37, 0.0  ;;  %v1617_v43 = vpop.f32.mrf.mxu0  ;;  %v1682_v62 = vpop.f32.mrf.mxu1 }
 0x2e2   : > { %v1618_v18 = vadd.f32 %v1617_v43, %v3118_v9  ;;  %v1683_v38 = vadd.f32 %v1682_v62, %v3120_v11 }
 0x2e3   : > { %1791 = vst [vmem:[%s3129_s30] sm:$0xff] %v1727_v5 }
 0x2e4   : > { %1792 = vst [vmem:[%s3129_s30 + $0x8] sm:$0xff] %v1728_v36  ;;  %v1733_v25 = vmax.f32 %v1618_v18, 0.0  ;;  %v1734_v12 = vmax.f32 %v1683_v38, 0.0 }
 0x2e6   : > { %1797 = vst [vmem:[%s3129_s30 + $0x30] sm:$0xff] %v1733_v25  ;;  %v1487_v54 = vpop.f32.mrf.mxu2  ;;  %v1552_v61 = vpop.f32.mrf.mxu3 }
 0x2e7   : > { %1798 = vst [vmem:[%s3129_s30 + $0x38] sm:$0xff] %v1734_v12  ;;  %v1488_v0 = vadd.f32 %v1487_v54, %v3125_v20  ;;  %v1553_v2 = vadd.f32 %v1552_v61, %v3127_v33 }
 0x2e9   : > { %v1731_v3 = vmax.f32 %v1488_v0, 0.0  ;;  %v1732_v40 = vmax.f32 %v1553_v2, 0.0  ;;  %v1620_v44 = vpop.f32.mrf.mxu0  ;;  %v1685_v49 = vpop.f32.mrf.mxu1 }
 0x2ea   : > { %v1621_v19 = vadd.f32 %v1620_v44, %v3118_v9  ;;  %v1686_v1 = vadd.f32 %v1685_v49, %v3120_v11 }
 0x2eb   : > { %1795 = vst [vmem:[%s3129_s30 + $0x20] sm:$0xff] %v1731_v3 }
 0x2ec   : > { %1796 = vst [vmem:[%s3129_s30 + $0x28] sm:$0xff] %v1732_v40  ;;  %v1737_v30 = vmax.f32 %v1621_v19, 0.0  ;;  %v1738_v10 = vmax.f32 %v1686_v1, 0.0 }
 0x2ee   : > { %1801 = vst [vmem:[%s3129_s30 + $0x50] sm:$0xff] %v1737_v30  ;;  %v1490_v7 = vpop.f32.mrf.mxu2  ;;  %v1555_v55 = vpop.f32.mrf.mxu3 }
 0x2ef   : > { %1802 = vst [vmem:[%s3129_s30 + $0x58] sm:$0xff] %v1738_v10  ;;  %v1491_v23 = vadd.f32 %v1490_v7, %v3125_v20  ;;  %v1556_v35 = vadd.f32 %v1555_v55, %v3127_v33 }
 0x2f1   : > { %v1735_v56 = vmax.f32 %v1491_v23, 0.0  ;;  %v1736_v50 = vmax.f32 %v1556_v35, 0.0  ;;  %v1623_v24 = vpop.f32.mrf.mxu0  ;;  %v1688_v47 = vpop.f32.mrf.mxu1 }
 0x2f2   : > { %v1624_v29 = vadd.f32 %v1623_v24, %v3118_v9  ;;  %v1689_v26 = vadd.f32 %v1688_v47, %v3120_v11 }
 0x2f3   : > { %1799 = vst [vmem:[%s3129_s30 + $0x40] sm:$0xff] %v1735_v56 }
 0x2f4   : > { %1800 = vst [vmem:[%s3129_s30 + $0x48] sm:$0xff] %v1736_v50  ;;  %v1741_v21 = vmax.f32 %v1624_v29, 0.0  ;;  %v1742_v53 = vmax.f32 %v1689_v26, 0.0 }
 0x2f6   : > { %1805 = vst [vmem:[%s3129_s30 + $0x70] sm:$0xff] %v1741_v21  ;;  %v1493_v60 = vpop.f32.mrf.mxu2  ;;  %v1558_v27 = vpop.f32.mrf.mxu3 }
 0x2f7   : > { %1806 = vst [vmem:[%s3129_s30 + $0x78] sm:$0xff] %v1742_v53  ;;  %v1494_v41 = vadd.f32 %v1493_v60, %v3125_v20  ;;  %v1559_v57 = vadd.f32 %v1558_v27, %v3127_v33 }
 0x2f9   : > { %v1739_v39 = vmax.f32 %v1494_v41, 0.0  ;;  %v1740_v8 = vmax.f32 %v1559_v57, 0.0  ;;  %v1626_v28 = vpop.f32.mrf.mxu0  ;;  %v1691_v32 = vpop.f32.mrf.mxu1 }
 0x2fa   : > { %v1627_v6 = vadd.f32 %v1626_v28, %v3118_v9  ;;  %v1692_v42 = vadd.f32 %v1691_v32, %v3120_v11 }
 0x2fb   : > { %1803 = vst [vmem:[%s3129_s30 + $0x60] sm:$0xff] %v1739_v39 }
 0x2fc   : > { %1804 = vst [vmem:[%s3129_s30 + $0x68] sm:$0xff] %v1740_v8  ;;  %v1745_v48 = vmax.f32 %v1627_v6, 0.0  ;;  %v1746_v15 = vmax.f32 %v1692_v42, 0.0 }
 0x2fe   : > { %1809 = vst [vmem:[%s3129_s30 + $0x90] sm:$0xff] %v1745_v48  ;;  %v1496_v16 = vpop.f32.mrf.mxu2  ;;  %v1561_v22 = vpop.f32.mrf.mxu3 }
 0x2ff   : > { %1810 = vst [vmem:[%s3129_s30 + $0x98] sm:$0xff] %v1746_v15  ;;  %v1497_v34 = vadd.f32 %v1496_v16, %v3125_v20  ;;  %v1562_v4 = vadd.f32 %v1561_v22, %v3127_v33 }
 0x301   : > { %v1743_v17 = vmax.f32 %v1497_v34, 0.0  ;;  %v1744_v58 = vmax.f32 %v1562_v4, 0.0  ;;  %v1629_v59 = vpop.f32.mrf.mxu0  ;;  %v1694_v31 = vpop.f32.mrf.mxu1 }
 0x302   : > { %v1630_v45 = vadd.f32 %v1629_v59, %v3118_v9  ;;  %v1695_v13 = vadd.f32 %v1694_v31, %v3120_v11 }
 0x303   : > { %1807 = vst [vmem:[%s3129_s30 + $0x80] sm:$0xff] %v1743_v17 }
 0x304   : > { %1808 = vst [vmem:[%s3129_s30 + $0x88] sm:$0xff] %v1744_v58  ;;  %v1749_v52 = vmax.f32 %v1630_v45, 0.0  ;;  %v1750_v63 = vmax.f32 %v1695_v13, 0.0 }
 0x306   : > { %1813 = vst [vmem:[%s3129_s30 + $0xb0] sm:$0xff] %v1749_v52  ;;  %v1499_v51 = vpop.f32.mrf.mxu2  ;;  %v1564_v14 = vpop.f32.mrf.mxu3 }
 0x307   : > { %1814 = vst [vmem:[%s3129_s30 + $0xb8] sm:$0xff] %v1750_v63  ;;  %v1500_v46 = vadd.f32 %v1499_v51, %v3125_v20  ;;  %v1565_v37 = vadd.f32 %v1564_v14, %v3127_v33 }
 0x309   : > { %v1747_v5 = vmax.f32 %v1500_v46, 0.0  ;;  %v1748_v36 = vmax.f32 %v1565_v37, 0.0  ;;  %v1632_v43 = vpop.f32.mrf.mxu0  ;;  %v1697_v62 = vpop.f32.mrf.mxu1 }
 0x30a   : > { %v1633_v18 = vadd.f32 %v1632_v43, %v3118_v9  ;;  %v1698_v38 = vadd.f32 %v1697_v62, %v3120_v11 }
 0x30b   : > { %1811 = vst [vmem:[%s3129_s30 + $0xa0] sm:$0xff] %v1747_v5 }
 0x30c   : > { %1812 = vst [vmem:[%s3129_s30 + $0xa8] sm:$0xff] %v1748_v36  ;;  %v1753_v25 = vmax.f32 %v1633_v18, 0.0  ;;  %v1754_v12 = vmax.f32 %v1698_v38, 0.0 }
 0x30e   : > { %1817 = vst [vmem:[%s3129_s30 + $0xd0] sm:$0xff] %v1753_v25  ;;  %v1502_v54 = vpop.f32.mrf.mxu2  ;;  %v1567_v61 = vpop.f32.mrf.mxu3 }
 0x30f   : > { %1818 = vst [vmem:[%s3129_s30 + $0xd8] sm:$0xff] %v1754_v12  ;;  %v1503_v0 = vadd.f32 %v1502_v54, %v3125_v20  ;;  %v1568_v2 = vadd.f32 %v1567_v61, %v3127_v33 }
 0x311   : > { %v1751_v3 = vmax.f32 %v1503_v0, 0.0  ;;  %v1752_v40 = vmax.f32 %v1568_v2, 0.0  ;;  %v1635_v44 = vpop.f32.mrf.mxu0  ;;  %v1700_v49 = vpop.f32.mrf.mxu1 }
 0x312   : > { %v1636_v19 = vadd.f32 %v1635_v44, %v3118_v9  ;;  %v1701_v1 = vadd.f32 %v1700_v49, %v3120_v11 }
 0x313   : > { %1815 = vst [vmem:[%s3129_s30 + $0xc0] sm:$0xff] %v1751_v3 }
 0x314   : > { %1816 = vst [vmem:[%s3129_s30 + $0xc8] sm:$0xff] %v1752_v40  ;;  %v1757_v30 = vmax.f32 %v1636_v19, 0.0  ;;  %v1758_v10 = vmax.f32 %v1701_v1, 0.0 }
 0x316   : > { %1821 = vst [vmem:[%s3129_s30 + $0xf0] sm:$0xff] %v1757_v30  ;;  %v1505_v7 = vpop.f32.mrf.mxu2  ;;  %v1570_v55 = vpop.f32.mrf.mxu3 }
 0x317   : > { %1822 = vst [vmem:[%s3129_s30 + $0xf8] sm:$0xff] %v1758_v10  ;;  %v1506_v23 = vadd.f32 %v1505_v7, %v3125_v20  ;;  %v1571_v35 = vadd.f32 %v1570_v55, %v3127_v33 }
 0x319   : > { %v1755_v56 = vmax.f32 %v1506_v23, 0.0  ;;  %v1756_v50 = vmax.f32 %v1571_v35, 0.0  ;;  %v1638_v24 = vpop.f32.mrf.mxu0  ;;  %v1703_v47 = vpop.f32.mrf.mxu1 }
 0x31a   : > { %v1639_v29 = vadd.f32 %v1638_v24, %v3118_v9  ;;  %v1704_v26 = vadd.f32 %v1703_v47, %v3120_v11 }
 0x31b   : > { %1819 = vst [vmem:[%s3129_s30 + $0xe0] sm:$0xff] %v1755_v56 }
 0x31c   : > { %1820 = vst [vmem:[%s3129_s30 + $0xe8] sm:$0xff] %v1756_v50  ;;  %v1761_v21 = vmax.f32 %v1639_v29, 0.0  ;;  %v1762_v53 = vmax.f32 %v1704_v26, 0.0 }
 0x31e   : > { %1825 = vst [vmem:[%s3129_s30 + $0x110] sm:$0xff] %v1761_v21  ;;  %v1508_v60 = vpop.f32.mrf.mxu2  ;;  %v1573_v27 = vpop.f32.mrf.mxu3 }
 0x31f   : > { %1826 = vst [vmem:[%s3129_s30 + $0x118] sm:$0xff] %v1762_v53  ;;  %v1509_v41 = vadd.f32 %v1508_v60, %v3125_v20  ;;  %v1574_v57 = vadd.f32 %v1573_v27, %v3127_v33 }
 0x321   : > { %v1759_v39 = vmax.f32 %v1509_v41, 0.0  ;;  %v1760_v8 = vmax.f32 %v1574_v57, 0.0  ;;  %v1641_v28 = vpop.f32.mrf.mxu0  ;;  %v1706_v32 = vpop.f32.mrf.mxu1 }
 0x322   : > { %v1642_v6 = vadd.f32 %v1641_v28, %v3118_v9  ;;  %v1707_v42 = vadd.f32 %v1706_v32, %v3120_v11 }
 0x323   : > { %1823 = vst [vmem:[%s3129_s30 + $0x100] sm:$0xff] %v1759_v39 }
 0x324   : > { %1824 = vst [vmem:[%s3129_s30 + $0x108] sm:$0xff] %v1760_v8  ;;  %v1765_v48 = vmax.f32 %v1642_v6, 0.0  ;;  %v1766_v15 = vmax.f32 %v1707_v42, 0.0 }
 0x326   : > { %1829 = vst [vmem:[%s3129_s30 + $0x130] sm:$0xff] %v1765_v48  ;;  %v1511_v16 = vpop.f32.mrf.mxu2  ;;  %v1576_v22 = vpop.f32.mrf.mxu3 }
 0x327   : > { %1830 = vst [vmem:[%s3129_s30 + $0x138] sm:$0xff] %v1766_v15  ;;  %v1512_v34 = vadd.f32 %v1511_v16, %v3125_v20  ;;  %v1577_v4 = vadd.f32 %v1576_v22, %v3127_v33 }
 0x329   : > { %v1763_v17 = vmax.f32 %v1512_v34, 0.0  ;;  %v1764_v58 = vmax.f32 %v1577_v4, 0.0  ;;  %v1644_v59 = vpop.f32.mrf.mxu0  ;;  %v1709_v31 = vpop.f32.mrf.mxu1 }
 0x32a   : > { %v1645_v45 = vadd.f32 %v1644_v59, %v3118_v9  ;;  %v1710_v13 = vadd.f32 %v1709_v31, %v3120_v11 }
 0x32b   : > { %1827 = vst [vmem:[%s3129_s30 + $0x120] sm:$0xff] %v1763_v17 }
 0x32c   : > { %1828 = vst [vmem:[%s3129_s30 + $0x128] sm:$0xff] %v1764_v58  ;;  %v1769_v52 = vmax.f32 %v1645_v45, 0.0  ;;  %v1770_v63 = vmax.f32 %v1710_v13, 0.0 }
 0x32e   : > { %1833 = vst [vmem:[%s3129_s30 + $0x150] sm:$0xff] %v1769_v52  ;;  %v1514_v51 = vpop.f32.mrf.mxu2  ;;  %v1579_v14 = vpop.f32.mrf.mxu3 }
 0x32f   : > { %1834 = vst [vmem:[%s3129_s30 + $0x158] sm:$0xff] %v1770_v63  ;;  %v1515_v46 = vadd.f32 %v1514_v51, %v3125_v20  ;;  %v1580_v37 = vadd.f32 %v1579_v14, %v3127_v33 }
 0x331   : > { %v1767_v5 = vmax.f32 %v1515_v46, 0.0  ;;  %v1768_v36 = vmax.f32 %v1580_v37, 0.0  ;;  %v1647_v43 = vpop.f32.mrf.mxu0  ;;  %v1712_v62 = vpop.f32.mrf.mxu1 }
 0x332   : > { %v1648_v18 = vadd.f32 %v1647_v43, %v3118_v9  ;;  %v1713_v38 = vadd.f32 %v1712_v62, %v3120_v11 }
 0x333   : > { %1831 = vst [vmem:[%s3129_s30 + $0x140] sm:$0xff] %v1767_v5 }
 0x334   : > { %1832 = vst [vmem:[%s3129_s30 + $0x148] sm:$0xff] %v1768_v36  ;;  %v1773_v25 = vmax.f32 %v1648_v18, 0.0  ;;  %v1774_v12 = vmax.f32 %v1713_v38, 0.0 }
 0x336   : > { %1837 = vst [vmem:[%s3129_s30 + $0x170] sm:$0xff] %v1773_v25  ;;  %v1517_v54 = vpop.f32.mrf.mxu2  ;;  %v1582_v61 = vpop.f32.mrf.mxu3 }
 0x337   : > { %1838 = vst [vmem:[%s3129_s30 + $0x178] sm:$0xff] %v1774_v12  ;;  %v1518_v0 = vadd.f32 %v1517_v54, %v3125_v20  ;;  %v1583_v2 = vadd.f32 %v1582_v61, %v3127_v33 }
 0x339   : > { %v1771_v3 = vmax.f32 %v1518_v0, 0.0  ;;  %v1772_v40 = vmax.f32 %v1583_v2, 0.0  ;;  %v1650_v44 = vpop.f32.mrf.mxu0  ;;  %v1715_v49 = vpop.f32.mrf.mxu1 }
 0x33a   : > { %v1651_v19 = vadd.f32 %v1650_v44, %v3118_v9  ;;  %v1716_v1 = vadd.f32 %v1715_v49, %v3120_v11 }
 0x33b   : > { %1835 = vst [vmem:[%s3129_s30 + $0x160] sm:$0xff] %v1771_v3 }
 0x33c   : > { %1836 = vst [vmem:[%s3129_s30 + $0x168] sm:$0xff] %v1772_v40  ;;  %v1777_v30 = vmax.f32 %v1651_v19, 0.0  ;;  %v1778_v10 = vmax.f32 %v1716_v1, 0.0 }
 0x33e   : > { %1841 = vst [vmem:[%s3129_s30 + $0x190] sm:$0xff] %v1777_v30  ;;  %v1520_v7 = vpop.f32.mrf.mxu2  ;;  %v1585_v55 = vpop.f32.mrf.mxu3 }
 0x33f   : > { %1842 = vst [vmem:[%s3129_s30 + $0x198] sm:$0xff] %v1778_v10  ;;  %v1521_v23 = vadd.f32 %v1520_v7, %v3125_v20  ;;  %v1586_v35 = vadd.f32 %v1585_v55, %v3127_v33 }
 0x341   : > { %v1775_v56 = vmax.f32 %v1521_v23, 0.0  ;;  %v1776_v50 = vmax.f32 %v1586_v35, 0.0  ;;  %v1653_v24 = vpop.f32.mrf.mxu0  ;;  %v1718_v47 = vpop.f32.mrf.mxu1 }
 0x342   : > { %v1654_v29 = vadd.f32 %v1653_v24, %v3118_v9  ;;  %v1719_v26 = vadd.f32 %v1718_v47, %v3120_v11 }
 0x343   : > { %1839 = vst [vmem:[%s3129_s30 + $0x180] sm:$0xff] %v1775_v56 }
 0x344   : > { %1840 = vst [vmem:[%s3129_s30 + $0x188] sm:$0xff] %v1776_v50  ;;  %v1781_v21 = vmax.f32 %v1654_v29, 0.0  ;;  %v1782_v53 = vmax.f32 %v1719_v26, 0.0 }
 0x346   : > { %1845 = vst [vmem:[%s3129_s30 + $0x1b0] sm:$0xff] %v1781_v21  ;;  %v1523_v60 = vpop.f32.mrf.mxu2  ;;  %v1588_v27 = vpop.f32.mrf.mxu3 }
 0x347   : > { %1846 = vst [vmem:[%s3129_s30 + $0x1b8] sm:$0xff] %v1782_v53  ;;  %v1524_v41 = vadd.f32 %v1523_v60, %v3125_v20  ;;  %v1589_v57 = vadd.f32 %v1588_v27, %v3127_v33 }
 0x349   : > { %v1779_v39 = vmax.f32 %v1524_v41, 0.0  ;;  %v1780_v8 = vmax.f32 %v1589_v57, 0.0  ;;  %v1656_v28 = vpop.f32.mrf.mxu0  ;;  %v1721_v32 = vpop.f32.mrf.mxu1 }
 0x34a   : > { %v1657_v6 = vadd.f32 %v1656_v28, %v3118_v9  ;;  %v1722_v42 = vadd.f32 %v1721_v32, %v3120_v11 }
 0x34b   : > { %1843 = vst [vmem:[%s3129_s30 + $0x1a0] sm:$0xff] %v1779_v39 }
 0x34c   : > { %1844 = vst [vmem:[%s3129_s30 + $0x1a8] sm:$0xff] %v1780_v8  ;;  %v1785_v48 = vmax.f32 %v1657_v6, 0.0  ;;  %v1786_v15 = vmax.f32 %v1722_v42, 0.0 }
 0x34e   : > { %1849 = vst [vmem:[%s3129_s30 + $0x1d0] sm:$0xff] %v1785_v48  ;;  %v1526_v16 = vpop.f32.mrf.mxu2  ;;  %v1591_v22 = vpop.f32.mrf.mxu3 }
 0x34f   : > { %1850 = vst [vmem:[%s3129_s30 + $0x1d8] sm:$0xff] %v1786_v15  ;;  %v1527_v34 = vadd.f32 %v1526_v16, %v3125_v20  ;;  %v1592_v4 = vadd.f32 %v1591_v22, %v3127_v33 }
 0x351   : > { %v1783_v17 = vmax.f32 %v1527_v34, 0.0  ;;  %v1784_v58 = vmax.f32 %v1592_v4, 0.0  ;;  %v1659_v59 = vpop.f32.mrf.mxu0  ;;  %v1724_v31 = vpop.f32.mrf.mxu1 }
 0x352   : > { %v1660_v45 = vadd.f32 %v1659_v59, %v3118_v9  ;;  %v1725_v13 = vadd.f32 %v1724_v31, %v3120_v11 }
 0x353   : > { %1847 = vst [vmem:[%s3129_s30 + $0x1c0] sm:$0xff] %v1783_v17 }
 0x354   : > { %1848 = vst [vmem:[%s3129_s30 + $0x1c8] sm:$0xff] %v1784_v58  ;;  %v1789_v52 = vmax.f32 %v1660_v45, 0.0  ;;  %v1790_v63 = vmax.f32 %v1725_v13, 0.0 }
 0x356   : > { %1853 = vst [vmem:[%s3129_s30 + $0x1f0] sm:$0xff] %v1789_v52  ;;  %v1529_v51 = vpop.f32.mrf.mxu2  ;;  %v1594_v14 = vpop.f32.mrf.mxu3 }
 0x357   : > { %1854 = vst [vmem:[%s3129_s30 + $0x1f8] sm:$0xff] %v1790_v63  ;;  %v1530_v46 = vadd.f32 %v1529_v51, %v3125_v20  ;;  %v1595_v37 = vadd.f32 %v1594_v14, %v3127_v33 }
 0x358   : > { %1862 = sbr.rel (!%p2575_p11) target bundleno = 892 (0x37c), region = 84 }
 0x359   : > { %v1787_v5 = vmax.f32 %v1530_v46, 0.0  ;;  %v1788_v36 = vmax.f32 %v1595_v37, 0.0 }
 0x35b   : > { %1851 = vst [vmem:[%s3129_s30 + $0x1e0] sm:$0xff] %v1787_v5 }
 0x35c   : > { %1852 = vst [vmem:[%s3129_s30 + $0x1e8] sm:$0xff] %v1788_v36 }
 0x35d   : > { %s3375_s15 = smov (!%p1865_p6, %s1864_s15), 16 }
 0x35e   : > { %s2040_s28 = sshll.u32 %s3375_s15, 5 }
 0x35f   : > { %s1869_s27 = ssub.s32 512, %s2040_s28 }
 0x360   : > { %s1870_s22 = sshll.u32 %s1869_s27, 4 }
 0x361   : > { %1871 = vsyncadd %s1856_s16, %s1870_s22  ;;  %p3266_p10 = scmp.ne.s32.totalorder %s2040_s28, 0  ;;  %s2042_s24 = sshll.u32 %s2544_s13, 9 }
 0x362   : > { %s3362_s29 = sld [smem:[#allocation26_spill]]  ;;  %s1877_s20 = sshll.u32 %s3129_s30, 4  ;;  %s3275_s20 = int_to_ptr.vmem [resolvable:$true] %s1877_s20 }
 0x363   : > { %s2034_s25 = sshll.u32 %s3375_s15, 9  ;;  %s2365_s1 = sshra.s32 %s3275_s20, 4  ;;  %s2366_s1 = int_to_ptr.vmem [resolvable:$true] %s2365_s1 }
 0x364   : > { %s2367_s19 = sshrl.u32 %s2034_s25, 4  ;;  %s2470_s13 = smov [#allocation13]  }
 0x365   : > { %s2372_s17 = scalar_lea.vmem %s2366_s1, %s2367_s19  ;;  %s2376_s3 = scalar_lea.vmem %s2470_s13, 1024 }
 0x366   : > { %p2373_p11 = scmp.ne.s32.totalorder %s2366_s1, %s2372_s17  ;;  %p2378_p3 = scmp.lt.s32.totalorder %s2376_s3, %s2372_s17 }
 0x368   : > { %s1875_s14 = scalar_lea.hbm %s3362_s29, %s2042_s24  ;;  %p2374_p1 = pnand %p2373_p11, %p3266_p10 }
 0x369   : > { %s1879_s23 = sshll.u32 %s1875_s14, 4  ;;  %s3277_s23 = int_to_ptr.hbm [resolvable:$true] %s1879_s23 }
 0x36a   : > { %p2375_p0 = pneg %p2374_p1 }
 0x36c   : > { %p2380_p7 = pnand %p2378_p3, %p2375_p0 }
 0x36e   : > { %2383 = shalt.err (!%p2380_p7)
}
 0x36f   : > { %s2384_s30 = sshra.s32 %s3277_s23, 4  ;;  %s2395_s22 = scalar_lea.hbm %s3362_s29, 800  ;;  %s2385_s30 = int_to_ptr.hbm [resolvable:$true] %s2384_s30 }
 0x370   : > { %s2391_s26 = scalar_lea.hbm %s2385_s30, %s2367_s19  ;;  %p2396_p13 = scmp.lt.s32.totalorder %s2385_s30, %s3362_s29 }
 0x371   : > { %p2392_p8 = scmp.ne.s32.totalorder %s2385_s30, %s2391_s26  ;;  %p2397_p2 = scmp.lt.s32.totalorder %s2395_s22, %s2391_s26 }
 0x373   : > { %p2393_p4 = pnand %p2392_p8, %p3266_p10  ;;  %p2398_p5 = por %p2397_p2, %p2396_p13 }
 0x375   : > { %p2394_p12 = pneg %p2393_p4 }
 0x377   : > { %p2399_p9 = pnand %p2398_p5, %p2394_p12 }
 0x379   : > { %2402 = shalt.err (!%p2399_p9)
}
 0x37a   : > { %s2471_s9 = smov 512   ;;  %s2472_s14 = smov 32  }
 0x37b   : > { %1885 = dma.vmem_to_hbm [thread:$0]  (%p3266_p10), %s3275_s20, %s2034_s25, %s3277_s23, %s1856_s16, %s2471_s9, %s2471_s9, %s2472_s14  }
 0x37c PF: > { %s3363_s1 = sld [smem:[#allocation19_spill]]  ;;  %p3366_p11 = scmp.ge.s32.totalorder %s2454_s12, 2 }
 0x37d   : > { %s3364_s19 = sld [smem:[#allocation22_spill]] }
 0x382   : > { %s1894_s17 = sand.u32 1, %s3363_s1  }
 0x383   : > { %p3365_p6 = scmp.ne.s32.totalorder %s3364_s19, 0  ;;  %s1895_s13 = scalar_lea.sflag [#allocation4], %s1894_s17 }
 0x385   : > { %p2114_p1 = pnand %p3366_p11, %p3365_p6 }
 0x387   : > { %p2115_p0 = pneg %p2114_p1 }
 0x389   : > { %2437 = dma.done.wait (%p2115_p0), %s1895_s13, 8192  }
 0x38a   : > { %2439 = vsyncadd (%p2115_p0), %s1895_s13, 4294959104  ;;  %s3367_s12 = sld [smem:[#allocation20_spill]]  ;;  %s3369_s30 = smov %s2446_s10 }
 0x38b   : > { %s3368_s21 = sld [smem:[#allocation21_spill]]  ;;  %s3370_s10 = smov %s2450_s11 }
 0x390   : > { %p25_p3 = scmp.ge.s32.totalorder %s3367_s12, 4  }
 0x391   : > { %s3371_s11 = smov %s3368_s21 }
 0x392   :  { %27 = sbr.rel (!%p25_p3) target bundleno = 13 (0xd), region = 121 }
 0x397   :  { %1901 = vsyncpa [#allocation3], 1 }
 0x398   :  { %1903 = vsyncpa [#allocation3 + $0x1], 1 }
 0x399   :  { %1904 = vsyncpa [#allocation6], 1 }
 0x39a   :  { %1905 = vsyncpa [#allocation9], 1 }
 0x39b   :  { %1906 = vsyncpa [#allocation12], 1 }
 0x39c   :  { %1907 = vsyncpa [#allocation4], 1 }
 0x39d   :  { %1909 = vsyncpa [#allocation4 + $0x1], 1 }

</bundles_post_ra>
